<compile_context>
chip_gen: v7x
topology: tpu7x:2x2x1
jax: 0.10.0
libtpu: 0.0.40
codegen_flags: <defaults>
</compile_context>

<pallas_src>
import functools

import numpy as np
import jax
import jax.numpy as jnp
from jax import lax
from jax.experimental import pallas as pl
from jax.experimental.pallas import tpu as pltpu


# ---------------- fused conv + bias + ReLU + 2x2 max-pool kernel -----------

def _conv_relu_pool_kernel(x_ref, w_ref, b_ref, o_ref, p_ref, *,
                           kh, kw, cin, cout, oh, ow, ph, pw):
    """One image: valid 5x5 conv + bias + ReLU + 2x2/2 max-pool, all in VMEM.

    x_ref: (1, H, Cin, W)    channel-major image block
    w_ref: (Cout, K)         K = KH*KW*Cin, column order (kh, kw, cin)
    b_ref: (Cout, 1)
    o_ref: (1, PH, Cout, PW) pooled output block
    p_ref: (2, K, OW)        VMEM scratch: im2col patches for one row pair
    """
    w = w_ref[...]
    b = b_ref[...]

    # 0/1 selection matrices picking even / odd conv columns: the W-direction
    # max-pool becomes two tiny MXU matmuls (no strided value slicing).
    col = lax.broadcasted_iota(jnp.int32, (ow, pw), 0)
    grp = lax.broadcasted_iota(jnp.int32, (ow, pw), 1)
    sel_e = (col == 2 * grp).astype(jnp.float32)
    sel_o = (col == 2 * grp + 1).astype(jnp.float32)

    def row_pair(r, carry):
        # Conv-output rows y = 2r and 2r+1 feed pooled output row r.
        rows = [x_ref[0, 2 * r + d, :, :] for d in range(kh + 1)]    # (Cin, W)
        for s in range(2):                      # the two rows of the pool pair
            for i in range(kh):
                src = rows[s + i]
                for j in range(kw):
                    # im2col built directly in VMEM scratch (never in HBM).
                    p_ref[s, pl.ds((i * kw + j) * cin, cin), :] = src[:, j:j + ow]
        a0 = jnp.dot(w, p_ref[0], preferred_element_type=jnp.float32) + b
        a1 = jnp.dot(w, p_ref[1], preferred_element_type=jnp.float32) + b
        h = jnp.maximum(jnp.maximum(a0, 0.0), jnp.maximum(a1, 0.0))  # (Cout, OW)
        pooled = jnp.maximum(
            jnp.dot(h, sel_e, preferred_element_type=jnp.float32),
            jnp.dot(h, sel_o, preferred_element_type=jnp.float32))   # (Cout, PW)
        o_ref[0, r] = pooled.astype(o_ref.dtype)
        return carry

    lax.fori_loop(0, ph, row_pair, 0)


def conv_relu_pool(x, w_mat, b_col, *, kh, kw):
    """x: (N, H, Cin, W) channel-major; w_mat: (Cout, KH*KW*Cin); b: (Cout, 1)."""
    n, h, cin, wdt = x.shape
    cout, k = w_mat.shape
    oh, ow = h - kh + 1, wdt - kw + 1
    ph, pw = oh // 2, ow // 2
    kernel = functools.partial(_conv_relu_pool_kernel, kh=kh, kw=kw, cin=cin,
                               cout=cout, oh=oh, ow=ow, ph=ph, pw=pw)
    return pl.pallas_call(
        kernel,
        out_shape=jax.ShapeDtypeStruct((n, ph, cout, pw), jnp.float32),
        grid=(n,),
        in_specs=[
            pl.BlockSpec((1, h, cin, wdt), lambda i: (i, 0, 0, 0)),
            pl.BlockSpec((cout, k), lambda i: (0, 0)),
            pl.BlockSpec((cout, 1), lambda i: (0, 0)),
        ],
        out_specs=pl.BlockSpec((1, ph, cout, pw), lambda i: (i, 0, 0, 0)),
        scratch_shapes=[pltpu.VMEM((2, k, ow), jnp.float32)],
        compiler_params=pltpu.CompilerParams(
            dimension_semantics=("parallel",)),
    )(x, w_mat, b_col)


# --------------------- fused 3-layer MLP (fc1/fc2/fc3) ---------------------

def _mlp_kernel(x_ref, w1_ref, b1_ref, w2_ref, b2_ref, w3_ref, b3_ref, o_ref):
    h = jnp.dot(x_ref[...], w1_ref[...],
                preferred_element_type=jnp.float32) + b1_ref[...]
    h = jnp.maximum(h, 0.0)
    h = jnp.dot(h, w2_ref[...],
                preferred_element_type=jnp.float32) + b2_ref[...]
    h = jnp.maximum(h, 0.0)
    o = jnp.dot(h, w3_ref[...],
                preferred_element_type=jnp.float32) + b3_ref[...]
    o_ref[...] = o.astype(o_ref.dtype)


def mlp3(x, w1, b1, w2, b2, w3, b3, *, tm):
    m, k1 = x.shape
    n_out = w3.shape[1]

    def full(a):
        return pl.BlockSpec(a.shape, lambda i: (0, 0))

    return pl.pallas_call(
        _mlp_kernel,
        out_shape=jax.ShapeDtypeStruct((m, n_out), jnp.float32),
        grid=(m // tm,),
        in_specs=[pl.BlockSpec((tm, k1), lambda i: (i, 0)),
                  full(w1), full(b1), full(w2), full(b2), full(w3), full(b3)],
        out_specs=pl.BlockSpec((tm, n_out), lambda i: (i, 0)),
        compiler_params=pltpu.CompilerParams(
            dimension_semantics=("parallel",)),
    )(x, w1, b1, w2, b2, w3, b3)


# ------------------------------ parameters --------------------------------

def init_params(key):
    """Raw parameters in the PyTorch layouts of `Net`."""
    def uni(k, shape, fan_in):
        bound = 1.0 / np.sqrt(fan_in)
        return jax.random.uniform(k, shape, jnp.float32, -bound, bound)

    ks = jax.random.split(key, 10)
    return {
        "conv1_w": uni(ks[0], (6, 3, 5, 5), 3 * 5 * 5),
        "conv1_b": uni(ks[1], (6,), 3 * 5 * 5),
        "conv2_w": uni(ks[2], (16, 6, 5, 5), 6 * 5 * 5),
        "conv2_b": uni(ks[3], (16,), 6 * 5 * 5),
        "fc1_w":   uni(ks[4], (120, 16 * 5 * 5), 16 * 5 * 5),
        "fc1_b":   uni(ks[5], (120,), 16 * 5 * 5),
        "fc2_w":   uni(ks[6], (84, 120), 120),
        "fc2_b":   uni(ks[7], (84,), 120),
        "fc3_w":   uni(ks[8], (10, 84), 84),
        "fc3_b":   uni(ks[9], (10,), 84),
    }


def _pad2(a, rows, cols):
    return jnp.pad(a, ((0, rows - a.shape[0]), (0, cols - a.shape[1])))


def prepare_params(p):
    """One-time reshape / transpose / permute / zero-pad into kernel layouts."""
    out = {}
    # Conv weights -> (Cout, KH*KW*Cin), column order (kh, kw, cin).
    out["conv1_w"] = jnp.transpose(p["conv1_w"], (0, 2, 3, 1)).reshape(6, 75)
    out["conv1_b"] = p["conv1_b"].reshape(6, 1)
    out["conv2_w"] = jnp.transpose(p["conv2_w"], (0, 2, 3, 1)).reshape(16, 150)
    out["conv2_b"] = p["conv2_b"].reshape(16, 1)
    # fc1: permute columns from torch's (c, h, w) flatten order to the kernel
    # activation's (h, c, w) order, transpose to (K, N), pad N -> 128.
    perm = np.transpose(np.arange(400).reshape(16, 5, 5), (1, 0, 2)).reshape(400)
    out["fc1_w"] = _pad2(p["fc1_w"][:, perm].T, 400, 128)       # (400, 128)
    out["fc1_b"] = _pad2(p["fc1_b"].reshape(1, 120), 1, 128)
    out["fc2_w"] = _pad2(p["fc2_w"].T, 128, 128)                # (128, 128)
    out["fc2_b"] = _pad2(p["fc2_b"].reshape(1, 84), 1, 128)
    out["fc3_w"] = _pad2(p["fc3_w"].T, 128, 128)                # (128, 128)
    out["fc3_b"] = _pad2(p["fc3_b"].reshape(1, 10), 1, 128)
    return out


# ------------------------------ forward pass -------------------------------

def _round_up(x, m):
    return (x + m - 1) // m * m


@jax.jit
def net_forward(x_nchw, params):
    # x_nchw: (N, 3, 32, 32), PyTorch NCHW convention (32x32 forced by fc1).
    n = x_nchw.shape[0]
    x = jnp.transpose(x_nchw, (0, 2, 1, 3))                    # (N, H, C, W)
    x = conv_relu_pool(x, params["conv1_w"], params["conv1_b"], kh=5, kw=5)
    # -> (N, 14, 6, 14)
    x = conv_relu_pool(x, params["conv2_w"], params["conv2_b"], kh=5, kw=5)
    # -> (N, 5, 16, 5); flatten order (h, c, w) is absorbed by the fc1 column
    # permutation done once in prepare_params.
    flat = x.reshape(n, 400)
    if n <= 128:
        m_pad = _round_up(n, 8)
        tm = m_pad
    else:
        m_pad = _round_up(n, 128)
        tm = 128
    flat = jnp.pad(flat, ((0, m_pad - n), (0, 0)))
    logits = mlp3(flat, params["fc1_w"], params["fc1_b"],
                  params["fc2_w"], params["fc2_b"],
                  params["fc3_w"], params["fc3_b"], tm=tm)
    return logits[:n, :10]


def reference_forward(x, p):
    # Pure-XLA reference of the PyTorch forward, for verification.
    hi = lax.Precision.HIGHEST
    dn = ("NCHW", "OIHW", "NCHW")
    y = lax.conv_general_dilated(x, p["conv1_w"], (1, 1), "VALID",
                                 dimension_numbers=dn, precision=hi)
    y = jnp.maximum(y + p["conv1_b"][None, :, None, None], 0.0)
    y = lax.reduce_window(y, -jnp.inf, lax.max,
                          (1, 1, 2, 2), (1, 1, 2, 2), "VALID")
    y = lax.conv_general_dilated(y, p["conv2_w"], (1, 1), "VALID",
                                 dimension_numbers=dn, precision=hi)
    y = jnp.maximum(y + p["conv2_b"][None, :, None, None], 0.0)
    y = lax.reduce_window(y, -jnp.inf, lax.max,
                          (1, 1, 2, 2), (1, 1, 2, 2), "VALID")
    y = y.reshape(y.shape[0], -1)
    y = jnp.maximum(jnp.dot(y, p["fc1_w"].T, precision=hi) + p["fc1_b"], 0.0)
    y = jnp.maximum(jnp.dot(y, p["fc2_w"].T, precision=hi) + p["fc2_b"], 0.0)
    return jnp.dot(y, p["fc3_w"].T, precision=hi) + p["fc3_b"]


if __name__ == "__main__":
    key = jax.random.PRNGKey(0)
    pkey, xkey = jax.random.split(key)
    raw = init_params(pkey)
    params = prepare_params(raw)
    x = jax.random.normal(xkey, (2, 3, 32, 32), dtype=jnp.float32)

    out = jax.block_until_ready(net_forward(x, params))
    assert out.shape == (2, 10), out.shape

    ref = reference_forward(x, raw)
    np.testing.assert_allclose(np.asarray(out), np.asarray(ref),
                               rtol=1e-3, atol=1e-3)
    print("KERNEL_OK")
</pallas_src>

<mosaic_0001>
module attributes {stable_mosaic.version = 11 : i64} {
  func.func @_conv_relu_pool_kernel(%arg0: i32, %arg1: memref<1x32x3x32xf32, #tpu.memory_space<vmem>>, %arg2: memref<6x75xf32, #tpu.memory_space<vmem>>, %arg3: memref<6x1xf32, #tpu.memory_space<vmem>>, %arg4: memref<1x14x6x14xf32, #tpu.memory_space<vmem>>, %arg5: memref<2x75x28xf32, #tpu.memory_space<vmem>>) attributes {dimension_semantics = [#tpu.dimension_semantics<parallel>], iteration_bounds = array<i64: 2>, scalar_prefetch = 0 : i64, scratch_operands = 1 : i64, tpu.core_type = #tpu.core_type<tc>, window_params = [{transform_indices = @transform_0, window_bounds = array<i64: 1, 32, 3, 32>}, {pipeline_mode = #tpu.pipeline_mode<synchronous>, transform_indices = @transform_1, window_bounds = array<i64: 6, 75>}, {pipeline_mode = #tpu.pipeline_mode<synchronous>, transform_indices = @transform_2, window_bounds = array<i64: 6, 1>}, {transform_indices = @transform_3, window_bounds = array<i64: 1, 14, 6, 14>}]} {
    %c0 = arith.constant 0 : index
    %c0_0 = arith.constant 0 : index
    %0 = vector.load %arg2[%c0, %c0_0] : memref<6x75xf32, #tpu.memory_space<vmem>>, vector<6x75xf32>
    %c0_1 = arith.constant 0 : index
    %c0_2 = arith.constant 0 : index
    %1 = vector.load %arg3[%c0_1, %c0_2] : memref<6x1xf32, #tpu.memory_space<vmem>>, vector<6x1xf32>
    %2 = tpu.iota {dimensions = array<i32: 0>} : vector<28x14xi32>
    %3 = tpu.iota {dimensions = array<i32: 1>} : vector<28x14xi32>
    %c2_i32 = arith.constant 2 : i32
    %4 = vector.broadcast %c2_i32 : i32 to vector<28x14xi32>
    %5 = arith.muli %4, %3 : vector<28x14xi32>
    %6 = arith.cmpi eq, %2, %5 : vector<28x14xi32>
    %7 = arith.extui %6 : vector<28x14xi1> to vector<28x14xi32>
    %8 = arith.sitofp %7 : vector<28x14xi32> to vector<28x14xf32>
    %c2_i32_3 = arith.constant 2 : i32
    %9 = vector.broadcast %c2_i32_3 : i32 to vector<28x14xi32>
    %10 = arith.muli %9, %3 : vector<28x14xi32>
    %c1_i32 = arith.constant 1 : i32
    %11 = vector.broadcast %c1_i32 : i32 to vector<28x14xi32>
    %12 = arith.addi %10, %11 : vector<28x14xi32>
    %13 = arith.cmpi eq, %2, %12 : vector<28x14xi32>
    %14 = arith.extui %13 : vector<28x14xi1> to vector<28x14xi32>
    %15 = arith.sitofp %14 : vector<28x14xi32> to vector<28x14xf32>
    %c0_i32 = arith.constant 0 : i32
    %c14_i32 = arith.constant 14 : i32
    %16 = arith.addi %c0_i32, %c14_i32 : i32
    %c1_i32_4 = arith.constant 1 : i32
    scf.for %arg6 = %c0_i32 to %16 step %c1_i32_4  : i32 {
      %c2_i32_6 = arith.constant 2 : i32
      %17 = arith.muli %c2_i32_6, %arg6 : i32
      %c0_i32_7 = arith.constant 0 : i32
      %18 = arith.addi %17, %c0_i32_7 : i32
      %c0_8 = arith.constant 0 : index
      %19 = arith.index_cast %18 : i32 to index
      %c0_9 = arith.constant 0 : index
      %c0_10 = arith.constant 0 : index
      %20 = vector.load %arg1[%c0_8, %19, %c0_9, %c0_10] : memref<1x32x3x32xf32, #tpu.memory_space<vmem>>, vector<1x1x3x32xf32>
      %21 = vector.shape_cast %20 : vector<1x1x3x32xf32> to vector<3x32xf32>
      %c2_i32_11 = arith.constant 2 : i32
      %22 = arith.muli %c2_i32_11, %arg6 : i32
      %c1_i32_12 = arith.constant 1 : i32
      %23 = arith.addi %22, %c1_i32_12 : i32
      %c0_13 = arith.constant 0 : index
      %24 = arith.index_cast %23 : i32 to index
      %c0_14 = arith.constant 0 : index
      %c0_15 = arith.constant 0 : index
      %25 = vector.load %arg1[%c0_13, %24, %c0_14, %c0_15] : memref<1x32x3x32xf32, #tpu.memory_space<vmem>>, vector<1x1x3x32xf32>
      %26 = vector.shape_cast %25 : vector<1x1x3x32xf32> to vector<3x32xf32>
      %c2_i32_16 = arith.constant 2 : i32
      %27 = arith.muli %c2_i32_16, %arg6 : i32
      %c2_i32_17 = arith.constant 2 : i32
      %28 = arith.addi %27, %c2_i32_17 : i32
      %c0_18 = arith.constant 0 : index
      %29 = arith.index_cast %28 : i32 to index
      %c0_19 = arith.constant 0 : index
      %c0_20 = arith.constant 0 : index
      %30 = vector.load %arg1[%c0_18, %29, %c0_19, %c0_20] : memref<1x32x3x32xf32, #tpu.memory_space<vmem>>, vector<1x1x3x32xf32>
      %31 = vector.shape_cast %30 : vector<1x1x3x32xf32> to vector<3x32xf32>
      %c2_i32_21 = arith.constant 2 : i32
      %32 = arith.muli %c2_i32_21, %arg6 : i32
      %c3_i32 = arith.constant 3 : i32
      %33 = arith.addi %32, %c3_i32 : i32
      %c0_22 = arith.constant 0 : index
      %34 = arith.index_cast %33 : i32 to index
      %c0_23 = arith.constant 0 : index
      %c0_24 = arith.constant 0 : index
      %35 = vector.load %arg1[%c0_22, %34, %c0_23, %c0_24] : memref<1x32x3x32xf32, #tpu.memory_space<vmem>>, vector<1x1x3x32xf32>
      %36 = vector.shape_cast %35 : vector<1x1x3x32xf32> to vector<3x32xf32>
      %c2_i32_25 = arith.constant 2 : i32
      %37 = arith.muli %c2_i32_25, %arg6 : i32
      %c4_i32 = arith.constant 4 : i32
      %38 = arith.addi %37, %c4_i32 : i32
      %c0_26 = arith.constant 0 : index
      %39 = arith.index_cast %38 : i32 to index
      %c0_27 = arith.constant 0 : index
      %c0_28 = arith.constant 0 : index
      %40 = vector.load %arg1[%c0_26, %39, %c0_27, %c0_28] : memref<1x32x3x32xf32, #tpu.memory_space<vmem>>, vector<1x1x3x32xf32>
      %41 = vector.shape_cast %40 : vector<1x1x3x32xf32> to vector<3x32xf32>
      %c2_i32_29 = arith.constant 2 : i32
      %42 = arith.muli %c2_i32_29, %arg6 : i32
      %c5_i32 = arith.constant 5 : i32
      %43 = arith.addi %42, %c5_i32 : i32
      %c0_30 = arith.constant 0 : index
      %44 = arith.index_cast %43 : i32 to index
      %c0_31 = arith.constant 0 : index
      %c0_32 = arith.constant 0 : index
      %45 = vector.load %arg1[%c0_30, %44, %c0_31, %c0_32] : memref<1x32x3x32xf32, #tpu.memory_space<vmem>>, vector<1x1x3x32xf32>
      %46 = vector.shape_cast %45 : vector<1x1x3x32xf32> to vector<3x32xf32>
      %47 = vector.extract_strided_slice %21 {offsets = [0, 0], sizes = [3, 28], strides = [1, 1]} : vector<3x32xf32> to vector<3x28xf32>
      %c0_33 = arith.constant 0 : index
      %c0_34 = arith.constant 0 : index
      %c0_35 = arith.constant 0 : index
      %48 = vector.load %arg5[%c0_33, %c0_34, %c0_35] : memref<2x75x28xf32, #tpu.memory_space<vmem>>, vector<1x3x28xf32>
      %49 = vector.shape_cast %48 : vector<1x3x28xf32> to vector<3x28xf32>
      %50 = vector.shape_cast %47 : vector<3x28xf32> to vector<1x3x28xf32>
      tpu.vector_store %arg5[%c0_33, %c0_34, %c0_35], %50 {strides = array<i32>} : memref<2x75x28xf32, #tpu.memory_space<vmem>>, vector<1x3x28xf32>,
      %51 = vector.extract_strided_slice %21 {offsets = [0, 1], sizes = [3, 28], strides = [1, 1]} : vector<3x32xf32> to vector<3x28xf32>
      %c0_36 = arith.constant 0 : index
      %c3 = arith.constant 3 : index
      %c0_37 = arith.constant 0 : index
      %52 = vector.load %arg5[%c0_36, %c3, %c0_37] : memref<2x75x28xf32, #tpu.memory_space<vmem>>, vector<1x3x28xf32>
      %53 = vector.shape_cast %52 : vector<1x3x28xf32> to vector<3x28xf32>
      %54 = vector.shape_cast %51 : vector<3x28xf32> to vector<1x3x28xf32>
      tpu.vector_store %arg5[%c0_36, %c3, %c0_37], %54 {strides = array<i32>} : memref<2x75x28xf32, #tpu.memory_space<vmem>>, vector<1x3x28xf32>,
      %55 = vector.extract_strided_slice %21 {offsets = [0, 2], sizes = [3, 28], strides = [1, 1]} : vector<3x32xf32> to vector<3x28xf32>
      %c0_38 = arith.constant 0 : index
      %c6 = arith.constant 6 : index
      %c0_39 = arith.constant 0 : index
      %56 = vector.load %arg5[%c0_38, %c6, %c0_39] : memref<2x75x28xf32, #tpu.memory_space<vmem>>, vector<1x3x28xf32>
      %57 = vector.shape_cast %56 : vector<1x3x28xf32> to vector<3x28xf32>
      %58 = vector.shape_cast %55 : vector<3x28xf32> to vector<1x3x28xf32>
      tpu.vector_store %arg5[%c0_38, %c6, %c0_39], %58 {strides = array<i32>} : memref<2x75x28xf32, #tpu.memory_space<vmem>>, vector<1x3x28xf32>,
      %59 = vector.extract_strided_slice %21 {offsets = [0, 3], sizes = [3, 28], strides = [1, 1]} : vector<3x32xf32> to vector<3x28xf32>
      %c0_40 = arith.constant 0 : index
      %c9 = arith.constant 9 : index
      %c0_41 = arith.constant 0 : index
      %60 = vector.load %arg5[%c0_40, %c9, %c0_41] : memref<2x75x28xf32, #tpu.memory_space<vmem>>, vector<1x3x28xf32>
      %61 = vector.shape_cast %60 : vector<1x3x28xf32> to vector<3x28xf32>
      %62 = vector.shape_cast %59 : vector<3x28xf32> to vector<1x3x28xf32>
      tpu.vector_store %arg5[%c0_40, %c9, %c0_41], %62 {strides = array<i32>} : memref<2x75x28xf32, #tpu.memory_space<vmem>>, vector<1x3x28xf32>,
      %63 = vector.extract_strided_slice %21 {offsets = [0, 4], sizes = [3, 28], strides = [1, 1]} : vector<3x32xf32> to vector<3x28xf32>
      %c0_42 = arith.constant 0 : index
      %c12 = arith.constant 12 : index
      %c0_43 = arith.constant 0 : index
      %64 = vector.load %arg5[%c0_42, %c12, %c0_43] : memref<2x75x28xf32, #tpu.memory_space<vmem>>, vector<1x3x28xf32>
      %65 = vector.shape_cast %64 : vector<1x3x28xf32> to vector<3x28xf32>
      %66 = vector.shape_cast %63 : vector<3x28xf32> to vector<1x3x28xf32>
      tpu.vector_store %arg5[%c0_42, %c12, %c0_43], %66 {strides = array<i32>} : memref<2x75x28xf32, #tpu.memory_space<vmem>>, vector<1x3x28xf32>,
      %67 = vector.extract_strided_slice %26 {offsets = [0, 0], sizes = [3, 28], strides = [1, 1]} : vector<3x32xf32> to vector<3x28xf32>
      %c0_44 = arith.constant 0 : index
      %c15 = arith.constant 15 : index
      %c0_45 = arith.constant 0 : index
      %68 = vector.load %arg5[%c0_44, %c15, %c0_45] : memref<2x75x28xf32, #tpu.memory_space<vmem>>, vector<1x3x28xf32>
      %69 = vector.shape_cast %68 : vector<1x3x28xf32> to vector<3x28xf32>
      %70 = vector.shape_cast %67 : vector<3x28xf32> to vector<1x3x28xf32>
      tpu.vector_store %arg5[%c0_44, %c15, %c0_45], %70 {strides = array<i32>} : memref<2x75x28xf32, #tpu.memory_space<vmem>>, vector<1x3x28xf32>,
      %71 = vector.extract_strided_slice %26 {offsets = [0, 1], sizes = [3, 28], strides = [1, 1]} : vector<3x32xf32> to vector<3x28xf32>
      %c0_46 = arith.constant 0 : index
      %c18 = arith.constant 18 : index
      %c0_47 = arith.constant 0 : index
      %72 = vector.load %arg5[%c0_46, %c18, %c0_47] : memref<2x75x28xf32, #tpu.memory_space<vmem>>, vector<1x3x28xf32>
      %73 = vector.shape_cast %72 : vector<1x3x28xf32> to vector<3x28xf32>
      %74 = vector.shape_cast %71 : vector<3x28xf32> to vector<1x3x28xf32>
      tpu.vector_store %arg5[%c0_46, %c18, %c0_47], %74 {strides = array<i32>} : memref<2x75x28xf32, #tpu.memory_space<vmem>>, vector<1x3x28xf32>,
      %75 = vector.extract_strided_slice %26 {offsets = [0, 2], sizes = [3, 28], strides = [1, 1]} : vector<3x32xf32> to vector<3x28xf32>
      %c0_48 = arith.constant 0 : index
      %c21 = arith.constant 21 : index
      %c0_49 = arith.constant 0 : index
      %76 = vector.load %arg5[%c0_48, %c21, %c0_49] : memref<2x75x28xf32, #tpu.memory_space<vmem>>, vector<1x3x28xf32>
      %77 = vector.shape_cast %76 : vector<1x3x28xf32> to vector<3x28xf32>
      %78 = vector.shape_cast %75 : vector<3x28xf32> to vector<1x3x28xf32>
      tpu.vector_store %arg5[%c0_48, %c21, %c0_49], %78 {strides = array<i32>} : memref<2x75x28xf32, #tpu.memory_space<vmem>>, vector<1x3x28xf32>,
      %79 = vector.extract_strided_slice %26 {offsets = [0, 3], sizes = [3, 28], strides = [1, 1]} : vector<3x32xf32> to vector<3x28xf32>
      %c0_50 = arith.constant 0 : index
      %c24 = arith.constant 24 : index
      %c0_51 = arith.constant 0 : index
      %80 = vector.load %arg5[%c0_50, %c24, %c0_51] : memref<2x75x28xf32, #tpu.memory_space<vmem>>, vector<1x3x28xf32>
      %81 = vector.shape_cast %80 : vector<1x3x28xf32> to vector<3x28xf32>
      %82 = vector.shape_cast %79 : vector<3x28xf32> to vector<1x3x28xf32>
      tpu.vector_store %arg5[%c0_50, %c24, %c0_51], %82 {strides = array<i32>} : memref<2x75x28xf32, #tpu.memory_space<vmem>>, vector<1x3x28xf32>,
      %83 = vector.extract_strided_slice %26 {offsets = [0, 4], sizes = [3, 28], strides = [1, 1]} : vector<3x32xf32> to vector<3x28xf32>
      %c0_52 = arith.constant 0 : index
      %c27 = arith.constant 27 : index
      %c0_53 = arith.constant 0 : index
      %84 = vector.load %arg5[%c0_52, %c27, %c0_53] : memref<2x75x28xf32, #tpu.memory_space<vmem>>, vector<1x3x28xf32>
      %85 = vector.shape_cast %84 : vector<1x3x28xf32> to vector<3x28xf32>
      %86 = vector.shape_cast %83 : vector<3x28xf32> to vector<1x3x28xf32>
      tpu.vector_store %arg5[%c0_52, %c27, %c0_53], %86 {strides = array<i32>} : memref<2x75x28xf32, #tpu.memory_space<vmem>>, vector<1x3x28xf32>,
      %87 = vector.extract_strided_slice %31 {offsets = [0, 0], sizes = [3, 28], strides = [1, 1]} : vector<3x32xf32> to vector<3x28xf32>
      %c0_54 = arith.constant 0 : index
      %c30 = arith.constant 30 : index
      %c0_55 = arith.constant 0 : index
      %88 = vector.load %arg5[%c0_54, %c30, %c0_55] : memref<2x75x28xf32, #tpu.memory_space<vmem>>, vector<1x3x28xf32>
      %89 = vector.shape_cast %88 : vector<1x3x28xf32> to vector<3x28xf32>
      %90 = vector.shape_cast %87 : vector<3x28xf32> to vector<1x3x28xf32>
      tpu.vector_store %arg5[%c0_54, %c30, %c0_55], %90 {strides = array<i32>} : memref<2x75x28xf32, #tpu.memory_space<vmem>>, vector<1x3x28xf32>,
      %91 = vector.extract_strided_slice %31 {offsets = [0, 1], sizes = [3, 28], strides = [1, 1]} : vector<3x32xf32> to vector<3x28xf32>
      %c0_56 = arith.constant 0 : index
      %c33 = arith.constant 33 : index
      %c0_57 = arith.constant 0 : index
      %92 = vector.load %arg5[%c0_56, %c33, %c0_57] : memref<2x75x28xf32, #tpu.memory_space<vmem>>, vector<1x3x28xf32>
      %93 = vector.shape_cast %92 : vector<1x3x28xf32> to vector<3x28xf32>
      %94 = vector.shape_cast %91 : vector<3x28xf32> to vector<1x3x28xf32>
      tpu.vector_store %arg5[%c0_56, %c33, %c0_57], %94 {strides = array<i32>} : memref<2x75x28xf32, #tpu.memory_space<vmem>>, vector<1x3x28xf32>,
      %95 = vector.extract_strided_slice %31 {offsets = [0, 2], sizes = [3, 28], strides = [1, 1]} : vector<3x32xf32> to vector<3x28xf32>
      %c0_58 = arith.constant 0 : index
      %c36 = arith.constant 36 : index
      %c0_59 = arith.constant 0 : index
      %96 = vector.load %arg5[%c0_58, %c36, %c0_59] : memref<2x75x28xf32, #tpu.memory_space<vmem>>, vector<1x3x28xf32>
      %97 = vector.shape_cast %96 : vector<1x3x28xf32> to vector<3x28xf32>
      %98 = vector.shape_cast %95 : vector<3x28xf32> to vector<1x3x28xf32>
      tpu.vector_store %arg5[%c0_58, %c36, %c0_59], %98 {strides = array<i32>} : memref<2x75x28xf32, #tpu.memory_space<vmem>>, vector<1x3x28xf32>,
      %99 = vector.extract_strided_slice %31 {offsets = [0, 3], sizes = [3, 28], strides = [1, 1]} : vector<3x32xf32> to vector<3x28xf32>
      %c0_60 = arith.constant 0 : index
      %c39 = arith.constant 39 : index
      %c0_61 = arith.constant 0 : index
      %100 = vector.load %arg5[%c0_60, %c39, %c0_61] : memref<2x75x28xf32, #tpu.memory_space<vmem>>, vector<1x3x28xf32>
      %101 = vector.shape_cast %100 : vector<1x3x28xf32> to vector<3x28xf32>
      %102 = vector.shape_cast %99 : vector<3x28xf32> to vector<1x3x28xf32>
      tpu.vector_store %arg5[%c0_60, %c39, %c0_61], %102 {strides = array<i32>} : memref<2x75x28xf32, #tpu.memory_space<vmem>>, vector<1x3x28xf32>,
      %103 = vector.extract_strided_slice %31 {offsets = [0, 4], sizes = [3, 28], strides = [1, 1]} : vector<3x32xf32> to vector<3x28xf32>
      %c0_62 = arith.constant 0 : index
      %c42 = arith.constant 42 : index
      %c0_63 = arith.constant 0 : index
      %104 = vector.load %arg5[%c0_62, %c42, %c0_63] : memref<2x75x28xf32, #tpu.memory_space<vmem>>, vector<1x3x28xf32>
      %105 = vector.shape_cast %104 : vector<1x3x28xf32> to vector<3x28xf32>
      %106 = vector.shape_cast %103 : vector<3x28xf32> to vector<1x3x28xf32>
      tpu.vector_store %arg5[%c0_62, %c42, %c0_63], %106 {strides = array<i32>} : memref<2x75x28xf32, #tpu.memory_space<vmem>>, vector<1x3x28xf32>,
      %107 = vector.extract_strided_slice %36 {offsets = [0, 0], sizes = [3, 28], strides = [1, 1]} : vector<3x32xf32> to vector<3x28xf32>
      %c0_64 = arith.constant 0 : index
      %c45 = arith.constant 45 : index
      %c0_65 = arith.constant 0 : index
      %108 = vector.load %arg5[%c0_64, %c45, %c0_65] : memref<2x75x28xf32, #tpu.memory_space<vmem>>, vector<1x3x28xf32>
      %109 = vector.shape_cast %108 : vector<1x3x28xf32> to vector<3x28xf32>
      %110 = vector.shape_cast %107 : vector<3x28xf32> to vector<1x3x28xf32>
      tpu.vector_store %arg5[%c0_64, %c45, %c0_65], %110 {strides = array<i32>} : memref<2x75x28xf32, #tpu.memory_space<vmem>>, vector<1x3x28xf32>,
      %111 = vector.extract_strided_slice %36 {offsets = [0, 1], sizes = [3, 28], strides = [1, 1]} : vector<3x32xf32> to vector<3x28xf32>
      %c0_66 = arith.constant 0 : index
      %c48 = arith.constant 48 : index
      %c0_67 = arith.constant 0 : index
      %112 = vector.load %arg5[%c0_66, %c48, %c0_67] : memref<2x75x28xf32, #tpu.memory_space<vmem>>, vector<1x3x28xf32>
      %113 = vector.shape_cast %112 : vector<1x3x28xf32> to vector<3x28xf32>
      %114 = vector.shape_cast %111 : vector<3x28xf32> to vector<1x3x28xf32>
      tpu.vector_store %arg5[%c0_66, %c48, %c0_67], %114 {strides = array<i32>} : memref<2x75x28xf32, #tpu.memory_space<vmem>>, vector<1x3x28xf32>,
      %115 = vector.extract_strided_slice %36 {offsets = [0, 2], sizes = [3, 28], strides = [1, 1]} : vector<3x32xf32> to vector<3x28xf32>
      %c0_68 = arith.constant 0 : index
      %c51 = arith.constant 51 : index
      %c0_69 = arith.constant 0 : index
      %116 = vector.load %arg5[%c0_68, %c51, %c0_69] : memref<2x75x28xf32, #tpu.memory_space<vmem>>, vector<1x3x28xf32>
      %117 = vector.shape_cast %116 : vector<1x3x28xf32> to vector<3x28xf32>
      %118 = vector.shape_cast %115 : vector<3x28xf32> to vector<1x3x28xf32>
      tpu.vector_store %arg5[%c0_68, %c51, %c0_69], %118 {strides = array<i32>} : memref<2x75x28xf32, #tpu.memory_space<vmem>>, vector<1x3x28xf32>,
      %119 = vector.extract_strided_slice %36 {offsets = [0, 3], sizes = [3, 28], strides = [1, 1]} : vector<3x32xf32> to vector<3x28xf32>
      %c0_70 = arith.constant 0 : index
      %c54 = arith.constant 54 : index
      %c0_71 = arith.constant 0 : index
      %120 = vector.load %arg5[%c0_70, %c54, %c0_71] : memref<2x75x28xf32, #tpu.memory_space<vmem>>, vector<1x3x28xf32>
      %121 = vector.shape_cast %120 : vector<1x3x28xf32> to vector<3x28xf32>
      %122 = vector.shape_cast %119 : vector<3x28xf32> to vector<1x3x28xf32>
      tpu.vector_store %arg5[%c0_70, %c54, %c0_71], %122 {strides = array<i32>} : memref<2x75x28xf32, #tpu.memory_space<vmem>>, vector<1x3x28xf32>,
      %123 = vector.extract_strided_slice %36 {offsets = [0, 4], sizes = [3, 28], strides = [1, 1]} : vector<3x32xf32> to vector<3x28xf32>
      %c0_72 = arith.constant 0 : index
      %c57 = arith.constant 57 : index
      %c0_73 = arith.constant 0 : index
      %124 = vector.load %arg5[%c0_72, %c57, %c0_73] : memref<2x75x28xf32, #tpu.memory_space<vmem>>, vector<1x3x28xf32>
      %125 = vector.shape_cast %124 : vector<1x3x28xf32> to vector<3x28xf32>
      %126 = vector.shape_cast %123 : vector<3x28xf32> to vector<1x3x28xf32>
      tpu.vector_store %arg5[%c0_72, %c57, %c0_73], %126 {strides = array<i32>} : memref<2x75x28xf32, #tpu.memory_space<vmem>>, vector<1x3x28xf32>,
      %127 = vector.extract_strided_slice %41 {offsets = [0, 0], sizes = [3, 28], strides = [1, 1]} : vector<3x32xf32> to vector<3x28xf32>
      %c0_74 = arith.constant 0 : index
      %c60 = arith.constant 60 : index
      %c0_75 = arith.constant 0 : index
      %128 = vector.load %arg5[%c0_74, %c60, %c0_75] : memref<2x75x28xf32, #tpu.memory_space<vmem>>, vector<1x3x28xf32>
      %129 = vector.shape_cast %128 : vector<1x3x28xf32> to vector<3x28xf32>
      %130 = vector.shape_cast %127 : vector<3x28xf32> to vector<1x3x28xf32>
      tpu.vector_store %arg5[%c0_74, %c60, %c0_75], %130 {strides = array<i32>} : memref<2x75x28xf32, #tpu.memory_space<vmem>>, vector<1x3x28xf32>,
      %131 = vector.extract_strided_slice %41 {offsets = [0, 1], sizes = [3, 28], strides = [1, 1]} : vector<3x32xf32> to vector<3x28xf32>
      %c0_76 = arith.constant 0 : index
      %c63 = arith.constant 63 : index
      %c0_77 = arith.constant 0 : index
      %132 = vector.load %arg5[%c0_76, %c63, %c0_77] : memref<2x75x28xf32, #tpu.memory_space<vmem>>, vector<1x3x28xf32>
      %133 = vector.shape_cast %132 : vector<1x3x28xf32> to vector<3x28xf32>
      %134 = vector.shape_cast %131 : vector<3x28xf32> to vector<1x3x28xf32>
      tpu.vector_store %arg5[%c0_76, %c63, %c0_77], %134 {strides = array<i32>} : memref<2x75x28xf32, #tpu.memory_space<vmem>>, vector<1x3x28xf32>,
      %135 = vector.extract_strided_slice %41 {offsets = [0, 2], sizes = [3, 28], strides = [1, 1]} : vector<3x32xf32> to vector<3x28xf32>
      %c0_78 = arith.constant 0 : index
      %c66 = arith.constant 66 : index
      %c0_79 = arith.constant 0 : index
      %136 = vector.load %arg5[%c0_78, %c66, %c0_79] : memref<2x75x28xf32, #tpu.memory_space<vmem>>, vector<1x3x28xf32>
      %137 = vector.shape_cast %136 : vector<1x3x28xf32> to vector<3x28xf32>
      %138 = vector.shape_cast %135 : vector<3x28xf32> to vector<1x3x28xf32>
      tpu.vector_store %arg5[%c0_78, %c66, %c0_79], %138 {strides = array<i32>} : memref<2x75x28xf32, #tpu.memory_space<vmem>>, vector<1x3x28xf32>,
      %139 = vector.extract_strided_slice %41 {offsets = [0, 3], sizes = [3, 28], strides = [1, 1]} : vector<3x32xf32> to vector<3x28xf32>
      %c0_80 = arith.constant 0 : index
      %c69 = arith.constant 69 : index
      %c0_81 = arith.constant 0 : index
      %140 = vector.load %arg5[%c0_80, %c69, %c0_81] : memref<2x75x28xf32, #tpu.memory_space<vmem>>, vector<1x3x28xf32>
      %141 = vector.shape_cast %140 : vector<1x3x28xf32> to vector<3x28xf32>
      %142 = vector.shape_cast %139 : vector<3x28xf32> to vector<1x3x28xf32>
      tpu.vector_store %arg5[%c0_80, %c69, %c0_81], %142 {strides = array<i32>} : memref<2x75x28xf32, #tpu.memory_space<vmem>>, vector<1x3x28xf32>,
      %143 = vector.extract_strided_slice %41 {offsets = [0, 4], sizes = [3, 28], strides = [1, 1]} : vector<3x32xf32> to vector<3x28xf32>
      %c0_82 = arith.constant 0 : index
      %c72 = arith.constant 72 : index
      %c0_83 = arith.constant 0 : index
      %144 = vector.load %arg5[%c0_82, %c72, %c0_83] : memref<2x75x28xf32, #tpu.memory_space<vmem>>, vector<1x3x28xf32>
      %145 = vector.shape_cast %144 : vector<1x3x28xf32> to vector<3x28xf32>
      %146 = vector.shape_cast %143 : vector<3x28xf32> to vector<1x3x28xf32>
      tpu.vector_store %arg5[%c0_82, %c72, %c0_83], %146 {strides = array<i32>} : memref<2x75x28xf32, #tpu.memory_space<vmem>>, vector<1x3x28xf32>,
      %147 = vector.extract_strided_slice %26 {offsets = [0, 0], sizes = [3, 28], strides = [1, 1]} : vector<3x32xf32> to vector<3x28xf32>
      %c1 = arith.constant 1 : index
      %c0_84 = arith.constant 0 : index
      %c0_85 = arith.constant 0 : index
      %148 = vector.load %arg5[%c1, %c0_84, %c0_85] : memref<2x75x28xf32, #tpu.memory_space<vmem>>, vector<1x3x28xf32>
      %149 = vector.shape_cast %148 : vector<1x3x28xf32> to vector<3x28xf32>
      %150 = vector.shape_cast %147 : vector<3x28xf32> to vector<1x3x28xf32>
      tpu.vector_store %arg5[%c1, %c0_84, %c0_85], %150 {strides = array<i32>} : memref<2x75x28xf32, #tpu.memory_space<vmem>>, vector<1x3x28xf32>,
      %151 = vector.extract_strided_slice %26 {offsets = [0, 1], sizes = [3, 28], strides = [1, 1]} : vector<3x32xf32> to vector<3x28xf32>
      %c1_86 = arith.constant 1 : index
      %c3_87 = arith.constant 3 : index
      %c0_88 = arith.constant 0 : index
      %152 = vector.load %arg5[%c1_86, %c3_87, %c0_88] : memref<2x75x28xf32, #tpu.memory_space<vmem>>, vector<1x3x28xf32>
      %153 = vector.shape_cast %152 : vector<1x3x28xf32> to vector<3x28xf32>
      %154 = vector.shape_cast %151 : vector<3x28xf32> to vector<1x3x28xf32>
      tpu.vector_store %arg5[%c1_86, %c3_87, %c0_88], %154 {strides = array<i32>} : memref<2x75x28xf32, #tpu.memory_space<vmem>>, vector<1x3x28xf32>,
      %155 = vector.extract_strided_slice %26 {offsets = [0, 2], sizes = [3, 28], strides = [1, 1]} : vector<3x32xf32> to vector<3x28xf32>
      %c1_89 = arith.constant 1 : index
      %c6_90 = arith.constant 6 : index
      %c0_91 = arith.constant 0 : index
      %156 = vector.load %arg5[%c1_89, %c6_90, %c0_91] : memref<2x75x28xf32, #tpu.memory_space<vmem>>, vector<1x3x28xf32>
      %157 = vector.shape_cast %156 : vector<1x3x28xf32> to vector<3x28xf32>
      %158 = vector.shape_cast %155 : vector<3x28xf32> to vector<1x3x28xf32>
      tpu.vector_store %arg5[%c1_89, %c6_90, %c0_91], %158 {strides = array<i32>} : memref<2x75x28xf32, #tpu.memory_space<vmem>>, vector<1x3x28xf32>,
      %159 = vector.extract_strided_slice %26 {offsets = [0, 3], sizes = [3, 28], strides = [1, 1]} : vector<3x32xf32> to vector<3x28xf32>
      %c1_92 = arith.constant 1 : index
      %c9_93 = arith.constant 9 : index
      %c0_94 = arith.constant 0 : index
      %160 = vector.load %arg5[%c1_92, %c9_93, %c0_94] : memref<2x75x28xf32, #tpu.memory_space<vmem>>, vector<1x3x28xf32>
      %161 = vector.shape_cast %160 : vector<1x3x28xf32> to vector<3x28xf32>
      %162 = vector.shape_cast %159 : vector<3x28xf32> to vector<1x3x28xf32>
      tpu.vector_store %arg5[%c1_92, %c9_93, %c0_94], %162 {strides = array<i32>} : memref<2x75x28xf32, #tpu.memory_space<vmem>>, vector<1x3x28xf32>,
      %163 = vector.extract_strided_slice %26 {offsets = [0, 4], sizes = [3, 28], strides = [1, 1]} : vector<3x32xf32> to vector<3x28xf32>
      %c1_95 = arith.constant 1 : index
      %c12_96 = arith.constant 12 : index
      %c0_97 = arith.constant 0 : index
      %164 = vector.load %arg5[%c1_95, %c12_96, %c0_97] : memref<2x75x28xf32, #tpu.memory_space<vmem>>, vector<1x3x28xf32>
      %165 = vector.shape_cast %164 : vector<1x3x28xf32> to vector<3x28xf32>
      %166 = vector.shape_cast %163 : vector<3x28xf32> to vector<1x3x28xf32>
      tpu.vector_store %arg5[%c1_95, %c12_96, %c0_97], %166 {strides = array<i32>} : memref<2x75x28xf32, #tpu.memory_space<vmem>>, vector<1x3x28xf32>,
      %167 = vector.extract_strided_slice %31 {offsets = [0, 0], sizes = [3, 28], strides = [1, 1]} : vector<3x32xf32> to vector<3x28xf32>
      %c1_98 = arith.constant 1 : index
      %c15_99 = arith.constant 15 : index
      %c0_100 = arith.constant 0 : index
      %168 = vector.load %arg5[%c1_98, %c15_99, %c0_100] : memref<2x75x28xf32, #tpu.memory_space<vmem>>, vector<1x3x28xf32>
      %169 = vector.shape_cast %168 : vector<1x3x28xf32> to vector<3x28xf32>
      %170 = vector.shape_cast %167 : vector<3x28xf32> to vector<1x3x28xf32>
      tpu.vector_store %arg5[%c1_98, %c15_99, %c0_100], %170 {strides = array<i32>} : memref<2x75x28xf32, #tpu.memory_space<vmem>>, vector<1x3x28xf32>,
      %171 = vector.extract_strided_slice %31 {offsets = [0, 1], sizes = [3, 28], strides = [1, 1]} : vector<3x32xf32> to vector<3x28xf32>
      %c1_101 = arith.constant 1 : index
      %c18_102 = arith.constant 18 : index
      %c0_103 = arith.constant 0 : index
      %172 = vector.load %arg5[%c1_101, %c18_102, %c0_103] : memref<2x75x28xf32, #tpu.memory_space<vmem>>, vector<1x3x28xf32>
      %173 = vector.shape_cast %172 : vector<1x3x28xf32> to vector<3x28xf32>
      %174 = vector.shape_cast %171 : vector<3x28xf32> to vector<1x3x28xf32>
      tpu.vector_store %arg5[%c1_101, %c18_102, %c0_103], %174 {strides = array<i32>} : memref<2x75x28xf32, #tpu.memory_space<vmem>>, vector<1x3x28xf32>,
      %175 = vector.extract_strided_slice %31 {offsets = [0, 2], sizes = [3, 28], strides = [1, 1]} : vector<3x32xf32> to vector<3x28xf32>
      %c1_104 = arith.constant 1 : index
      %c21_105 = arith.constant 21 : index
      %c0_106 = arith.constant 0 : index
      %176 = vector.load %arg5[%c1_104, %c21_105, %c0_106] : memref<2x75x28xf32, #tpu.memory_space<vmem>>, vector<1x3x28xf32>
      %177 = vector.shape_cast %176 : vector<1x3x28xf32> to vector<3x28xf32>
      %178 = vector.shape_cast %175 : vector<3x28xf32> to vector<1x3x28xf32>
      tpu.vector_store %arg5[%c1_104, %c21_105, %c0_106], %178 {strides = array<i32>} : memref<2x75x28xf32, #tpu.memory_space<vmem>>, vector<1x3x28xf32>,
      %179 = vector.extract_strided_slice %31 {offsets = [0, 3], sizes = [3, 28], strides = [1, 1]} : vector<3x32xf32> to vector<3x28xf32>
      %c1_107 = arith.constant 1 : index
      %c24_108 = arith.constant 24 : index
      %c0_109 = arith.constant 0 : index
      %180 = vector.load %arg5[%c1_107, %c24_108, %c0_109] : memref<2x75x28xf32, #tpu.memory_space<vmem>>, vector<1x3x28xf32>
      %181 = vector.shape_cast %180 : vector<1x3x28xf32> to vector<3x28xf32>
      %182 = vector.shape_cast %179 : vector<3x28xf32> to vector<1x3x28xf32>
      tpu.vector_store %arg5[%c1_107, %c24_108, %c0_109], %182 {strides = array<i32>} : memref<2x75x28xf32, #tpu.memory_space<vmem>>, vector<1x3x28xf32>,
      %183 = vector.extract_strided_slice %31 {offsets = [0, 4], sizes = [3, 28], strides = [1, 1]} : vector<3x32xf32> to vector<3x28xf32>
      %c1_110 = arith.constant 1 : index
      %c27_111 = arith.constant 27 : index
      %c0_112 = arith.constant 0 : index
      %184 = vector.load %arg5[%c1_110, %c27_111, %c0_112] : memref<2x75x28xf32, #tpu.memory_space<vmem>>, vector<1x3x28xf32>
      %185 = vector.shape_cast %184 : vector<1x3x28xf32> to vector<3x28xf32>
      %186 = vector.shape_cast %183 : vector<3x28xf32> to vector<1x3x28xf32>
      tpu.vector_store %arg5[%c1_110, %c27_111, %c0_112], %186 {strides = array<i32>} : memref<2x75x28xf32, #tpu.memory_space<vmem>>, vector<1x3x28xf32>,
      %187 = vector.extract_strided_slice %36 {offsets = [0, 0], sizes = [3, 28], strides = [1, 1]} : vector<3x32xf32> to vector<3x28xf32>
      %c1_113 = arith.constant 1 : index
      %c30_114 = arith.constant 30 : index
      %c0_115 = arith.constant 0 : index
      %188 = vector.load %arg5[%c1_113, %c30_114, %c0_115] : memref<2x75x28xf32, #tpu.memory_space<vmem>>, vector<1x3x28xf32>
      %189 = vector.shape_cast %188 : vector<1x3x28xf32> to vector<3x28xf32>
      %190 = vector.shape_cast %187 : vector<3x28xf32> to vector<1x3x28xf32>
      tpu.vector_store %arg5[%c1_113, %c30_114, %c0_115], %190 {strides = array<i32>} : memref<2x75x28xf32, #tpu.memory_space<vmem>>, vector<1x3x28xf32>,
      %191 = vector.extract_strided_slice %36 {offsets = [0, 1], sizes = [3, 28], strides = [1, 1]} : vector<3x32xf32> to vector<3x28xf32>
      %c1_116 = arith.constant 1 : index
      %c33_117 = arith.constant 33 : index
      %c0_118 = arith.constant 0 : index
      %192 = vector.load %arg5[%c1_116, %c33_117, %c0_118] : memref<2x75x28xf32, #tpu.memory_space<vmem>>, vector<1x3x28xf32>
      %193 = vector.shape_cast %192 : vector<1x3x28xf32> to vector<3x28xf32>
      %194 = vector.shape_cast %191 : vector<3x28xf32> to vector<1x3x28xf32>
      tpu.vector_store %arg5[%c1_116, %c33_117, %c0_118], %194 {strides = array<i32>} : memref<2x75x28xf32, #tpu.memory_space<vmem>>, vector<1x3x28xf32>,
      %195 = vector.extract_strided_slice %36 {offsets = [0, 2], sizes = [3, 28], strides = [1, 1]} : vector<3x32xf32> to vector<3x28xf32>
      %c1_119 = arith.constant 1 : index
      %c36_120 = arith.constant 36 : index
      %c0_121 = arith.constant 0 : index
      %196 = vector.load %arg5[%c1_119, %c36_120, %c0_121] : memref<2x75x28xf32, #tpu.memory_space<vmem>>, vector<1x3x28xf32>
      %197 = vector.shape_cast %196 : vector<1x3x28xf32> to vector<3x28xf32>
      %198 = vector.shape_cast %195 : vector<3x28xf32> to vector<1x3x28xf32>
      tpu.vector_store %arg5[%c1_119, %c36_120, %c0_121], %198 {strides = array<i32>} : memref<2x75x28xf32, #tpu.memory_space<vmem>>, vector<1x3x28xf32>,
      %199 = vector.extract_strided_slice %36 {offsets = [0, 3], sizes = [3, 28], strides = [1, 1]} : vector<3x32xf32> to vector<3x28xf32>
      %c1_122 = arith.constant 1 : index
      %c39_123 = arith.constant 39 : index
      %c0_124 = arith.constant 0 : index
      %200 = vector.load %arg5[%c1_122, %c39_123, %c0_124] : memref<2x75x28xf32, #tpu.memory_space<vmem>>, vector<1x3x28xf32>
      %201 = vector.shape_cast %200 : vector<1x3x28xf32> to vector<3x28xf32>
      %202 = vector.shape_cast %199 : vector<3x28xf32> to vector<1x3x28xf32>
      tpu.vector_store %arg5[%c1_122, %c39_123, %c0_124], %202 {strides = array<i32>} : memref<2x75x28xf32, #tpu.memory_space<vmem>>, vector<1x3x28xf32>,
      %203 = vector.extract_strided_slice %36 {offsets = [0, 4], sizes = [3, 28], strides = [1, 1]} : vector<3x32xf32> to vector<3x28xf32>
      %c1_125 = arith.constant 1 : index
      %c42_126 = arith.constant 42 : index
      %c0_127 = arith.constant 0 : index
      %204 = vector.load %arg5[%c1_125, %c42_126, %c0_127] : memref<2x75x28xf32, #tpu.memory_space<vmem>>, vector<1x3x28xf32>
      %205 = vector.shape_cast %204 : vector<1x3x28xf32> to vector<3x28xf32>
      %206 = vector.shape_cast %203 : vector<3x28xf32> to vector<1x3x28xf32>
      tpu.vector_store %arg5[%c1_125, %c42_126, %c0_127], %206 {strides = array<i32>} : memref<2x75x28xf32, #tpu.memory_space<vmem>>, vector<1x3x28xf32>,
      %207 = vector.extract_strided_slice %41 {offsets = [0, 0], sizes = [3, 28], strides = [1, 1]} : vector<3x32xf32> to vector<3x28xf32>
      %c1_128 = arith.constant 1 : index
      %c45_129 = arith.constant 45 : index
      %c0_130 = arith.constant 0 : index
      %208 = vector.load %arg5[%c1_128, %c45_129, %c0_130] : memref<2x75x28xf32, #tpu.memory_space<vmem>>, vector<1x3x28xf32>
      %209 = vector.shape_cast %208 : vector<1x3x28xf32> to vector<3x28xf32>
      %210 = vector.shape_cast %207 : vector<3x28xf32> to vector<1x3x28xf32>
      tpu.vector_store %arg5[%c1_128, %c45_129, %c0_130], %210 {strides = array<i32>} : memref<2x75x28xf32, #tpu.memory_space<vmem>>, vector<1x3x28xf32>,
      %211 = vector.extract_strided_slice %41 {offsets = [0, 1], sizes = [3, 28], strides = [1, 1]} : vector<3x32xf32> to vector<3x28xf32>
      %c1_131 = arith.constant 1 : index
      %c48_132 = arith.constant 48 : index
      %c0_133 = arith.constant 0 : index
      %212 = vector.load %arg5[%c1_131, %c48_132, %c0_133] : memref<2x75x28xf32, #tpu.memory_space<vmem>>, vector<1x3x28xf32>
      %213 = vector.shape_cast %212 : vector<1x3x28xf32> to vector<3x28xf32>
      %214 = vector.shape_cast %211 : vector<3x28xf32> to vector<1x3x28xf32>
      tpu.vector_store %arg5[%c1_131, %c48_132, %c0_133], %214 {strides = array<i32>} : memref<2x75x28xf32, #tpu.memory_space<vmem>>, vector<1x3x28xf32>,
      %215 = vector.extract_strided_slice %41 {offsets = [0, 2], sizes = [3, 28], strides = [1, 1]} : vector<3x32xf32> to vector<3x28xf32>
      %c1_134 = arith.constant 1 : index
      %c51_135 = arith.constant 51 : index
      %c0_136 = arith.constant 0 : index
      %216 = vector.load %arg5[%c1_134, %c51_135, %c0_136] : memref<2x75x28xf32, #tpu.memory_space<vmem>>, vector<1x3x28xf32>
      %217 = vector.shape_cast %216 : vector<1x3x28xf32> to vector<3x28xf32>
      %218 = vector.shape_cast %215 : vector<3x28xf32> to vector<1x3x28xf32>
      tpu.vector_store %arg5[%c1_134, %c51_135, %c0_136], %218 {strides = array<i32>} : memref<2x75x28xf32, #tpu.memory_space<vmem>>, vector<1x3x28xf32>,
      %219 = vector.extract_strided_slice %41 {offsets = [0, 3], sizes = [3, 28], strides = [1, 1]} : vector<3x32xf32> to vector<3x28xf32>
      %c1_137 = arith.constant 1 : index
      %c54_138 = arith.constant 54 : index
      %c0_139 = arith.constant 0 : index
      %220 = vector.load %arg5[%c1_137, %c54_138, %c0_139] : memref<2x75x28xf32, #tpu.memory_space<vmem>>, vector<1x3x28xf32>
      %221 = vector.shape_cast %220 : vector<1x3x28xf32> to vector<3x28xf32>
      %222 = vector.shape_cast %219 : vector<3x28xf32> to vector<1x3x28xf32>
      tpu.vector_store %arg5[%c1_137, %c54_138, %c0_139], %222 {strides = array<i32>} : memref<2x75x28xf32, #tpu.memory_space<vmem>>, vector<1x3x28xf32>,
      %223 = vector.extract_strided_slice %41 {offsets = [0, 4], sizes = [3, 28], strides = [1, 1]} : vector<3x32xf32> to vector<3x28xf32>
      %c1_140 = arith.constant 1 : index
      %c57_141 = arith.constant 57 : index
      %c0_142 = arith.constant 0 : index
      %224 = vector.load %arg5[%c1_140, %c57_141, %c0_142] : memref<2x75x28xf32, #tpu.memory_space<vmem>>, vector<1x3x28xf32>
      %225 = vector.shape_cast %224 : vector<1x3x28xf32> to vector<3x28xf32>
      %226 = vector.shape_cast %223 : vector<3x28xf32> to vector<1x3x28xf32>
      tpu.vector_store %arg5[%c1_140, %c57_141, %c0_142], %226 {strides = array<i32>} : memref<2x75x28xf32, #tpu.memory_space<vmem>>, vector<1x3x28xf32>,
      %227 = vector.extract_strided_slice %46 {offsets = [0, 0], sizes = [3, 28], strides = [1, 1]} : vector<3x32xf32> to vector<3x28xf32>
      %c1_143 = arith.constant 1 : index
      %c60_144 = arith.constant 60 : index
      %c0_145 = arith.constant 0 : index
      %228 = vector.load %arg5[%c1_143, %c60_144, %c0_145] : memref<2x75x28xf32, #tpu.memory_space<vmem>>, vector<1x3x28xf32>
      %229 = vector.shape_cast %228 : vector<1x3x28xf32> to vector<3x28xf32>
      %230 = vector.shape_cast %227 : vector<3x28xf32> to vector<1x3x28xf32>
      tpu.vector_store %arg5[%c1_143, %c60_144, %c0_145], %230 {strides = array<i32>} : memref<2x75x28xf32, #tpu.memory_space<vmem>>, vector<1x3x28xf32>,
      %231 = vector.extract_strided_slice %46 {offsets = [0, 1], sizes = [3, 28], strides = [1, 1]} : vector<3x32xf32> to vector<3x28xf32>
      %c1_146 = arith.constant 1 : index
      %c63_147 = arith.constant 63 : index
      %c0_148 = arith.constant 0 : index
      %232 = vector.load %arg5[%c1_146, %c63_147, %c0_148] : memref<2x75x28xf32, #tpu.memory_space<vmem>>, vector<1x3x28xf32>
      %233 = vector.shape_cast %232 : vector<1x3x28xf32> to vector<3x28xf32>
      %234 = vector.shape_cast %231 : vector<3x28xf32> to vector<1x3x28xf32>
      tpu.vector_store %arg5[%c1_146, %c63_147, %c0_148], %234 {strides = array<i32>} : memref<2x75x28xf32, #tpu.memory_space<vmem>>, vector<1x3x28xf32>,
      %235 = vector.extract_strided_slice %46 {offsets = [0, 2], sizes = [3, 28], strides = [1, 1]} : vector<3x32xf32> to vector<3x28xf32>
      %c1_149 = arith.constant 1 : index
      %c66_150 = arith.constant 66 : index
      %c0_151 = arith.constant 0 : index
      %236 = vector.load %arg5[%c1_149, %c66_150, %c0_151] : memref<2x75x28xf32, #tpu.memory_space<vmem>>, vector<1x3x28xf32>
      %237 = vector.shape_cast %236 : vector<1x3x28xf32> to vector<3x28xf32>
      %238 = vector.shape_cast %235 : vector<3x28xf32> to vector<1x3x28xf32>
      tpu.vector_store %arg5[%c1_149, %c66_150, %c0_151], %238 {strides = array<i32>} : memref<2x75x28xf32, #tpu.memory_space<vmem>>, vector<1x3x28xf32>,
      %239 = vector.extract_strided_slice %46 {offsets = [0, 3], sizes = [3, 28], strides = [1, 1]} : vector<3x32xf32> to vector<3x28xf32>
      %c1_152 = arith.constant 1 : index
      %c69_153 = arith.constant 69 : index
      %c0_154 = arith.constant 0 : index
      %240 = vector.load %arg5[%c1_152, %c69_153, %c0_154] : memref<2x75x28xf32, #tpu.memory_space<vmem>>, vector<1x3x28xf32>
      %241 = vector.shape_cast %240 : vector<1x3x28xf32> to vector<3x28xf32>
      %242 = vector.shape_cast %239 : vector<3x28xf32> to vector<1x3x28xf32>
      tpu.vector_store %arg5[%c1_152, %c69_153, %c0_154], %242 {strides = array<i32>} : memref<2x75x28xf32, #tpu.memory_space<vmem>>, vector<1x3x28xf32>,
      %243 = vector.extract_strided_slice %46 {offsets = [0, 4], sizes = [3, 28], strides = [1, 1]} : vector<3x32xf32> to vector<3x28xf32>
      %c1_155 = arith.constant 1 : index
      %c72_156 = arith.constant 72 : index
      %c0_157 = arith.constant 0 : index
      %244 = vector.load %arg5[%c1_155, %c72_156, %c0_157] : memref<2x75x28xf32, #tpu.memory_space<vmem>>, vector<1x3x28xf32>
      %245 = vector.shape_cast %244 : vector<1x3x28xf32> to vector<3x28xf32>
      %246 = vector.shape_cast %243 : vector<3x28xf32> to vector<1x3x28xf32>
      tpu.vector_store %arg5[%c1_155, %c72_156, %c0_157], %246 {strides = array<i32>} : memref<2x75x28xf32, #tpu.memory_space<vmem>>, vector<1x3x28xf32>,
      %c0_158 = arith.constant 0 : index
      %c0_159 = arith.constant 0 : index
      %c0_160 = arith.constant 0 : index
      %247 = vector.load %arg5[%c0_158, %c0_159, %c0_160] : memref<2x75x28xf32, #tpu.memory_space<vmem>>, vector<1x75x28xf32>
      %248 = vector.shape_cast %247 : vector<1x75x28xf32> to vector<75x28xf32>
      %cst = arith.constant dense<0.000000e+00> : vector<6x28xf32>
      %249 = tpu.matmul %0, %248, %cst {dimension_numbers = #tpu.dot_dimension_numbers<[1], [0], [0], [1], [0, 0, 1, 1], [], []>} : vector<6x75xf32>, vector<75x28xf32>, vector<6x28xf32> -> vector<6x28xf32>
      %250 = vector.broadcast %1 : vector<6x1xf32> to vector<6x28xf32>
      %251 = arith.addf %249, %250 : vector<6x28xf32>
      %c1_161 = arith.constant 1 : index
      %c0_162 = arith.constant 0 : index
      %c0_163 = arith.constant 0 : index
      %252 = vector.load %arg5[%c1_161, %c0_162, %c0_163] : memref<2x75x28xf32, #tpu.memory_space<vmem>>, vector<1x75x28xf32>
      %253 = vector.shape_cast %252 : vector<1x75x28xf32> to vector<75x28xf32>
      %cst_164 = arith.constant dense<0.000000e+00> : vector<6x28xf32>
      %254 = tpu.matmul %0, %253, %cst_164 {dimension_numbers = #tpu.dot_dimension_numbers<[1], [0], [0], [1], [0, 0, 1, 1], [], []>} : vector<6x75xf32>, vector<75x28xf32>, vector<6x28xf32> -> vector<6x28xf32>
      %255 = vector.broadcast %1 : vector<6x1xf32> to vector<6x28xf32>
      %256 = arith.addf %254, %255 : vector<6x28xf32>
      %cst_165 = arith.constant 0.000000e+00 : f32
      %257 = vector.broadcast %cst_165 : f32 to vector<6x28xf32>
      %258 = arith.maximumf %251, %257 : vector<6x28xf32>
      %cst_166 = arith.constant 0.000000e+00 : f32
      %259 = vector.broadcast %cst_166 : f32 to vector<6x28xf32>
      %260 = arith.maximumf %256, %259 : vector<6x28xf32>
      %261 = arith.maximumf %258, %260 : vector<6x28xf32>
      %cst_167 = arith.constant dense<0.000000e+00> : vector<6x14xf32>
      %262 = tpu.matmul %261, %8, %cst_167 {dimension_numbers = #tpu.dot_dimension_numbers<[1], [0], [0], [1], [0, 0, 1, 1], [], []>} : vector<6x28xf32>, vector<28x14xf32>, vector<6x14xf32> -> vector<6x14xf32>
      %cst_168 = arith.constant dense<0.000000e+00> : vector<6x14xf32>
      %263 = tpu.matmul %261, %15, %cst_168 {dimension_numbers = #tpu.dot_dimension_numbers<[1], [0], [0], [1], [0, 0, 1, 1], [], []>} : vector<6x28xf32>, vector<28x14xf32>, vector<6x14xf32> -> vector<6x14xf32>
      %264 = arith.maximumf %262, %263 : vector<6x14xf32>
      %c0_169 = arith.constant 0 : index
      %265 = arith.index_cast %arg6 : i32 to index
      %c0_170 = arith.constant 0 : index
      %c0_171 = arith.constant 0 : index
      %266 = vector.load %arg4[%c0_169, %265, %c0_170, %c0_171] : memref<1x14x6x14xf32, #tpu.memory_space<vmem>>, vector<1x1x6x14xf32>
      %267 = vector.shape_cast %266 : vector<1x1x6x14xf32> to vector<6x14xf32>
      %268 = vector.shape_cast %264 : vector<6x14xf32> to vector<1x1x6x14xf32>
      tpu.vector_store %arg4[%c0_169, %265, %c0_170, %c0_171], %268 {strides = array<i32>} : memref<1x14x6x14xf32, #tpu.memory_space<vmem>>, vector<1x1x6x14xf32>,
    }
    %c14_i32_5 = arith.constant 14 : i32
    return
  }
  func.func @transform_0(%arg0: i32) -> (i32, i32, i32, i32) {
    %c0_i32 = arith.constant 0 : i32
    %c0_i32_0 = arith.constant 0 : i32
    %c0_i32_1 = arith.constant 0 : i32
    %c0_i32_2 = arith.constant 0 : i32
    return %arg0, %c0_i32, %c0_i32_0, %c0_i32_1 : i32, i32, i32, i32
  }
  func.func @transform_1(%arg0: i32) -> (i32, i32) {
    %c0_i32 = arith.constant 0 : i32
    %c0_i32_0 = arith.constant 0 : i32
    %c0_i32_1 = arith.constant 0 : i32
    return %c0_i32, %c0_i32_0 : i32, i32
  }
  func.func @transform_2(%arg0: i32) -> (i32, i32) {
    %c0_i32 = arith.constant 0 : i32
    %c0_i32_0 = arith.constant 0 : i32
    %c0_i32_1 = arith.constant 0 : i32
    return %c0_i32, %c0_i32_0 : i32, i32
  }
  func.func @transform_3(%arg0: i32) -> (i32, i32, i32, i32) {
    %c0_i32 = arith.constant 0 : i32
    %c0_i32_0 = arith.constant 0 : i32
    %c0_i32_1 = arith.constant 0 : i32
    %c0_i32_2 = arith.constant 0 : i32
    return %arg0, %c0_i32, %c0_i32_0, %c0_i32_1 : i32, i32, i32, i32
  }
}

module attributes {stable_mosaic.version = 11 : i64} {
  func.func @_conv_relu_pool_kernel(%arg0: i32, %arg1: memref<1x14x6x14xf32, #tpu.memory_space<vmem>>, %arg2: memref<16x150xf32, #tpu.memory_space<vmem>>, %arg3: memref<16x1xf32, #tpu.memory_space<vmem>>, %arg4: memref<1x5x16x5xf32, #tpu.memory_space<vmem>>, %arg5: memref<2x150x10xf32, #tpu.memory_space<vmem>>) attributes {dimension_semantics = [#tpu.dimension_semantics<parallel>], iteration_bounds = array<i64: 2>, scalar_prefetch = 0 : i64, scratch_operands = 1 : i64, tpu.core_type = #tpu.core_type<tc>, window_params = [{transform_indices = @transform_0, window_bounds = array<i64: 1, 14, 6, 14>}, {pipeline_mode = #tpu.pipeline_mode<synchronous>, transform_indices = @transform_1, window_bounds = array<i64: 16, 150>}, {pipeline_mode = #tpu.pipeline_mode<synchronous>, transform_indices = @transform_2, window_bounds = array<i64: 16, 1>}, {transform_indices = @transform_3, window_bounds = array<i64: 1, 5, 16, 5>}]} {
    %c0 = arith.constant 0 : index
    %c0_0 = arith.constant 0 : index
    %0 = vector.load %arg2[%c0, %c0_0] : memref<16x150xf32, #tpu.memory_space<vmem>>, vector<16x150xf32>
    %c0_1 = arith.constant 0 : index
    %c0_2 = arith.constant 0 : index
    %1 = vector.load %arg3[%c0_1, %c0_2] : memref<16x1xf32, #tpu.memory_space<vmem>>, vector<16x1xf32>
    %2 = tpu.iota {dimensions = array<i32: 0>} : vector<10x5xi32>
    %3 = tpu.iota {dimensions = array<i32: 1>} : vector<10x5xi32>
    %c2_i32 = arith.constant 2 : i32
    %4 = vector.broadcast %c2_i32 : i32 to vector<10x5xi32>
    %5 = arith.muli %4, %3 : vector<10x5xi32>
    %6 = arith.cmpi eq, %2, %5 : vector<10x5xi32>
    %7 = arith.extui %6 : vector<10x5xi1> to vector<10x5xi32>
    %8 = arith.sitofp %7 : vector<10x5xi32> to vector<10x5xf32>
    %c2_i32_3 = arith.constant 2 : i32
    %9 = vector.broadcast %c2_i32_3 : i32 to vector<10x5xi32>
    %10 = arith.muli %9, %3 : vector<10x5xi32>
    %c1_i32 = arith.constant 1 : i32
    %11 = vector.broadcast %c1_i32 : i32 to vector<10x5xi32>
    %12 = arith.addi %10, %11 : vector<10x5xi32>
    %13 = arith.cmpi eq, %2, %12 : vector<10x5xi32>
    %14 = arith.extui %13 : vector<10x5xi1> to vector<10x5xi32>
    %15 = arith.sitofp %14 : vector<10x5xi32> to vector<10x5xf32>
    %c0_i32 = arith.constant 0 : i32
    %c5_i32 = arith.constant 5 : i32
    %16 = arith.addi %c0_i32, %c5_i32 : i32
    %c1_i32_4 = arith.constant 1 : i32
    scf.for %arg6 = %c0_i32 to %16 step %c1_i32_4  : i32 {
      %c2_i32_6 = arith.constant 2 : i32
      %17 = arith.muli %c2_i32_6, %arg6 : i32
      %c0_i32_7 = arith.constant 0 : i32
      %18 = arith.addi %17, %c0_i32_7 : i32
      %c0_8 = arith.constant 0 : index
      %19 = arith.index_cast %18 : i32 to index
      %c0_9 = arith.constant 0 : index
      %c0_10 = arith.constant 0 : index
      %20 = vector.load %arg1[%c0_8, %19, %c0_9, %c0_10] : memref<1x14x6x14xf32, #tpu.memory_space<vmem>>, vector<1x1x6x14xf32>
      %21 = vector.shape_cast %20 : vector<1x1x6x14xf32> to vector<6x14xf32>
      %c2_i32_11 = arith.constant 2 : i32
      %22 = arith.muli %c2_i32_11, %arg6 : i32
      %c1_i32_12 = arith.constant 1 : i32
      %23 = arith.addi %22, %c1_i32_12 : i32
      %c0_13 = arith.constant 0 : index
      %24 = arith.index_cast %23 : i32 to index
      %c0_14 = arith.constant 0 : index
      %c0_15 = arith.constant 0 : index
      %25 = vector.load %arg1[%c0_13, %24, %c0_14, %c0_15] : memref<1x14x6x14xf32, #tpu.memory_space<vmem>>, vector<1x1x6x14xf32>
      %26 = vector.shape_cast %25 : vector<1x1x6x14xf32> to vector<6x14xf32>
      %c2_i32_16 = arith.constant 2 : i32
      %27 = arith.muli %c2_i32_16, %arg6 : i32
      %c2_i32_17 = arith.constant 2 : i32
      %28 = arith.addi %27, %c2_i32_17 : i32
      %c0_18 = arith.constant 0 : index
      %29 = arith.index_cast %28 : i32 to index
      %c0_19 = arith.constant 0 : index
      %c0_20 = arith.constant 0 : index
      %30 = vector.load %arg1[%c0_18, %29, %c0_19, %c0_20] : memref<1x14x6x14xf32, #tpu.memory_space<vmem>>, vector<1x1x6x14xf32>
      %31 = vector.shape_cast %30 : vector<1x1x6x14xf32> to vector<6x14xf32>
      %c2_i32_21 = arith.constant 2 : i32
      %32 = arith.muli %c2_i32_21, %arg6 : i32
      %c3_i32 = arith.constant 3 : i32
      %33 = arith.addi %32, %c3_i32 : i32
      %c0_22 = arith.constant 0 : index
      %34 = arith.index_cast %33 : i32 to index
      %c0_23 = arith.constant 0 : index
      %c0_24 = arith.constant 0 : index
      %35 = vector.load %arg1[%c0_22, %34, %c0_23, %c0_24] : memref<1x14x6x14xf32, #tpu.memory_space<vmem>>, vector<1x1x6x14xf32>
      %36 = vector.shape_cast %35 : vector<1x1x6x14xf32> to vector<6x14xf32>
      %c2_i32_25 = arith.constant 2 : i32
      %37 = arith.muli %c2_i32_25, %arg6 : i32
      %c4_i32 = arith.constant 4 : i32
      %38 = arith.addi %37, %c4_i32 : i32
      %c0_26 = arith.constant 0 : index
      %39 = arith.index_cast %38 : i32 to index
      %c0_27 = arith.constant 0 : index
      %c0_28 = arith.constant 0 : index
      %40 = vector.load %arg1[%c0_26, %39, %c0_27, %c0_28] : memref<1x14x6x14xf32, #tpu.memory_space<vmem>>, vector<1x1x6x14xf32>
      %41 = vector.shape_cast %40 : vector<1x1x6x14xf32> to vector<6x14xf32>
      %c2_i32_29 = arith.constant 2 : i32
      %42 = arith.muli %c2_i32_29, %arg6 : i32
      %c5_i32_30 = arith.constant 5 : i32
      %43 = arith.addi %42, %c5_i32_30 : i32
      %c0_31 = arith.constant 0 : index
      %44 = arith.index_cast %43 : i32 to index
      %c0_32 = arith.constant 0 : index
      %c0_33 = arith.constant 0 : index
      %45 = vector.load %arg1[%c0_31, %44, %c0_32, %c0_33] : memref<1x14x6x14xf32, #tpu.memory_space<vmem>>, vector<1x1x6x14xf32>
      %46 = vector.shape_cast %45 : vector<1x1x6x14xf32> to vector<6x14xf32>
      %47 = vector.extract_strided_slice %21 {offsets = [0, 0], sizes = [6, 10], strides = [1, 1]} : vector<6x14xf32> to vector<6x10xf32>
      %c0_34 = arith.constant 0 : index
      %c0_35 = arith.constant 0 : index
      %c0_36 = arith.constant 0 : index
      %48 = vector.load %arg5[%c0_34, %c0_35, %c0_36] : memref<2x150x10xf32, #tpu.memory_space<vmem>>, vector<1x6x10xf32>
      %49 = vector.shape_cast %48 : vector<1x6x10xf32> to vector<6x10xf32>
      %50 = vector.shape_cast %47 : vector<6x10xf32> to vector<1x6x10xf32>
      tpu.vector_store %arg5[%c0_34, %c0_35, %c0_36], %50 {strides = array<i32>} : memref<2x150x10xf32, #tpu.memory_space<vmem>>, vector<1x6x10xf32>,
      %51 = vector.extract_strided_slice %21 {offsets = [0, 1], sizes = [6, 10], strides = [1, 1]} : vector<6x14xf32> to vector<6x10xf32>
      %c0_37 = arith.constant 0 : index
      %c6 = arith.constant 6 : index
      %c0_38 = arith.constant 0 : index
      %52 = vector.load %arg5[%c0_37, %c6, %c0_38] : memref<2x150x10xf32, #tpu.memory_space<vmem>>, vector<1x6x10xf32>
      %53 = vector.shape_cast %52 : vector<1x6x10xf32> to vector<6x10xf32>
      %54 = vector.shape_cast %51 : vector<6x10xf32> to vector<1x6x10xf32>
      tpu.vector_store %arg5[%c0_37, %c6, %c0_38], %54 {strides = array<i32>} : memref<2x150x10xf32, #tpu.memory_space<vmem>>, vector<1x6x10xf32>,
      %55 = vector.extract_strided_slice %21 {offsets = [0, 2], sizes = [6, 10], strides = [1, 1]} : vector<6x14xf32> to vector<6x10xf32>
      %c0_39 = arith.constant 0 : index
      %c12 = arith.constant 12 : index
      %c0_40 = arith.constant 0 : index
      %56 = vector.load %arg5[%c0_39, %c12, %c0_40] : memref<2x150x10xf32, #tpu.memory_space<vmem>>, vector<1x6x10xf32>
      %57 = vector.shape_cast %56 : vector<1x6x10xf32> to vector<6x10xf32>
      %58 = vector.shape_cast %55 : vector<6x10xf32> to vector<1x6x10xf32>
      tpu.vector_store %arg5[%c0_39, %c12, %c0_40], %58 {strides = array<i32>} : memref<2x150x10xf32, #tpu.memory_space<vmem>>, vector<1x6x10xf32>,
      %59 = vector.extract_strided_slice %21 {offsets = [0, 3], sizes = [6, 10], strides = [1, 1]} : vector<6x14xf32> to vector<6x10xf32>
      %c0_41 = arith.constant 0 : index
      %c18 = arith.constant 18 : index
      %c0_42 = arith.constant 0 : index
      %60 = vector.load %arg5[%c0_41, %c18, %c0_42] : memref<2x150x10xf32, #tpu.memory_space<vmem>>, vector<1x6x10xf32>
      %61 = vector.shape_cast %60 : vector<1x6x10xf32> to vector<6x10xf32>
      %62 = vector.shape_cast %59 : vector<6x10xf32> to vector<1x6x10xf32>
      tpu.vector_store %arg5[%c0_41, %c18, %c0_42], %62 {strides = array<i32>} : memref<2x150x10xf32, #tpu.memory_space<vmem>>, vector<1x6x10xf32>,
      %63 = vector.extract_strided_slice %21 {offsets = [0, 4], sizes = [6, 10], strides = [1, 1]} : vector<6x14xf32> to vector<6x10xf32>
      %c0_43 = arith.constant 0 : index
      %c24 = arith.constant 24 : index
      %c0_44 = arith.constant 0 : index
      %64 = vector.load %arg5[%c0_43, %c24, %c0_44] : memref<2x150x10xf32, #tpu.memory_space<vmem>>, vector<1x6x10xf32>
      %65 = vector.shape_cast %64 : vector<1x6x10xf32> to vector<6x10xf32>
      %66 = vector.shape_cast %63 : vector<6x10xf32> to vector<1x6x10xf32>
      tpu.vector_store %arg5[%c0_43, %c24, %c0_44], %66 {strides = array<i32>} : memref<2x150x10xf32, #tpu.memory_space<vmem>>, vector<1x6x10xf32>,
      %67 = vector.extract_strided_slice %26 {offsets = [0, 0], sizes = [6, 10], strides = [1, 1]} : vector<6x14xf32> to vector<6x10xf32>
      %c0_45 = arith.constant 0 : index
      %c30 = arith.constant 30 : index
      %c0_46 = arith.constant 0 : index
      %68 = vector.load %arg5[%c0_45, %c30, %c0_46] : memref<2x150x10xf32, #tpu.memory_space<vmem>>, vector<1x6x10xf32>
      %69 = vector.shape_cast %68 : vector<1x6x10xf32> to vector<6x10xf32>
      %70 = vector.shape_cast %67 : vector<6x10xf32> to vector<1x6x10xf32>
      tpu.vector_store %arg5[%c0_45, %c30, %c0_46], %70 {strides = array<i32>} : memref<2x150x10xf32, #tpu.memory_space<vmem>>, vector<1x6x10xf32>,
      %71 = vector.extract_strided_slice %26 {offsets = [0, 1], sizes = [6, 10], strides = [1, 1]} : vector<6x14xf32> to vector<6x10xf32>
      %c0_47 = arith.constant 0 : index
      %c36 = arith.constant 36 : index
      %c0_48 = arith.constant 0 : index
      %72 = vector.load %arg5[%c0_47, %c36, %c0_48] : memref<2x150x10xf32, #tpu.memory_space<vmem>>, vector<1x6x10xf32>
      %73 = vector.shape_cast %72 : vector<1x6x10xf32> to vector<6x10xf32>
      %74 = vector.shape_cast %71 : vector<6x10xf32> to vector<1x6x10xf32>
      tpu.vector_store %arg5[%c0_47, %c36, %c0_48], %74 {strides = array<i32>} : memref<2x150x10xf32, #tpu.memory_space<vmem>>, vector<1x6x10xf32>,
      %75 = vector.extract_strided_slice %26 {offsets = [0, 2], sizes = [6, 10], strides = [1, 1]} : vector<6x14xf32> to vector<6x10xf32>
      %c0_49 = arith.constant 0 : index
      %c42 = arith.constant 42 : index
      %c0_50 = arith.constant 0 : index
      %76 = vector.load %arg5[%c0_49, %c42, %c0_50] : memref<2x150x10xf32, #tpu.memory_space<vmem>>, vector<1x6x10xf32>
      %77 = vector.shape_cast %76 : vector<1x6x10xf32> to vector<6x10xf32>
      %78 = vector.shape_cast %75 : vector<6x10xf32> to vector<1x6x10xf32>
      tpu.vector_store %arg5[%c0_49, %c42, %c0_50], %78 {strides = array<i32>} : memref<2x150x10xf32, #tpu.memory_space<vmem>>, vector<1x6x10xf32>,
      %79 = vector.extract_strided_slice %26 {offsets = [0, 3], sizes = [6, 10], strides = [1, 1]} : vector<6x14xf32> to vector<6x10xf32>
      %c0_51 = arith.constant 0 : index
      %c48 = arith.constant 48 : index
      %c0_52 = arith.constant 0 : index
      %80 = vector.load %arg5[%c0_51, %c48, %c0_52] : memref<2x150x10xf32, #tpu.memory_space<vmem>>, vector<1x6x10xf32>
      %81 = vector.shape_cast %80 : vector<1x6x10xf32> to vector<6x10xf32>
      %82 = vector.shape_cast %79 : vector<6x10xf32> to vector<1x6x10xf32>
      tpu.vector_store %arg5[%c0_51, %c48, %c0_52], %82 {strides = array<i32>} : memref<2x150x10xf32, #tpu.memory_space<vmem>>, vector<1x6x10xf32>,
      %83 = vector.extract_strided_slice %26 {offsets = [0, 4], sizes = [6, 10], strides = [1, 1]} : vector<6x14xf32> to vector<6x10xf32>
      %c0_53 = arith.constant 0 : index
      %c54 = arith.constant 54 : index
      %c0_54 = arith.constant 0 : index
      %84 = vector.load %arg5[%c0_53, %c54, %c0_54] : memref<2x150x10xf32, #tpu.memory_space<vmem>>, vector<1x6x10xf32>
      %85 = vector.shape_cast %84 : vector<1x6x10xf32> to vector<6x10xf32>
      %86 = vector.shape_cast %83 : vector<6x10xf32> to vector<1x6x10xf32>
      tpu.vector_store %arg5[%c0_53, %c54, %c0_54], %86 {strides = array<i32>} : memref<2x150x10xf32, #tpu.memory_space<vmem>>, vector<1x6x10xf32>,
      %87 = vector.extract_strided_slice %31 {offsets = [0, 0], sizes = [6, 10], strides = [1, 1]} : vector<6x14xf32> to vector<6x10xf32>
      %c0_55 = arith.constant 0 : index
      %c60 = arith.constant 60 : index
      %c0_56 = arith.constant 0 : index
      %88 = vector.load %arg5[%c0_55, %c60, %c0_56] : memref<2x150x10xf32, #tpu.memory_space<vmem>>, vector<1x6x10xf32>
      %89 = vector.shape_cast %88 : vector<1x6x10xf32> to vector<6x10xf32>
      %90 = vector.shape_cast %87 : vector<6x10xf32> to vector<1x6x10xf32>
      tpu.vector_store %arg5[%c0_55, %c60, %c0_56], %90 {strides = array<i32>} : memref<2x150x10xf32, #tpu.memory_space<vmem>>, vector<1x6x10xf32>,
      %91 = vector.extract_strided_slice %31 {offsets = [0, 1], sizes = [6, 10], strides = [1, 1]} : vector<6x14xf32> to vector<6x10xf32>
      %c0_57 = arith.constant 0 : index
      %c66 = arith.constant 66 : index
      %c0_58 = arith.constant 0 : index
      %92 = vector.load %arg5[%c0_57, %c66, %c0_58] : memref<2x150x10xf32, #tpu.memory_space<vmem>>, vector<1x6x10xf32>
      %93 = vector.shape_cast %92 : vector<1x6x10xf32> to vector<6x10xf32>
      %94 = vector.shape_cast %91 : vector<6x10xf32> to vector<1x6x10xf32>
      tpu.vector_store %arg5[%c0_57, %c66, %c0_58], %94 {strides = array<i32>} : memref<2x150x10xf32, #tpu.memory_space<vmem>>, vector<1x6x10xf32>,
      %95 = vector.extract_strided_slice %31 {offsets = [0, 2], sizes = [6, 10], strides = [1, 1]} : vector<6x14xf32> to vector<6x10xf32>
      %c0_59 = arith.constant 0 : index
      %c72 = arith.constant 72 : index
      %c0_60 = arith.constant 0 : index
      %96 = vector.load %arg5[%c0_59, %c72, %c0_60] : memref<2x150x10xf32, #tpu.memory_space<vmem>>, vector<1x6x10xf32>
      %97 = vector.shape_cast %96 : vector<1x6x10xf32> to vector<6x10xf32>
      %98 = vector.shape_cast %95 : vector<6x10xf32> to vector<1x6x10xf32>
      tpu.vector_store %arg5[%c0_59, %c72, %c0_60], %98 {strides = array<i32>} : memref<2x150x10xf32, #tpu.memory_space<vmem>>, vector<1x6x10xf32>,
      %99 = vector.extract_strided_slice %31 {offsets = [0, 3], sizes = [6, 10], strides = [1, 1]} : vector<6x14xf32> to vector<6x10xf32>
      %c0_61 = arith.constant 0 : index
      %c78 = arith.constant 78 : index
      %c0_62 = arith.constant 0 : index
      %100 = vector.load %arg5[%c0_61, %c78, %c0_62] : memref<2x150x10xf32, #tpu.memory_space<vmem>>, vector<1x6x10xf32>
      %101 = vector.shape_cast %100 : vector<1x6x10xf32> to vector<6x10xf32>
      %102 = vector.shape_cast %99 : vector<6x10xf32> to vector<1x6x10xf32>
      tpu.vector_store %arg5[%c0_61, %c78, %c0_62], %102 {strides = array<i32>} : memref<2x150x10xf32, #tpu.memory_space<vmem>>, vector<1x6x10xf32>,
      %103 = vector.extract_strided_slice %31 {offsets = [0, 4], sizes = [6, 10], strides = [1, 1]} : vector<6x14xf32> to vector<6x10xf32>
      %c0_63 = arith.constant 0 : index
      %c84 = arith.constant 84 : index
      %c0_64 = arith.constant 0 : index
      %104 = vector.load %arg5[%c0_63, %c84, %c0_64] : memref<2x150x10xf32, #tpu.memory_space<vmem>>, vector<1x6x10xf32>
      %105 = vector.shape_cast %104 : vector<1x6x10xf32> to vector<6x10xf32>
      %106 = vector.shape_cast %103 : vector<6x10xf32> to vector<1x6x10xf32>
      tpu.vector_store %arg5[%c0_63, %c84, %c0_64], %106 {strides = array<i32>} : memref<2x150x10xf32, #tpu.memory_space<vmem>>, vector<1x6x10xf32>,
      %107 = vector.extract_strided_slice %36 {offsets = [0, 0], sizes = [6, 10], strides = [1, 1]} : vector<6x14xf32> to vector<6x10xf32>
      %c0_65 = arith.constant 0 : index
      %c90 = arith.constant 90 : index
      %c0_66 = arith.constant 0 : index
      %108 = vector.load %arg5[%c0_65, %c90, %c0_66] : memref<2x150x10xf32, #tpu.memory_space<vmem>>, vector<1x6x10xf32>
      %109 = vector.shape_cast %108 : vector<1x6x10xf32> to vector<6x10xf32>
      %110 = vector.shape_cast %107 : vector<6x10xf32> to vector<1x6x10xf32>
      tpu.vector_store %arg5[%c0_65, %c90, %c0_66], %110 {strides = array<i32>} : memref<2x150x10xf32, #tpu.memory_space<vmem>>, vector<1x6x10xf32>,
      %111 = vector.extract_strided_slice %36 {offsets = [0, 1], sizes = [6, 10], strides = [1, 1]} : vector<6x14xf32> to vector<6x10xf32>
      %c0_67 = arith.constant 0 : index
      %c96 = arith.constant 96 : index
      %c0_68 = arith.constant 0 : index
      %112 = vector.load %arg5[%c0_67, %c96, %c0_68] : memref<2x150x10xf32, #tpu.memory_space<vmem>>, vector<1x6x10xf32>
      %113 = vector.shape_cast %112 : vector<1x6x10xf32> to vector<6x10xf32>
      %114 = vector.shape_cast %111 : vector<6x10xf32> to vector<1x6x10xf32>
      tpu.vector_store %arg5[%c0_67, %c96, %c0_68], %114 {strides = array<i32>} : memref<2x150x10xf32, #tpu.memory_space<vmem>>, vector<1x6x10xf32>,
      %115 = vector.extract_strided_slice %36 {offsets = [0, 2], sizes = [6, 10], strides = [1, 1]} : vector<6x14xf32> to vector<6x10xf32>
      %c0_69 = arith.constant 0 : index
      %c102 = arith.constant 102 : index
      %c0_70 = arith.constant 0 : index
      %116 = vector.load %arg5[%c0_69, %c102, %c0_70] : memref<2x150x10xf32, #tpu.memory_space<vmem>>, vector<1x6x10xf32>
      %117 = vector.shape_cast %116 : vector<1x6x10xf32> to vector<6x10xf32>
      %118 = vector.shape_cast %115 : vector<6x10xf32> to vector<1x6x10xf32>
      tpu.vector_store %arg5[%c0_69, %c102, %c0_70], %118 {strides = array<i32>} : memref<2x150x10xf32, #tpu.memory_space<vmem>>, vector<1x6x10xf32>,
      %119 = vector.extract_strided_slice %36 {offsets = [0, 3], sizes = [6, 10], strides = [1, 1]} : vector<6x14xf32> to vector<6x10xf32>
      %c0_71 = arith.constant 0 : index
      %c108 = arith.constant 108 : index
      %c0_72 = arith.constant 0 : index
      %120 = vector.load %arg5[%c0_71, %c108, %c0_72] : memref<2x150x10xf32, #tpu.memory_space<vmem>>, vector<1x6x10xf32>
      %121 = vector.shape_cast %120 : vector<1x6x10xf32> to vector<6x10xf32>
      %122 = vector.shape_cast %119 : vector<6x10xf32> to vector<1x6x10xf32>
      tpu.vector_store %arg5[%c0_71, %c108, %c0_72], %122 {strides = array<i32>} : memref<2x150x10xf32, #tpu.memory_space<vmem>>, vector<1x6x10xf32>,
      %123 = vector.extract_strided_slice %36 {offsets = [0, 4], sizes = [6, 10], strides = [1, 1]} : vector<6x14xf32> to vector<6x10xf32>
      %c0_73 = arith.constant 0 : index
      %c114 = arith.constant 114 : index
      %c0_74 = arith.constant 0 : index
      %124 = vector.load %arg5[%c0_73, %c114, %c0_74] : memref<2x150x10xf32, #tpu.memory_space<vmem>>, vector<1x6x10xf32>
      %125 = vector.shape_cast %124 : vector<1x6x10xf32> to vector<6x10xf32>
      %126 = vector.shape_cast %123 : vector<6x10xf32> to vector<1x6x10xf32>
      tpu.vector_store %arg5[%c0_73, %c114, %c0_74], %126 {strides = array<i32>} : memref<2x150x10xf32, #tpu.memory_space<vmem>>, vector<1x6x10xf32>,
      %127 = vector.extract_strided_slice %41 {offsets = [0, 0], sizes = [6, 10], strides = [1, 1]} : vector<6x14xf32> to vector<6x10xf32>
      %c0_75 = arith.constant 0 : index
      %c120 = arith.constant 120 : index
      %c0_76 = arith.constant 0 : index
      %128 = vector.load %arg5[%c0_75, %c120, %c0_76] : memref<2x150x10xf32, #tpu.memory_space<vmem>>, vector<1x6x10xf32>
      %129 = vector.shape_cast %128 : vector<1x6x10xf32> to vector<6x10xf32>
      %130 = vector.shape_cast %127 : vector<6x10xf32> to vector<1x6x10xf32>
      tpu.vector_store %arg5[%c0_75, %c120, %c0_76], %130 {strides = array<i32>} : memref<2x150x10xf32, #tpu.memory_space<vmem>>, vector<1x6x10xf32>,
      %131 = vector.extract_strided_slice %41 {offsets = [0, 1], sizes = [6, 10], strides = [1, 1]} : vector<6x14xf32> to vector<6x10xf32>
      %c0_77 = arith.constant 0 : index
      %c126 = arith.constant 126 : index
      %c0_78 = arith.constant 0 : index
      %132 = vector.load %arg5[%c0_77, %c126, %c0_78] : memref<2x150x10xf32, #tpu.memory_space<vmem>>, vector<1x6x10xf32>
      %133 = vector.shape_cast %132 : vector<1x6x10xf32> to vector<6x10xf32>
      %134 = vector.shape_cast %131 : vector<6x10xf32> to vector<1x6x10xf32>
      tpu.vector_store %arg5[%c0_77, %c126, %c0_78], %134 {strides = array<i32>} : memref<2x150x10xf32, #tpu.memory_space<vmem>>, vector<1x6x10xf32>,
      %135 = vector.extract_strided_slice %41 {offsets = [0, 2], sizes = [6, 10], strides = [1, 1]} : vector<6x14xf32> to vector<6x10xf32>
      %c0_79 = arith.constant 0 : index
      %c132 = arith.constant 132 : index
      %c0_80 = arith.constant 0 : index
      %136 = vector.load %arg5[%c0_79, %c132, %c0_80] : memref<2x150x10xf32, #tpu.memory_space<vmem>>, vector<1x6x10xf32>
      %137 = vector.shape_cast %136 : vector<1x6x10xf32> to vector<6x10xf32>
      %138 = vector.shape_cast %135 : vector<6x10xf32> to vector<1x6x10xf32>
      tpu.vector_store %arg5[%c0_79, %c132, %c0_80], %138 {strides = array<i32>} : memref<2x150x10xf32, #tpu.memory_space<vmem>>, vector<1x6x10xf32>,
      %139 = vector.extract_strided_slice %41 {offsets = [0, 3], sizes = [6, 10], strides = [1, 1]} : vector<6x14xf32> to vector<6x10xf32>
      %c0_81 = arith.constant 0 : index
      %c138 = arith.constant 138 : index
      %c0_82 = arith.constant 0 : index
      %140 = vector.load %arg5[%c0_81, %c138, %c0_82] : memref<2x150x10xf32, #tpu.memory_space<vmem>>, vector<1x6x10xf32>
      %141 = vector.shape_cast %140 : vector<1x6x10xf32> to vector<6x10xf32>
      %142 = vector.shape_cast %139 : vector<6x10xf32> to vector<1x6x10xf32>
      tpu.vector_store %arg5[%c0_81, %c138, %c0_82], %142 {strides = array<i32>} : memref<2x150x10xf32, #tpu.memory_space<vmem>>, vector<1x6x10xf32>,
      %143 = vector.extract_strided_slice %41 {offsets = [0, 4], sizes = [6, 10], strides = [1, 1]} : vector<6x14xf32> to vector<6x10xf32>
      %c0_83 = arith.constant 0 : index
      %c144 = arith.constant 144 : index
      %c0_84 = arith.constant 0 : index
      %144 = vector.load %arg5[%c0_83, %c144, %c0_84] : memref<2x150x10xf32, #tpu.memory_space<vmem>>, vector<1x6x10xf32>
      %145 = vector.shape_cast %144 : vector<1x6x10xf32> to vector<6x10xf32>
      %146 = vector.shape_cast %143 : vector<6x10xf32> to vector<1x6x10xf32>
      tpu.vector_store %arg5[%c0_83, %c144, %c0_84], %146 {strides = array<i32>} : memref<2x150x10xf32, #tpu.memory_space<vmem>>, vector<1x6x10xf32>,
      %147 = vector.extract_strided_slice %26 {offsets = [0, 0], sizes = [6, 10], strides = [1, 1]} : vector<6x14xf32> to vector<6x10xf32>
      %c1 = arith.constant 1 : index
      %c0_85 = arith.constant 0 : index
      %c0_86 = arith.constant 0 : index
      %148 = vector.load %arg5[%c1, %c0_85, %c0_86] : memref<2x150x10xf32, #tpu.memory_space<vmem>>, vector<1x6x10xf32>
      %149 = vector.shape_cast %148 : vector<1x6x10xf32> to vector<6x10xf32>
      %150 = vector.shape_cast %147 : vector<6x10xf32> to vector<1x6x10xf32>
      tpu.vector_store %arg5[%c1, %c0_85, %c0_86], %150 {strides = array<i32>} : memref<2x150x10xf32, #tpu.memory_space<vmem>>, vector<1x6x10xf32>,
      %151 = vector.extract_strided_slice %26 {offsets = [0, 1], sizes = [6, 10], strides = [1, 1]} : vector<6x14xf32> to vector<6x10xf32>
      %c1_87 = arith.constant 1 : index
      %c6_88 = arith.constant 6 : index
      %c0_89 = arith.constant 0 : index
      %152 = vector.load %arg5[%c1_87, %c6_88, %c0_89] : memref<2x150x10xf32, #tpu.memory_space<vmem>>, vector<1x6x10xf32>
      %153 = vector.shape_cast %152 : vector<1x6x10xf32> to vector<6x10xf32>
      %154 = vector.shape_cast %151 : vector<6x10xf32> to vector<1x6x10xf32>
      tpu.vector_store %arg5[%c1_87, %c6_88, %c0_89], %154 {strides = array<i32>} : memref<2x150x10xf32, #tpu.memory_space<vmem>>, vector<1x6x10xf32>,
      %155 = vector.extract_strided_slice %26 {offsets = [0, 2], sizes = [6, 10], strides = [1, 1]} : vector<6x14xf32> to vector<6x10xf32>
      %c1_90 = arith.constant 1 : index
      %c12_91 = arith.constant 12 : index
      %c0_92 = arith.constant 0 : index
      %156 = vector.load %arg5[%c1_90, %c12_91, %c0_92] : memref<2x150x10xf32, #tpu.memory_space<vmem>>, vector<1x6x10xf32>
      %157 = vector.shape_cast %156 : vector<1x6x10xf32> to vector<6x10xf32>
      %158 = vector.shape_cast %155 : vector<6x10xf32> to vector<1x6x10xf32>
      tpu.vector_store %arg5[%c1_90, %c12_91, %c0_92], %158 {strides = array<i32>} : memref<2x150x10xf32, #tpu.memory_space<vmem>>, vector<1x6x10xf32>,
      %159 = vector.extract_strided_slice %26 {offsets = [0, 3], sizes = [6, 10], strides = [1, 1]} : vector<6x14xf32> to vector<6x10xf32>
      %c1_93 = arith.constant 1 : index
      %c18_94 = arith.constant 18 : index
      %c0_95 = arith.constant 0 : index
      %160 = vector.load %arg5[%c1_93, %c18_94, %c0_95] : memref<2x150x10xf32, #tpu.memory_space<vmem>>, vector<1x6x10xf32>
      %161 = vector.shape_cast %160 : vector<1x6x10xf32> to vector<6x10xf32>
      %162 = vector.shape_cast %159 : vector<6x10xf32> to vector<1x6x10xf32>
      tpu.vector_store %arg5[%c1_93, %c18_94, %c0_95], %162 {strides = array<i32>} : memref<2x150x10xf32, #tpu.memory_space<vmem>>, vector<1x6x10xf32>,
      %163 = vector.extract_strided_slice %26 {offsets = [0, 4], sizes = [6, 10], strides = [1, 1]} : vector<6x14xf32> to vector<6x10xf32>
      %c1_96 = arith.constant 1 : index
      %c24_97 = arith.constant 24 : index
      %c0_98 = arith.constant 0 : index
      %164 = vector.load %arg5[%c1_96, %c24_97, %c0_98] : memref<2x150x10xf32, #tpu.memory_space<vmem>>, vector<1x6x10xf32>
      %165 = vector.shape_cast %164 : vector<1x6x10xf32> to vector<6x10xf32>
      %166 = vector.shape_cast %163 : vector<6x10xf32> to vector<1x6x10xf32>
      tpu.vector_store %arg5[%c1_96, %c24_97, %c0_98], %166 {strides = array<i32>} : memref<2x150x10xf32, #tpu.memory_space<vmem>>, vector<1x6x10xf32>,
      %167 = vector.extract_strided_slice %31 {offsets = [0, 0], sizes = [6, 10], strides = [1, 1]} : vector<6x14xf32> to vector<6x10xf32>
      %c1_99 = arith.constant 1 : index
      %c30_100 = arith.constant 30 : index
      %c0_101 = arith.constant 0 : index
      %168 = vector.load %arg5[%c1_99, %c30_100, %c0_101] : memref<2x150x10xf32, #tpu.memory_space<vmem>>, vector<1x6x10xf32>
      %169 = vector.shape_cast %168 : vector<1x6x10xf32> to vector<6x10xf32>
      %170 = vector.shape_cast %167 : vector<6x10xf32> to vector<1x6x10xf32>
      tpu.vector_store %arg5[%c1_99, %c30_100, %c0_101], %170 {strides = array<i32>} : memref<2x150x10xf32, #tpu.memory_space<vmem>>, vector<1x6x10xf32>,
      %171 = vector.extract_strided_slice %31 {offsets = [0, 1], sizes = [6, 10], strides = [1, 1]} : vector<6x14xf32> to vector<6x10xf32>
      %c1_102 = arith.constant 1 : index
      %c36_103 = arith.constant 36 : index
      %c0_104 = arith.constant 0 : index
      %172 = vector.load %arg5[%c1_102, %c36_103, %c0_104] : memref<2x150x10xf32, #tpu.memory_space<vmem>>, vector<1x6x10xf32>
      %173 = vector.shape_cast %172 : vector<1x6x10xf32> to vector<6x10xf32>
      %174 = vector.shape_cast %171 : vector<6x10xf32> to vector<1x6x10xf32>
      tpu.vector_store %arg5[%c1_102, %c36_103, %c0_104], %174 {strides = array<i32>} : memref<2x150x10xf32, #tpu.memory_space<vmem>>, vector<1x6x10xf32>,
      %175 = vector.extract_strided_slice %31 {offsets = [0, 2], sizes = [6, 10], strides = [1, 1]} : vector<6x14xf32> to vector<6x10xf32>
      %c1_105 = arith.constant 1 : index
      %c42_106 = arith.constant 42 : index
      %c0_107 = arith.constant 0 : index
      %176 = vector.load %arg5[%c1_105, %c42_106, %c0_107] : memref<2x150x10xf32, #tpu.memory_space<vmem>>, vector<1x6x10xf32>
      %177 = vector.shape_cast %176 : vector<1x6x10xf32> to vector<6x10xf32>
      %178 = vector.shape_cast %175 : vector<6x10xf32> to vector<1x6x10xf32>
      tpu.vector_store %arg5[%c1_105, %c42_106, %c0_107], %178 {strides = array<i32>} : memref<2x150x10xf32, #tpu.memory_space<vmem>>, vector<1x6x10xf32>,
      %179 = vector.extract_strided_slice %31 {offsets = [0, 3], sizes = [6, 10], strides = [1, 1]} : vector<6x14xf32> to vector<6x10xf32>
      %c1_108 = arith.constant 1 : index
      %c48_109 = arith.constant 48 : index
      %c0_110 = arith.constant 0 : index
      %180 = vector.load %arg5[%c1_108, %c48_109, %c0_110] : memref<2x150x10xf32, #tpu.memory_space<vmem>>, vector<1x6x10xf32>
      %181 = vector.shape_cast %180 : vector<1x6x10xf32> to vector<6x10xf32>
      %182 = vector.shape_cast %179 : vector<6x10xf32> to vector<1x6x10xf32>
      tpu.vector_store %arg5[%c1_108, %c48_109, %c0_110], %182 {strides = array<i32>} : memref<2x150x10xf32, #tpu.memory_space<vmem>>, vector<1x6x10xf32>,
      %183 = vector.extract_strided_slice %31 {offsets = [0, 4], sizes = [6, 10], strides = [1, 1]} : vector<6x14xf32> to vector<6x10xf32>
      %c1_111 = arith.constant 1 : index
      %c54_112 = arith.constant 54 : index
      %c0_113 = arith.constant 0 : index
      %184 = vector.load %arg5[%c1_111, %c54_112, %c0_113] : memref<2x150x10xf32, #tpu.memory_space<vmem>>, vector<1x6x10xf32>
      %185 = vector.shape_cast %184 : vector<1x6x10xf32> to vector<6x10xf32>
      %186 = vector.shape_cast %183 : vector<6x10xf32> to vector<1x6x10xf32>
      tpu.vector_store %arg5[%c1_111, %c54_112, %c0_113], %186 {strides = array<i32>} : memref<2x150x10xf32, #tpu.memory_space<vmem>>, vector<1x6x10xf32>,
      %187 = vector.extract_strided_slice %36 {offsets = [0, 0], sizes = [6, 10], strides = [1, 1]} : vector<6x14xf32> to vector<6x10xf32>
      %c1_114 = arith.constant 1 : index
      %c60_115 = arith.constant 60 : index
      %c0_116 = arith.constant 0 : index
      %188 = vector.load %arg5[%c1_114, %c60_115, %c0_116] : memref<2x150x10xf32, #tpu.memory_space<vmem>>, vector<1x6x10xf32>
      %189 = vector.shape_cast %188 : vector<1x6x10xf32> to vector<6x10xf32>
      %190 = vector.shape_cast %187 : vector<6x10xf32> to vector<1x6x10xf32>
      tpu.vector_store %arg5[%c1_114, %c60_115, %c0_116], %190 {strides = array<i32>} : memref<2x150x10xf32, #tpu.memory_space<vmem>>, vector<1x6x10xf32>,
      %191 = vector.extract_strided_slice %36 {offsets = [0, 1], sizes = [6, 10], strides = [1, 1]} : vector<6x14xf32> to vector<6x10xf32>
      %c1_117 = arith.constant 1 : index
      %c66_118 = arith.constant 66 : index
      %c0_119 = arith.constant 0 : index
      %192 = vector.load %arg5[%c1_117, %c66_118, %c0_119] : memref<2x150x10xf32, #tpu.memory_space<vmem>>, vector<1x6x10xf32>
      %193 = vector.shape_cast %192 : vector<1x6x10xf32> to vector<6x10xf32>
      %194 = vector.shape_cast %191 : vector<6x10xf32> to vector<1x6x10xf32>
      tpu.vector_store %arg5[%c1_117, %c66_118, %c0_119], %194 {strides = array<i32>} : memref<2x150x10xf32, #tpu.memory_space<vmem>>, vector<1x6x10xf32>,
      %195 = vector.extract_strided_slice %36 {offsets = [0, 2], sizes = [6, 10], strides = [1, 1]} : vector<6x14xf32> to vector<6x10xf32>
      %c1_120 = arith.constant 1 : index
      %c72_121 = arith.constant 72 : index
      %c0_122 = arith.constant 0 : index
      %196 = vector.load %arg5[%c1_120, %c72_121, %c0_122] : memref<2x150x10xf32, #tpu.memory_space<vmem>>, vector<1x6x10xf32>
      %197 = vector.shape_cast %196 : vector<1x6x10xf32> to vector<6x10xf32>
      %198 = vector.shape_cast %195 : vector<6x10xf32> to vector<1x6x10xf32>
      tpu.vector_store %arg5[%c1_120, %c72_121, %c0_122], %198 {strides = array<i32>} : memref<2x150x10xf32, #tpu.memory_space<vmem>>, vector<1x6x10xf32>,
      %199 = vector.extract_strided_slice %36 {offsets = [0, 3], sizes = [6, 10], strides = [1, 1]} : vector<6x14xf32> to vector<6x10xf32>
      %c1_123 = arith.constant 1 : index
      %c78_124 = arith.constant 78 : index
      %c0_125 = arith.constant 0 : index
      %200 = vector.load %arg5[%c1_123, %c78_124, %c0_125] : memref<2x150x10xf32, #tpu.memory_space<vmem>>, vector<1x6x10xf32>
      %201 = vector.shape_cast %200 : vector<1x6x10xf32> to vector<6x10xf32>
      %202 = vector.shape_cast %199 : vector<6x10xf32> to vector<1x6x10xf32>
      tpu.vector_store %arg5[%c1_123, %c78_124, %c0_125], %202 {strides = array<i32>} : memref<2x150x10xf32, #tpu.memory_space<vmem>>, vector<1x6x10xf32>,
      %203 = vector.extract_strided_slice %36 {offsets = [0, 4], sizes = [6, 10], strides = [1, 1]} : vector<6x14xf32> to vector<6x10xf32>
      %c1_126 = arith.constant 1 : index
      %c84_127 = arith.constant 84 : index
      %c0_128 = arith.constant 0 : index
      %204 = vector.load %arg5[%c1_126, %c84_127, %c0_128] : memref<2x150x10xf32, #tpu.memory_space<vmem>>, vector<1x6x10xf32>
      %205 = vector.shape_cast %204 : vector<1x6x10xf32> to vector<6x10xf32>
      %206 = vector.shape_cast %203 : vector<6x10xf32> to vector<1x6x10xf32>
      tpu.vector_store %arg5[%c1_126, %c84_127, %c0_128], %206 {strides = array<i32>} : memref<2x150x10xf32, #tpu.memory_space<vmem>>, vector<1x6x10xf32>,
      %207 = vector.extract_strided_slice %41 {offsets = [0, 0], sizes = [6, 10], strides = [1, 1]} : vector<6x14xf32> to vector<6x10xf32>
      %c1_129 = arith.constant 1 : index
      %c90_130 = arith.constant 90 : index
      %c0_131 = arith.constant 0 : index
      %208 = vector.load %arg5[%c1_129, %c90_130, %c0_131] : memref<2x150x10xf32, #tpu.memory_space<vmem>>, vector<1x6x10xf32>
      %209 = vector.shape_cast %208 : vector<1x6x10xf32> to vector<6x10xf32>
      %210 = vector.shape_cast %207 : vector<6x10xf32> to vector<1x6x10xf32>
      tpu.vector_store %arg5[%c1_129, %c90_130, %c0_131], %210 {strides = array<i32>} : memref<2x150x10xf32, #tpu.memory_space<vmem>>, vector<1x6x10xf32>,
      %211 = vector.extract_strided_slice %41 {offsets = [0, 1], sizes = [6, 10], strides = [1, 1]} : vector<6x14xf32> to vector<6x10xf32>
      %c1_132 = arith.constant 1 : index
      %c96_133 = arith.constant 96 : index
      %c0_134 = arith.constant 0 : index
      %212 = vector.load %arg5[%c1_132, %c96_133, %c0_134] : memref<2x150x10xf32, #tpu.memory_space<vmem>>, vector<1x6x10xf32>
      %213 = vector.shape_cast %212 : vector<1x6x10xf32> to vector<6x10xf32>
      %214 = vector.shape_cast %211 : vector<6x10xf32> to vector<1x6x10xf32>
      tpu.vector_store %arg5[%c1_132, %c96_133, %c0_134], %214 {strides = array<i32>} : memref<2x150x10xf32, #tpu.memory_space<vmem>>, vector<1x6x10xf32>,
      %215 = vector.extract_strided_slice %41 {offsets = [0, 2], sizes = [6, 10], strides = [1, 1]} : vector<6x14xf32> to vector<6x10xf32>
      %c1_135 = arith.constant 1 : index
      %c102_136 = arith.constant 102 : index
      %c0_137 = arith.constant 0 : index
      %216 = vector.load %arg5[%c1_135, %c102_136, %c0_137] : memref<2x150x10xf32, #tpu.memory_space<vmem>>, vector<1x6x10xf32>
      %217 = vector.shape_cast %216 : vector<1x6x10xf32> to vector<6x10xf32>
      %218 = vector.shape_cast %215 : vector<6x10xf32> to vector<1x6x10xf32>
      tpu.vector_store %arg5[%c1_135, %c102_136, %c0_137], %218 {strides = array<i32>} : memref<2x150x10xf32, #tpu.memory_space<vmem>>, vector<1x6x10xf32>,
      %219 = vector.extract_strided_slice %41 {offsets = [0, 3], sizes = [6, 10], strides = [1, 1]} : vector<6x14xf32> to vector<6x10xf32>
      %c1_138 = arith.constant 1 : index
      %c108_139 = arith.constant 108 : index
      %c0_140 = arith.constant 0 : index
      %220 = vector.load %arg5[%c1_138, %c108_139, %c0_140] : memref<2x150x10xf32, #tpu.memory_space<vmem>>, vector<1x6x10xf32>
      %221 = vector.shape_cast %220 : vector<1x6x10xf32> to vector<6x10xf32>
      %222 = vector.shape_cast %219 : vector<6x10xf32> to vector<1x6x10xf32>
      tpu.vector_store %arg5[%c1_138, %c108_139, %c0_140], %222 {strides = array<i32>} : memref<2x150x10xf32, #tpu.memory_space<vmem>>, vector<1x6x10xf32>,
      %223 = vector.extract_strided_slice %41 {offsets = [0, 4], sizes = [6, 10], strides = [1, 1]} : vector<6x14xf32> to vector<6x10xf32>
      %c1_141 = arith.constant 1 : index
      %c114_142 = arith.constant 114 : index
      %c0_143 = arith.constant 0 : index
      %224 = vector.load %arg5[%c1_141, %c114_142, %c0_143] : memref<2x150x10xf32, #tpu.memory_space<vmem>>, vector<1x6x10xf32>
      %225 = vector.shape_cast %224 : vector<1x6x10xf32> to vector<6x10xf32>
      %226 = vector.shape_cast %223 : vector<6x10xf32> to vector<1x6x10xf32>
      tpu.vector_store %arg5[%c1_141, %c114_142, %c0_143], %226 {strides = array<i32>} : memref<2x150x10xf32, #tpu.memory_space<vmem>>, vector<1x6x10xf32>,
      %227 = vector.extract_strided_slice %46 {offsets = [0, 0], sizes = [6, 10], strides = [1, 1]} : vector<6x14xf32> to vector<6x10xf32>
      %c1_144 = arith.constant 1 : index
      %c120_145 = arith.constant 120 : index
      %c0_146 = arith.constant 0 : index
      %228 = vector.load %arg5[%c1_144, %c120_145, %c0_146] : memref<2x150x10xf32, #tpu.memory_space<vmem>>, vector<1x6x10xf32>
      %229 = vector.shape_cast %228 : vector<1x6x10xf32> to vector<6x10xf32>
      %230 = vector.shape_cast %227 : vector<6x10xf32> to vector<1x6x10xf32>
      tpu.vector_store %arg5[%c1_144, %c120_145, %c0_146], %230 {strides = array<i32>} : memref<2x150x10xf32, #tpu.memory_space<vmem>>, vector<1x6x10xf32>,
      %231 = vector.extract_strided_slice %46 {offsets = [0, 1], sizes = [6, 10], strides = [1, 1]} : vector<6x14xf32> to vector<6x10xf32>
      %c1_147 = arith.constant 1 : index
      %c126_148 = arith.constant 126 : index
      %c0_149 = arith.constant 0 : index
      %232 = vector.load %arg5[%c1_147, %c126_148, %c0_149] : memref<2x150x10xf32, #tpu.memory_space<vmem>>, vector<1x6x10xf32>
      %233 = vector.shape_cast %232 : vector<1x6x10xf32> to vector<6x10xf32>
      %234 = vector.shape_cast %231 : vector<6x10xf32> to vector<1x6x10xf32>
      tpu.vector_store %arg5[%c1_147, %c126_148, %c0_149], %234 {strides = array<i32>} : memref<2x150x10xf32, #tpu.memory_space<vmem>>, vector<1x6x10xf32>,
      %235 = vector.extract_strided_slice %46 {offsets = [0, 2], sizes = [6, 10], strides = [1, 1]} : vector<6x14xf32> to vector<6x10xf32>
      %c1_150 = arith.constant 1 : index
      %c132_151 = arith.constant 132 : index
      %c0_152 = arith.constant 0 : index
      %236 = vector.load %arg5[%c1_150, %c132_151, %c0_152] : memref<2x150x10xf32, #tpu.memory_space<vmem>>, vector<1x6x10xf32>
      %237 = vector.shape_cast %236 : vector<1x6x10xf32> to vector<6x10xf32>
      %238 = vector.shape_cast %235 : vector<6x10xf32> to vector<1x6x10xf32>
      tpu.vector_store %arg5[%c1_150, %c132_151, %c0_152], %238 {strides = array<i32>} : memref<2x150x10xf32, #tpu.memory_space<vmem>>, vector<1x6x10xf32>,
      %239 = vector.extract_strided_slice %46 {offsets = [0, 3], sizes = [6, 10], strides = [1, 1]} : vector<6x14xf32> to vector<6x10xf32>
      %c1_153 = arith.constant 1 : index
      %c138_154 = arith.constant 138 : index
      %c0_155 = arith.constant 0 : index
      %240 = vector.load %arg5[%c1_153, %c138_154, %c0_155] : memref<2x150x10xf32, #tpu.memory_space<vmem>>, vector<1x6x10xf32>
      %241 = vector.shape_cast %240 : vector<1x6x10xf32> to vector<6x10xf32>
      %242 = vector.shape_cast %239 : vector<6x10xf32> to vector<1x6x10xf32>
      tpu.vector_store %arg5[%c1_153, %c138_154, %c0_155], %242 {strides = array<i32>} : memref<2x150x10xf32, #tpu.memory_space<vmem>>, vector<1x6x10xf32>,
      %243 = vector.extract_strided_slice %46 {offsets = [0, 4], sizes = [6, 10], strides = [1, 1]} : vector<6x14xf32> to vector<6x10xf32>
      %c1_156 = arith.constant 1 : index
      %c144_157 = arith.constant 144 : index
      %c0_158 = arith.constant 0 : index
      %244 = vector.load %arg5[%c1_156, %c144_157, %c0_158] : memref<2x150x10xf32, #tpu.memory_space<vmem>>, vector<1x6x10xf32>
      %245 = vector.shape_cast %244 : vector<1x6x10xf32> to vector<6x10xf32>
      %246 = vector.shape_cast %243 : vector<6x10xf32> to vector<1x6x10xf32>
      tpu.vector_store %arg5[%c1_156, %c144_157, %c0_158], %246 {strides = array<i32>} : memref<2x150x10xf32, #tpu.memory_space<vmem>>, vector<1x6x10xf32>,
      %c0_159 = arith.constant 0 : index
      %c0_160 = arith.constant 0 : index
      %c0_161 = arith.constant 0 : index
      %247 = vector.load %arg5[%c0_159, %c0_160, %c0_161] : memref<2x150x10xf32, #tpu.memory_space<vmem>>, vector<1x150x10xf32>
      %248 = vector.shape_cast %247 : vector<1x150x10xf32> to vector<150x10xf32>
      %cst = arith.constant dense<0.000000e+00> : vector<16x10xf32>
      %249 = tpu.matmul %0, %248, %cst {dimension_numbers = #tpu.dot_dimension_numbers<[1], [0], [0], [1], [0, 0, 1, 1], [], []>} : vector<16x150xf32>, vector<150x10xf32>, vector<16x10xf32> -> vector<16x10xf32>
      %250 = vector.broadcast %1 : vector<16x1xf32> to vector<16x10xf32>
      %251 = arith.addf %249, %250 : vector<16x10xf32>
      %c1_162 = arith.constant 1 : index
      %c0_163 = arith.constant 0 : index
      %c0_164 = arith.constant 0 : index
      %252 = vector.load %arg5[%c1_162, %c0_163, %c0_164] : memref<2x150x10xf32, #tpu.memory_space<vmem>>, vector<1x150x10xf32>
      %253 = vector.shape_cast %252 : vector<1x150x10xf32> to vector<150x10xf32>
      %cst_165 = arith.constant dense<0.000000e+00> : vector<16x10xf32>
      %254 = tpu.matmul %0, %253, %cst_165 {dimension_numbers = #tpu.dot_dimension_numbers<[1], [0], [0], [1], [0, 0, 1, 1], [], []>} : vector<16x150xf32>, vector<150x10xf32>, vector<16x10xf32> -> vector<16x10xf32>
      %255 = vector.broadcast %1 : vector<16x1xf32> to vector<16x10xf32>
      %256 = arith.addf %254, %255 : vector<16x10xf32>
      %cst_166 = arith.constant 0.000000e+00 : f32
      %257 = vector.broadcast %cst_166 : f32 to vector<16x10xf32>
      %258 = arith.maximumf %251, %257 : vector<16x10xf32>
      %cst_167 = arith.constant 0.000000e+00 : f32
      %259 = vector.broadcast %cst_167 : f32 to vector<16x10xf32>
      %260 = arith.maximumf %256, %259 : vector<16x10xf32>
      %261 = arith.maximumf %258, %260 : vector<16x10xf32>
      %cst_168 = arith.constant dense<0.000000e+00> : vector<16x5xf32>
      %262 = tpu.matmul %261, %8, %cst_168 {dimension_numbers = #tpu.dot_dimension_numbers<[1], [0], [0], [1], [0, 0, 1, 1], [], []>} : vector<16x10xf32>, vector<10x5xf32>, vector<16x5xf32> -> vector<16x5xf32>
      %cst_169 = arith.constant dense<0.000000e+00> : vector<16x5xf32>
      %263 = tpu.matmul %261, %15, %cst_169 {dimension_numbers = #tpu.dot_dimension_numbers<[1], [0], [0], [1], [0, 0, 1, 1], [], []>} : vector<16x10xf32>, vector<10x5xf32>, vector<16x5xf32> -> vector<16x5xf32>
      %264 = arith.maximumf %262, %263 : vector<16x5xf32>
      %c0_170 = arith.constant 0 : index
      %265 = arith.index_cast %arg6 : i32 to index
      %c0_171 = arith.constant 0 : index
      %c0_172 = arith.constant 0 : index
      %266 = vector.load %arg4[%c0_170, %265, %c0_171, %c0_172] : memref<1x5x16x5xf32, #tpu.memory_space<vmem>>, vector<1x1x16x5xf32>
      %267 = vector.shape_cast %266 : vector<1x1x16x5xf32> to vector<16x5xf32>
      %268 = vector.shape_cast %264 : vector<16x5xf32> to vector<1x1x16x5xf32>
      tpu.vector_store %arg4[%c0_170, %265, %c0_171, %c0_172], %268 {strides = array<i32>} : memref<1x5x16x5xf32, #tpu.memory_space<vmem>>, vector<1x1x16x5xf32>,
    }
    %c5_i32_5 = arith.constant 5 : i32
    return
  }
  func.func @transform_0(%arg0: i32) -> (i32, i32, i32, i32) {
    %c0_i32 = arith.constant 0 : i32
    %c0_i32_0 = arith.constant 0 : i32
    %c0_i32_1 = arith.constant 0 : i32
    %c0_i32_2 = arith.constant 0 : i32
    return %arg0, %c0_i32, %c0_i32_0, %c0_i32_1 : i32, i32, i32, i32
  }
  func.func @transform_1(%arg0: i32) -> (i32, i32) {
    %c0_i32 = arith.constant 0 : i32
    %c0_i32_0 = arith.constant 0 : i32
    %c0_i32_1 = arith.constant 0 : i32
    return %c0_i32, %c0_i32_0 : i32, i32
  }
  func.func @transform_2(%arg0: i32) -> (i32, i32) {
    %c0_i32 = arith.constant 0 : i32
    %c0_i32_0 = arith.constant 0 : i32
    %c0_i32_1 = arith.constant 0 : i32
    return %c0_i32, %c0_i32_0 : i32, i32
  }
  func.func @transform_3(%arg0: i32) -> (i32, i32, i32, i32) {
    %c0_i32 = arith.constant 0 : i32
    %c0_i32_0 = arith.constant 0 : i32
    %c0_i32_1 = arith.constant 0 : i32
    %c0_i32_2 = arith.constant 0 : i32
    return %arg0, %c0_i32, %c0_i32_0, %c0_i32_1 : i32, i32, i32, i32
  }
}

module attributes {stable_mosaic.version = 11 : i64} {
  func.func @_mlp_kernel(%arg0: i32, %arg1: memref<8x400xf32, #tpu.memory_space<vmem>>, %arg2: memref<400x128xf32, #tpu.memory_space<vmem>>, %arg3: memref<1x128xf32, #tpu.memory_space<vmem>>, %arg4: memref<128x128xf32, #tpu.memory_space<vmem>>, %arg5: memref<1x128xf32, #tpu.memory_space<vmem>>, %arg6: memref<128x128xf32, #tpu.memory_space<vmem>>, %arg7: memref<1x128xf32, #tpu.memory_space<vmem>>, %arg8: memref<8x128xf32, #tpu.memory_space<vmem>>) attributes {dimension_semantics = [#tpu.dimension_semantics<parallel>], iteration_bounds = array<i64: 1>, scalar_prefetch = 0 : i64, scratch_operands = 0 : i64, tpu.core_type = #tpu.core_type<tc>, window_params = [{transform_indices = @transform_0, window_bounds = array<i64: 8, 400>}, {pipeline_mode = #tpu.pipeline_mode<synchronous>, transform_indices = @transform_1, window_bounds = array<i64: 400, 128>}, {pipeline_mode = #tpu.pipeline_mode<synchronous>, transform_indices = @transform_2, window_bounds = array<i64: 1, 128>}, {pipeline_mode = #tpu.pipeline_mode<synchronous>, transform_indices = @transform_3, window_bounds = array<i64: 128, 128>}, {pipeline_mode = #tpu.pipeline_mode<synchronous>, transform_indices = @transform_4, window_bounds = array<i64: 1, 128>}, {pipeline_mode = #tpu.pipeline_mode<synchronous>, transform_indices = @transform_5, window_bounds = array<i64: 128, 128>}, {pipeline_mode = #tpu.pipeline_mode<synchronous>, transform_indices = @transform_6, window_bounds = array<i64: 1, 128>}, {transform_indices = @transform_7, window_bounds = array<i64: 8, 128>}]} {
    %c0 = arith.constant 0 : index
    %c0_0 = arith.constant 0 : index
    %0 = vector.load %arg1[%c0, %c0_0] : memref<8x400xf32, #tpu.memory_space<vmem>>, vector<8x400xf32>
    %c0_1 = arith.constant 0 : index
    %c0_2 = arith.constant 0 : index
    %1 = vector.load %arg2[%c0_1, %c0_2] : memref<400x128xf32, #tpu.memory_space<vmem>>, vector<400x128xf32>
    %cst = arith.constant dense<0.000000e+00> : vector<8x128xf32>
    %2 = tpu.matmul %0, %1, %cst {dimension_numbers = #tpu.dot_dimension_numbers<[1], [0], [0], [1], [0, 0, 1, 1], [], []>} : vector<8x400xf32>, vector<400x128xf32>, vector<8x128xf32> -> vector<8x128xf32>
    %c0_3 = arith.constant 0 : index
    %c0_4 = arith.constant 0 : index
    %3 = vector.load %arg3[%c0_3, %c0_4] : memref<1x128xf32, #tpu.memory_space<vmem>>, vector<1x128xf32>
    %4 = vector.broadcast %3 : vector<1x128xf32> to vector<8x128xf32>
    %5 = arith.addf %2, %4 : vector<8x128xf32>
    %cst_5 = arith.constant 0.000000e+00 : f32
    %6 = vector.broadcast %cst_5 : f32 to vector<8x128xf32>
    %7 = arith.maximumf %5, %6 : vector<8x128xf32>
    %c0_6 = arith.constant 0 : index
    %c0_7 = arith.constant 0 : index
    %8 = vector.load %arg4[%c0_6, %c0_7] : memref<128x128xf32, #tpu.memory_space<vmem>>, vector<128x128xf32>
    %cst_8 = arith.constant dense<0.000000e+00> : vector<8x128xf32>
    %9 = tpu.matmul %7, %8, %cst_8 {dimension_numbers = #tpu.dot_dimension_numbers<[1], [0], [0], [1], [0, 0, 1, 1], [], []>} : vector<8x128xf32>, vector<128x128xf32>, vector<8x128xf32> -> vector<8x128xf32>
    %c0_9 = arith.constant 0 : index
    %c0_10 = arith.constant 0 : index
    %10 = vector.load %arg5[%c0_9, %c0_10] : memref<1x128xf32, #tpu.memory_space<vmem>>, vector<1x128xf32>
    %11 = vector.broadcast %10 : vector<1x128xf32> to vector<8x128xf32>
    %12 = arith.addf %9, %11 : vector<8x128xf32>
    %cst_11 = arith.constant 0.000000e+00 : f32
    %13 = vector.broadcast %cst_11 : f32 to vector<8x128xf32>
    %14 = arith.maximumf %12, %13 : vector<8x128xf32>
    %c0_12 = arith.constant 0 : index
    %c0_13 = arith.constant 0 : index
    %15 = vector.load %arg6[%c0_12, %c0_13] : memref<128x128xf32, #tpu.memory_space<vmem>>, vector<128x128xf32>
    %cst_14 = arith.constant dense<0.000000e+00> : vector<8x128xf32>
    %16 = tpu.matmul %14, %15, %cst_14 {dimension_numbers = #tpu.dot_dimension_numbers<[1], [0], [0], [1], [0, 0, 1, 1], [], []>} : vector<8x128xf32>, vector<128x128xf32>, vector<8x128xf32> -> vector<8x128xf32>
    %c0_15 = arith.constant 0 : index
    %c0_16 = arith.constant 0 : index
    %17 = vector.load %arg7[%c0_15, %c0_16] : memref<1x128xf32, #tpu.memory_space<vmem>>, vector<1x128xf32>
    %18 = vector.broadcast %17 : vector<1x128xf32> to vector<8x128xf32>
    %19 = arith.addf %16, %18 : vector<8x128xf32>
    %c0_17 = arith.constant 0 : index
    %c0_18 = arith.constant 0 : index
    %20 = vector.load %arg8[%c0_17, %c0_18] : memref<8x128xf32, #tpu.memory_space<vmem>>, vector<8x128xf32>
    tpu.vector_store %arg8[%c0_17, %c0_18], %19 {strides = array<i32>} : memref<8x128xf32, #tpu.memory_space<vmem>>, vector<8x128xf32>,
    return
  }
  func.func @transform_0(%arg0: i32) -> (i32, i32) {
    %c0_i32 = arith.constant 0 : i32
    %c0_i32_0 = arith.constant 0 : i32
    return %arg0, %c0_i32 : i32, i32
  }
  func.func @transform_1(%arg0: i32) -> (i32, i32) {
    %c0_i32 = arith.constant 0 : i32
    %c0_i32_0 = arith.constant 0 : i32
    %c0_i32_1 = arith.constant 0 : i32
    return %c0_i32, %c0_i32_0 : i32, i32
  }
  func.func @transform_2(%arg0: i32) -> (i32, i32) {
    %c0_i32 = arith.constant 0 : i32
    %c0_i32_0 = arith.constant 0 : i32
    %c0_i32_1 = arith.constant 0 : i32
    return %c0_i32, %c0_i32_0 : i32, i32
  }
  func.func @transform_3(%arg0: i32) -> (i32, i32) {
    %c0_i32 = arith.constant 0 : i32
    %c0_i32_0 = arith.constant 0 : i32
    %c0_i32_1 = arith.constant 0 : i32
    return %c0_i32, %c0_i32_0 : i32, i32
  }
  func.func @transform_4(%arg0: i32) -> (i32, i32) {
    %c0_i32 = arith.constant 0 : i32
    %c0_i32_0 = arith.constant 0 : i32
    %c0_i32_1 = arith.constant 0 : i32
    return %c0_i32, %c0_i32_0 : i32, i32
  }
  func.func @transform_5(%arg0: i32) -> (i32, i32) {
    %c0_i32 = arith.constant 0 : i32
    %c0_i32_0 = arith.constant 0 : i32
    %c0_i32_1 = arith.constant 0 : i32
    return %c0_i32, %c0_i32_0 : i32, i32
  }
  func.func @transform_6(%arg0: i32) -> (i32, i32) {
    %c0_i32 = arith.constant 0 : i32
    %c0_i32_0 = arith.constant 0 : i32
    %c0_i32_1 = arith.constant 0 : i32
    return %c0_i32, %c0_i32_0 : i32, i32
  }
  func.func @transform_7(%arg0: i32) -> (i32, i32) {
    %c0_i32 = arith.constant 0 : i32
    %c0_i32_0 = arith.constant 0 : i32
    return %arg0, %c0_i32 : i32, i32
  }
}

</mosaic_0001>

<bundles_post_ra>
// kernel: net_forward.4
= control target key start
LH: loop header
LB: loop body
LE: loop exit
PB: predicated region body
PF: predicated region fallthrough
CT: control target
= control target key end

     0   :  { %s1042_s12 = smov 0   ;;  %s1224_s0 = inlined_call_operand.vmem [shape: f32[2,14,6,14], index: 0, kind: input, shape index: {}]   ;;  %s1225_s1 = inlined_call_operand.vmem [shape: f32[16,150], index: 1, kind: input, shape index: {}]   ;;  %s1226_s2 = inlined_call_operand.vmem [shape: f32[16,1], index: 2, kind: input, shape index: {}]   ;;  %s1227_s3 = inlined_call_operand.vmem [shape: f32[2,5,16,5], index: 3, kind: output, shape index: {}]  }
   0x1 LB: > { %s829_s13 = sadd.s32 4294967295, %s1007_s12   ;;  %p833_p0 = scmp.ge.s32.totalorder %s1007_s12, 1  ;;  %s1007_s12 = sphi %s1042_s12, %s13_s12  }
   0x2   : > { %p137_p1 = scmp.lt.s32.totalorder %s1007_s12, 3 }
   0x4   : > { %p138_p2 = pnand %p833_p0, %p137_p1 }
   0x5   : > { %p161_p3 = scmp.lt.s32.totalorder (!%p138_p2), %s829_s13, 1  ;;  %v1053_v0 = vld [vmem:[%s1225_s1] sm:$0xff] (!%p138_p2)  ;;  %v1058_v1 = vld [vmem:[%s1225_s1 + $0x8] sm:$0xff] (!%p138_p2)  ;;  %v1063_v2 = vld [vmem:[%s1225_s1 + $0x10] sm:$0xff] (!%p138_p2)  ;;  %v177_v3 = vlaneseq (!%p138_p2)  ;;  %v1013_v12 = vmov (!%p138_p2), 0.0   ;;  %s1108_s7 = smov (!%p138_p2), 0  }
   0x6   : > { %141 = sbr.rel (%p138_p2) target bundleno = 634 (0x27a), region = 32  ;;  %v1068_v4 = vld [vmem:[%s1225_s1 + $0x18] sm:$0xff] (!%p138_p2)  ;;  %v1073_v5 = vld [vmem:[%s1226_s2] sm:$0xff] (!%p138_p2)  ;;  %v1078_v6 = vld [vmem:[%s1226_s2 + $0x8] sm:$0xff] (!%p138_p2) }
   0x7   : > { %v1080_v7 = vshrl.u32 (!%p138_p2), %v177_v3, 7  ;;  %v181_v8 = vand.u32 (!%p138_p2), 127, %v177_v3 }
   0x9   : > { %v179_v9 = vadd.s32 (!%p138_p2), 8, %v1080_v7  ;;  %v1083_v10 = vmul.u32 (!%p138_p2), 2, %v181_v8 }
   0xb   : > { %vm183_vm0 = vcmp.eq.s32.totalorder (!%p138_p2), %v1080_v7, %v1083_v10  ;;  %vm184_vm1 = vcmp.eq.s32.totalorder (!%p138_p2), %v179_v9, %v1083_v10  ;;  %v1094_v11 = vadd.s32 (!%p138_p2), 1, %v1083_v10 }
   0xc   : > { %v1101_v13 = vsel (!%p138_p2), %vm184_vm1, 1.0, %v1013_v12 }
   0xd   : > { %s1229_s13 = smov (!%p161_p3, %s829_s13), 1  ;;  %vm190_vm2 = vcmp.eq.s32.totalorder %v1080_v7, %v1094_v11  ;;  %vm191_vm3 = vcmp.eq.s32.totalorder %v179_v9, %v1094_v11 }
   0xe   : > { %s968_s26 = smul.u32 112, %s1229_s13  ;;  %v1106_v14 = vsel %vm191_vm3, 1.0, %v1013_v12 }
   0xf   : > { %s969_s27 = smul.u32 80, %s1229_s13 }
  0x10   : > { %s1088_s30 = scalar_lea.vmem %s1224_s0, %s968_s26 }
  0x11   : > { %s1099_s6 = scalar_lea.vmem %s1227_s3, %s969_s27 }
  0x12 LB: >> { %s874_s8 = sshll.u32 %s1011_s7, 4  ;;  %vm226_vm4 = vcmask 78848   ;;  %s1014_s10 = smov 127   ;;  %v1015_v21 = vmov 0.0|0.0   ;;  %vm385_vm5 = vcmask 179200   ;;  %v1019_v22 = vmov 0   ;;  %s1011_s7 = sphi %s1108_s7, %s201_s7  }
  0x13   : >> { %s204_s9 = scalar_lea.vmem %s1088_s30, %s874_s8  ;;  %902 = vmatprep.subr.bf16.mxu0 %v1015_v21  ;;  %929 = vmatprep.subr.bf16.mxu1 %v1015_v21  ;;  %s1016_s11 = smov 126   ;;  %vm392_vm6 = vcmask 1045504   ;;  %vm581_vm7 = vcmask 1041408   ;;  %vm574_vm10 = vcmask 80896   ;;  %vm742_vm11 = vcmask 39936  }
  0x14   : >> { %v844_v15 = vld [vmem:[%s204_s9 + $0x8] sm:$0x3f]  ;;  %v205_v16 = vld [vmem:[%s204_s9] sm:$0x3f]  ;;  %v847_v17 = vld [vmem:[%s204_s9 + $0x10] sm:$0x3f]  ;;  %858 = vmatprep.mubr.msk.f32.mxu0 %vm385_vm5, %v1058_v1  ;;  %861 = vmatprep.mubr.msk.f32.mxu1 %vm385_vm5, %v1058_v1  ;;  %s741_s15 = scalar_lea.vmem %s1099_s6, %s874_s8 }
  0x15   : >> { %247 = vrot.lane.b32.xlu1 %v844_v15, %s1014_s10  ;;  %245 = vst.msk [vmem:[#allocation2 + $0x1e] sm:$0x3f] %vm226_vm4, %v844_v15  ;;  %318 = vst.msk [vmem:[#allocation2 + $0x98] sm:$0x3f] %vm226_vm4, %v844_v15  ;;  %229 = vrot.lane.b32.xlu0 %v205_v16, %s1014_s10  ;;  %v850_v18 = vld [vmem:[%s204_s9 + $0x18] sm:$0x3f] }
  0x16   : >> { %227 = vst.msk [vmem:[#allocation2] sm:$0x3f] %vm226_vm4, %v205_v16  ;;  %263 = vst.msk [vmem:[#allocation2 + $0x3c] sm:$0x3f] %vm226_vm4, %v847_v17  ;;  %v853_v19 = vld [vmem:[%s204_s9 + $0x20] sm:$0x3f]  ;;  %995 = vset.pattern.permute.xlu0 %v1019_v22  ;;  %996 = vset.pattern.permute.xlu1 %v1019_v22 }
  0x17   : >> { %323 = vst.msk [vmem:[#allocation2 + $0xb6] sm:$0x3f] %vm226_vm4, %v847_v17  ;;  %281 = vst.msk [vmem:[#allocation2 + $0x5a] sm:$0x3f] %vm226_vm4, %v850_v18  ;;  %v856_v20 = vld [vmem:[%s204_s9 + $0x28] sm:$0x3f] }
  0x18   : >> { %328 = vst.msk [vmem:[#allocation2 + $0xd4] sm:$0x3f] %vm226_vm4, %v850_v18  ;;  %299 = vst.msk [vmem:[#allocation2 + $0x78] sm:$0x3f] %vm226_vm4, %v853_v19  ;;  %s1017_s13 = smov 124   ;;  %s1018_s14 = smov 125  }
  0x19   : >> { %333 = vst.msk [vmem:[#allocation2 + $0xf2] sm:$0x3f] %vm226_vm4, %v853_v19  ;;  %338 = vst.msk [vmem:[#allocation2 + $0x110] sm:$0x3f] %vm226_vm4, %v856_v20  ;;  %251 = vrot.lane.b32.xlu1 %v844_v15, %s1016_s11  ;;  %233 = vrot.lane.b32.xlu0 %v205_v16, %s1016_s11  ;;  %s201_s7 = sadd.s32 1, %s1011_s7  }
  0x1a   : >> { %vm957_vm8 = vmpackc.low %vm581_vm7, %vm183_vm0  ;;  %p198_p4 = scmp.ge.s32.totalorder %s201_s7, 5  }
  0x1b   : >> { %vm963_vm9 = vmpackc.low %vm581_vm7, %vm190_vm2 }
  0x1d   : >> { %241 = vrot.lane.b32.xlu1 %v205_v16, %s1017_s13  ;;  %237 = vrot.lane.b32.xlu0 %v205_v16, %s1018_s14 }
  0x21   : >> { %259 = vrot.lane.b32.xlu1 %v844_v15, %s1017_s13  ;;  %255 = vrot.lane.b32.xlu0 %v844_v15, %s1018_s14 }
  0x25   : >> { %269 = vrot.lane.b32.xlu1 %v847_v17, %s1016_s11  ;;  %265 = vrot.lane.b32.xlu0 %v847_v17, %s1014_s10 }
  0x29   : >> { %277 = vrot.lane.b32.xlu1 %v847_v17, %s1017_s13  ;;  %273 = vrot.lane.b32.xlu0 %v847_v17, %s1018_s14 }
  0x2d   : >> { %287 = vrot.lane.b32.xlu1 %v850_v18, %s1016_s11  ;;  %283 = vrot.lane.b32.xlu0 %v850_v18, %s1014_s10 }
  0x31   : >> { %295 = vrot.lane.b32.xlu1 %v850_v18, %s1017_s13  ;;  %291 = vrot.lane.b32.xlu0 %v850_v18, %s1018_s14 }
  0x35   : >> { %305 = vrot.lane.b32.xlu1 %v853_v19, %s1016_s11  ;;  %301 = vrot.lane.b32.xlu0 %v853_v19, %s1014_s10 }
  0x39   : >> { %313 = vrot.lane.b32.xlu1 %v853_v19, %s1017_s13  ;;  %309 = vrot.lane.b32.xlu0 %v853_v19, %s1018_s14 }
  0x3d   : >> { %344 = vrot.lane.b32.xlu1 %v856_v20, %s1016_s11  ;;  %340 = vrot.lane.b32.xlu0 %v856_v20, %s1014_s10 }
  0x41   : >> { %348 = vrot.lane.b32.xlu0 %v856_v20, %s1018_s14  ;;  %352 = vrot.lane.b32.xlu1 %v856_v20, %s1017_s13 }
  0x45   : >> { %377 = vperm.xlu0 %995, %v1073_v5   ;;  %382 = vperm.xlu1 %996, %v1078_v6  }
  0x87   : >> { %v248_v23 = vpop.permute.xlu1 %247  ;;  %v230_v24 = vpop.permute.xlu0 %229 }
  0x88   : >> { %250 = vst.msk [vmem:[#allocation2 + $0x24] sm:$0x3f] %vm226_vm4, %v248_v23  ;;  %319 = vst.msk [vmem:[#allocation2 + $0x9e] sm:$0x3f] %vm226_vm4, %v248_v23 }
  0x89   : >> { %232 = vst.msk [vmem:[#allocation2 + $0x6] sm:$0x3f] %vm226_vm4, %v230_v24 }
  0x8b   : >> { %v252_v25 = vpop.permute.xlu1 %251  ;;  %v234_v26 = vpop.permute.xlu0 %233 }
  0x8c   : >> { %254 = vst.msk [vmem:[#allocation2 + $0x2a] sm:$0x3f] %vm226_vm4, %v252_v25  ;;  %320 = vst.msk [vmem:[#allocation2 + $0xa4] sm:$0x3f] %vm226_vm4, %v252_v25 }
  0x8d   : >> { %236 = vst.msk [vmem:[#allocation2 + $0xc] sm:$0x3f] %vm226_vm4, %v234_v26 }
  0x8f   : >> { %v242_v27 = vpop.permute.xlu1 %241  ;;  %v238_v28 = vpop.permute.xlu0 %237  ;;  %v471_v29 = vld [vmem:[#allocation2 + $0x98] sm:$0xff]  ;;  %v360_v42 = vld [vmem:[#allocation2 + $0x20] sm:$0xff] }
  0x90   : >> { %244 = vst.msk [vmem:[#allocation2 + $0x18] sm:$0x3f] %vm226_vm4, %v242_v27  ;;  %240 = vst.msk [vmem:[#allocation2 + $0x12] sm:$0x3f] %vm226_vm4, %v238_v28  ;;  %v356_v32 = vld [vmem:[#allocation2] sm:$0xff] }
  0x93   : >> { %v260_v30 = vpop.permute.xlu1 %259  ;;  %v256_v31 = vpop.permute.xlu0 %255  ;;  %v472_v34 = vld [vmem:[#allocation2 + $0xa0] sm:$0xff]  ;;  %v361_v43 = vld [vmem:[#allocation2 + $0x28] sm:$0xff] }
  0x94   : >> { %v357_v33 = vld [vmem:[#allocation2 + $0x8] sm:$0xff]  ;;  %262 = vst.msk [vmem:[#allocation2 + $0x36] sm:$0x3f] %vm226_vm4, %v260_v30  ;;  %322 = vst.msk [vmem:[#allocation2 + $0xb0] sm:$0x3f] %vm226_vm4, %v260_v30  ;;  %v930_v36 = vpack.c.bf16 %v472_v34, %v471_v29  ;;  %v909_v48 = vpack.c.bf16 %v361_v43, %v360_v42  ;;  %v1020_v43 = vmov 0.0  }
  0x95   : >> { %258 = vst.msk [vmem:[#allocation2 + $0x30] sm:$0x3f] %vm226_vm4, %v256_v31  ;;  %321 = vst.msk [vmem:[#allocation2 + $0xaa] sm:$0x3f] %vm226_vm4, %v256_v31  ;;  %v903_v35 = vpack.c.bf16 %v357_v33, %v356_v32 }
  0x96   : >> { %931 = vmatpush1.bf16.msra.mxu1 %v930_v36 }
  0x97   : >> { %904 = vmatpush1.bf16.msra.mxu0 %v903_v35  ;;  %v270_v37 = vpop.permute.xlu1 %269  ;;  %v266_v38 = vpop.permute.xlu0 %265  ;;  %v358_v39 = vld [vmem:[#allocation2 + $0x10] sm:$0xff]  ;;  %v359_v40 = vld [vmem:[#allocation2 + $0x18] sm:$0xff]  ;;  %932 = vmatprep.subr.bf16.mxu1 %v1015_v21 }
  0x98   : >> { %905 = vmatprep.subr.bf16.mxu0 %v1015_v21  ;;  %272 = vst.msk [vmem:[#allocation2 + $0x48] sm:$0x3f] %vm226_vm4, %v270_v37  ;;  %325 = vst.msk [vmem:[#allocation2 + $0xc2] sm:$0x3f] %vm226_vm4, %v270_v37  ;;  %v906_v41 = vpack.c.bf16 %v359_v40, %v358_v39 }
  0x99   : >> { %268 = vst.msk [vmem:[#allocation2 + $0x42] sm:$0x3f] %vm226_vm4, %v266_v38  ;;  %324 = vst.msk [vmem:[#allocation2 + $0xbc] sm:$0x3f] %vm226_vm4, %v266_v38 }
  0x9b   : >> { %907 = vmatpush1.bf16.msra.mxu0 %v906_v41  ;;  %v278_v44 = vpop.permute.xlu1 %277  ;;  %v274_v45 = vpop.permute.xlu0 %273  ;;  %v474_v47 = vld [vmem:[#allocation2 + $0xb0] sm:$0xff]  ;;  %v363_v51 = vld [vmem:[#allocation2 + $0x38] sm:$0xff] }
  0x9c   : >> { %908 = vmatprep.subr.bf16.mxu0 %v1015_v21  ;;  %v473_v46 = vld [vmem:[#allocation2 + $0xa8] sm:$0xff]  ;;  %280 = vst.msk [vmem:[#allocation2 + $0x54] sm:$0x3f] %vm226_vm4, %v278_v44  ;;  %327 = vst.msk [vmem:[#allocation2 + $0xce] sm:$0x3f] %vm226_vm4, %v278_v44  ;;  %v362_v50 = vld [vmem:[#allocation2 + $0x30] sm:$0xff] }
  0x9d   : >> { %276 = vst.msk [vmem:[#allocation2 + $0x4e] sm:$0x3f] %vm226_vm4, %v274_v45  ;;  %326 = vst.msk [vmem:[#allocation2 + $0xc8] sm:$0x3f] %vm226_vm4, %v274_v45  ;;  %v933_v49 = vpack.c.bf16 %v474_v47, %v473_v46  ;;  %v912_v56 = vpack.c.bf16 %v363_v51, %v362_v50 }
  0x9f   : >> { %910 = vmatpush1.bf16.msra.mxu0 %v909_v48  ;;  %934 = vmatpush1.bf16.msra.mxu1 %v933_v49  ;;  %v288_v52 = vpop.permute.xlu1 %287  ;;  %v284_v53 = vpop.permute.xlu0 %283 }
  0xa0   : >> { %911 = vmatprep.subr.bf16.mxu0 %v1015_v21  ;;  %935 = vmatprep.subr.bf16.mxu1 %v1015_v21  ;;  %v475_v54 = vld [vmem:[#allocation2 + $0xb8] sm:$0xff]  ;;  %v476_v55 = vld [vmem:[#allocation2 + $0xc0] sm:$0xff]  ;;  %290 = vst.msk [vmem:[#allocation2 + $0x66] sm:$0x3f] %vm226_vm4, %v288_v52  ;;  %330 = vst.msk [vmem:[#allocation2 + $0xe0] sm:$0x3f] %vm226_vm4, %v288_v52 }
  0xa1   : >> { %286 = vst.msk [vmem:[#allocation2 + $0x60] sm:$0x3f] %vm226_vm4, %v284_v53  ;;  %329 = vst.msk [vmem:[#allocation2 + $0xda] sm:$0x3f] %vm226_vm4, %v284_v53  ;;  %v936_v57 = vpack.c.bf16 %v476_v55, %v475_v54  ;;  %v364_v58 = vld [vmem:[#allocation2 + $0x40] sm:$0xff] }
  0xa3   : >> { %913 = vmatpush1.bf16.msra.mxu0 %v912_v56  ;;  %937 = vmatpush1.bf16.msra.mxu1 %v936_v57  ;;  %v296_v59 = vpop.permute.xlu1 %295  ;;  %v292_v60 = vpop.permute.xlu0 %291  ;;  %v478_v63 = vld [vmem:[#allocation2 + $0xd0] sm:$0xff]  ;;  %v367_v12 = vld [vmem:[#allocation2 + $0x58] sm:$0xff] }
  0xa4   : >> { %914 = vmatprep.subr.bf16.mxu0 %v1015_v21  ;;  %938 = vmatprep.subr.bf16.mxu1 %v1015_v21  ;;  %v365_v61 = vld [vmem:[#allocation2 + $0x48] sm:$0xff]  ;;  %298 = vst.msk [vmem:[#allocation2 + $0x72] sm:$0x3f] %vm226_vm4, %v296_v59  ;;  %332 = vst.msk [vmem:[#allocation2 + $0xec] sm:$0x3f] %vm226_vm4, %v296_v59  ;;  %v366_v9 = vld [vmem:[#allocation2 + $0x50] sm:$0xff] }
  0xa5   : >> { %v477_v62 = vld [vmem:[#allocation2 + $0xc8] sm:$0xff]  ;;  %294 = vst.msk [vmem:[#allocation2 + $0x6c] sm:$0x3f] %vm226_vm4, %v292_v60  ;;  %331 = vst.msk [vmem:[#allocation2 + $0xe6] sm:$0x3f] %vm226_vm4, %v292_v60  ;;  %v915_v3 = vpack.c.bf16 %v365_v61, %v364_v58  ;;  %v918_v17 = vpack.c.bf16 %v367_v12, %v366_v9 }
  0xa6   : >> { %v939_v8 = vpack.c.bf16 %v478_v63, %v477_v62 }
  0xa7   : >> { %916 = vmatpush1.bf16.msra.mxu0 %v915_v3  ;;  %v306_v15 = vpop.permute.xlu1 %305  ;;  %v302_v16 = vpop.permute.xlu0 %301 }
  0xa8   : >> { %940 = vmatpush1.bf16.msra.mxu1 %v939_v8  ;;  %917 = vmatprep.subr.bf16.mxu0 %v1015_v21  ;;  %308 = vst.msk [vmem:[#allocation2 + $0x84] sm:$0x3f] %vm226_vm4, %v306_v15  ;;  %335 = vst.msk [vmem:[#allocation2 + $0xfe] sm:$0x3f] %vm226_vm4, %v306_v15  ;;  %v368_v18 = vld [vmem:[#allocation2 + $0x60] sm:$0xff]  ;;  %v479_v23 = vld [vmem:[#allocation2 + $0xd8] sm:$0xff] }
  0xa9   : >> { %941 = vmatprep.subr.bf16.mxu1 %v1015_v21  ;;  %304 = vst.msk [vmem:[#allocation2 + $0x7e] sm:$0x3f] %vm226_vm4, %v302_v16  ;;  %334 = vst.msk [vmem:[#allocation2 + $0xf8] sm:$0x3f] %vm226_vm4, %v302_v16 }
  0xab   : >> { %919 = vmatpush1.bf16.msra.mxu0 %v918_v17  ;;  %v314_v19 = vpop.permute.xlu1 %313  ;;  %v310_v20 = vpop.permute.xlu0 %309  ;;  %v482_v28 = vld [vmem:[#allocation2 + $0xf0] sm:$0xff] }
  0xac   : >> { %920 = vmatprep.subr.bf16.mxu0 %v1015_v21  ;;  %v369_v22 = vld [vmem:[#allocation2 + $0x68] sm:$0xff]  ;;  %v480_v24 = vld [vmem:[#allocation2 + $0xe0] sm:$0xff]  ;;  %316 = vst.msk [vmem:[#allocation2 + $0x90] sm:$0x3f] %vm226_vm4, %v314_v19  ;;  %337 = vst.msk [vmem:[#allocation2 + $0x10a] sm:$0x3f] %vm226_vm4, %v314_v19 }
  0xad   : >> { %312 = vst.msk [vmem:[#allocation2 + $0x8a] sm:$0x3f] %vm226_vm4, %v310_v20  ;;  %336 = vst.msk [vmem:[#allocation2 + $0x104] sm:$0x3f] %vm226_vm4, %v310_v20  ;;  %v921_v25 = vpack.c.bf16 %v369_v22, %v368_v18  ;;  %v942_v26 = vpack.c.bf16 %v480_v24, %v479_v23  ;;  %v481_v27 = vld [vmem:[#allocation2 + $0xe8] sm:$0xff]  ;;  %v370_v31 = vld [vmem:[#allocation2 + $0x70] sm:$0xff] }
  0xae   : >> { %v945_v34 = vpack.c.bf16 %v482_v28, %v481_v27 }
  0xaf   : >> { %922 = vmatpush1.bf16.msra.mxu0 %v921_v25  ;;  %943 = vmatpush1.bf16.msra.mxu1 %v942_v26  ;;  %v345_v29 = vpop.permute.xlu1 %344  ;;  %v341_v30 = vpop.permute.xlu0 %340 }
  0xb0   : >> { %923 = vmatprep.subr.bf16.mxu0 %v1015_v21  ;;  %944 = vmatprep.subr.bf16.mxu1 %v1015_v21  ;;  %v371_v32 = vld [vmem:[#allocation2 + $0x78] sm:$0xff]  ;;  %347 = vst.msk [vmem:[#allocation2 + $0x11c] sm:$0x3f] %vm226_vm4, %v345_v29  ;;  %343 = vst.msk [vmem:[#allocation2 + $0x116] sm:$0x3f] %vm226_vm4, %v341_v30  ;;  %v372_v35 = vld [vmem:[#allocation2 + $0x80] sm:$0xff] }
  0xb1   : >> { %v924_v33 = vpack.c.bf16 %v371_v32, %v370_v31  ;;  %v483_v38 = vld [vmem:[#allocation2 + $0xf8] sm:$0xff] }
  0xb3   : >> { %925 = vmatpush1.bf16.msra.mxu0 %v924_v33  ;;  %946 = vmatpush1.bf16.msra.mxu1 %v945_v34  ;;  %v349_v36 = vpop.permute.xlu0 %348  ;;  %v353_v40 = vpop.permute.xlu1 %352  ;;  %v374_v47 = vld [vmem:[#allocation2 + $0x90] sm:$0x3f] }
  0xb4   : >> { %926 = vmatprep.subr.bf16.mxu0 %v1015_v21  ;;  %947 = vmatprep.subr.bf16.mxu1 %v1015_v21  ;;  %v373_v37 = vld [vmem:[#allocation2 + $0x88] sm:$0xff]  ;;  %v484_v39 = vld [vmem:[#allocation2 + $0x100] sm:$0xff]  ;;  %351 = vst.msk [vmem:[#allocation2 + $0x122] sm:$0x3f] %vm226_vm4, %v349_v36  ;;  %355 = vst.msk [vmem:[#allocation2 + $0x128] sm:$0x3f] %vm226_vm4, %v353_v40 }
  0xb5   : >> { %v927_v41 = vpack.c.bf16 %v373_v37, %v372_v35  ;;  %v948_v42 = vpack.c.bf16 %v484_v39, %v483_v38  ;;  %v485_v44 = vld [vmem:[#allocation2 + $0x108] sm:$0xff] }
  0xb7   : >> { %928 = vmatpush1.bf16.msra.mxu0 %v927_v41  ;;  %949 = vmatpush1.bf16.msra.mxu1 %v948_v42  ;;  %v486_v45 = vld [vmem:[#allocation2 + $0x110] sm:$0xff]  ;;  %v487_v48 = vld [vmem:[#allocation2 + $0x118] sm:$0xff] }
  0xb8   : >> { %432 = vmatprep.subr.mxu0 %v1020_v43  ;;  %950 = vmatprep.subr.bf16.mxu1 %v1015_v21  ;;  %v951_v46 = vpack.c.bf16 %v486_v45, %v485_v44 }
  0xbb   : >> { %857 = vmatpush1.msk.msra.mxu0 %vm392_vm6, %v374_v47  ;;  %952 = vmatpush1.bf16.msra.mxu1 %v951_v46  ;;  %v488_v49 = vld [vmem:[#allocation2 + $0x120] sm:$0xff]  ;;  %v489_v51 = vld [vmem:[#allocation2 + $0x128] sm:$0x3f] }
  0xbc   : >> { %953 = vmatprep.subr.bf16.mxu1 %v1015_v21  ;;  %461 = vmatmul.mubr.f32.vlgmr.msra.gmra.mrb[0].mxu0 %v1053_v0  ;;  %v954_v50 = vpack.c.bf16 %v488_v49, %v487_v48  ;;  %v1021_v21 = vmov 1.0  }
  0xbd   : >> { %859 = vmatprep.mubr.msk.f32.mxu0 %vm385_vm5, %v1068_v4  ;;  %v956_v52 = vpack.c.bf16 %v1101_v13, %v1021_v21  ;;  %v962_v53 = vpack.c.bf16 %v1106_v14, %v1021_v21 }
  0xbf   : >> { %955 = vmatpush1.bf16.msra.mxu1 %v954_v50  ;;  %958 = vmatprep.subr.msk.bf16.mxu0 %vm957_vm8, %v956_v52 }
  0xc0   : >> { %529 = vmatprep.subr.mxu1 %v1020_v43  ;;  %466 = vmatmul.mubr.f32.gmra.mrb[2].mxu0 %v1063_v2 }
  0xc1   : >> { %961 = vmatpush3.bf16.msk.msra.mxu0 %vm957_vm8, %v956_v52 }
  0xc3   : >> { %860 = vmatpush1.msk.msra.mxu1 %vm392_vm6, %v489_v51 }
  0xc4   : >> { %558 = vmatmul.mubr.f32.vlgmr.msra.gmra.mrb[0].mxu1 %v1053_v0  ;;  %964 = vmatprep.subr.msk.bf16.mxu1 %vm963_vm9, %v962_v53  ;;  %v378_v56 = vpop.permute.xlu0 %377  ;;  %v383_v60 = vpop.permute.xlu1 %382 }
  0xc5   : >> { %862 = vmatprep.mubr.msk.f32.mxu1 %vm385_vm5, %v1068_v4  ;;  %967 = vmatpush3.bf16.msk.msra.mxu1 %vm963_vm9, %v962_v53 }
  0xc8   : >> { %563 = vmatmul.mubr.f32.gmra.mrb[2].mxu1 %v1063_v2 }
 0x18f   : >> { %v462_v54 = vpop.f32.mrb[0].mxu0 }
 0x190   : >> { %v464_v55 = vpop.f32.mrb[1].mxu0  ;;  %v463_v58 = vadd.f32 %v462_v54, %v378_v56 }
 0x192   : >> { %v568_v63 = vmax.f32 %v463_v58, 0.0 }
 0x193   : >> { %v467_v57 = vpop.f32.mrb[2].mxu0 }
 0x194   : >> { %v469_v59 = vpop.f32.mrb[3].mxu0  ;;  %v468_v8 = vadd.f32 %v467_v57, %v383_v60 }
 0x196   : >> { %v569_v16 = vmax.f32 %v468_v8, 0.0 }
 0x197   : >> { %v559_v61 = vpop.f32.mrb[0].mxu1 }
 0x198   : >> { %v560_v62 = vadd.f32 %v559_v61, %v378_v56  ;;  %v561_v3 = vpop.f32.mrb[1].mxu1 }
 0x19a   : >> { %v570_v9 = vmax.f32 %v560_v62, 0.0 }
 0x19b   : >> { %v564_v12 = vpop.f32.mrb[2].mxu1 }
 0x19c   : >> { %v572_v15 = vmax.f32 %v568_v63, %v570_v9  ;;  %v565_v17 = vadd.f32 %v564_v12, %v383_v60  ;;  %v566_v18 = vpop.f32.mrb[3].mxu1 }
 0x19e   : >> { %v571_v19 = vmax.f32 %v565_v17, 0.0  ;;  %892 = vmatprep.mubr.msk.f32.mxu0 %vm574_vm10, %v572_v15  ;;  %899 = vmatprep.mubr.msk.f32.mxu1 %vm574_vm10, %v572_v15 }
 0x1a0   : >> { %v573_v20 = vmax.f32 %v569_v16, %v571_v19 }
 0x1a2   : >> { %893 = vmatmul.mubr.msk.f32.vlgmr.msra.gmra.mrb[4].mxu0 %vm574_vm10, %v573_v20  ;;  %900 = vmatmul.mubr.msk.f32.vlgmr.msra.gmra.mrb[4].mxu1 %vm574_vm10, %v573_v20 }
 0x273   : > { %200 = sbr.rel (!%p198_p4) target bundleno = 18 (0x12), region = 77 }
 0x275   : >> { %v894_v22 = vpop.f32.mrb[4].mxu0  ;;  %v901_v23 = vpop.f32.mrb[4].mxu1 }
 0x276   : >> { %v739_v24 = vmax.f32 %v894_v22, %v901_v23  ;;  %v651_v25 = vpop.f32.mrb[5].mxu0  ;;  %v729_v26 = vpop.f32.mrb[5].mxu1 }
 0x277   : >> { %v738_v27 = vmax.f32 %v651_v25, %v729_v26 }
 0x278   : >> { %744 = vst.msk [vmem:[%s741_s15 + $0x8] sm:$0xff] %vm742_vm11, %v739_v24 }
 0x279   : >> { %743 = vst.msk [vmem:[%s741_s15] sm:$0xff] %vm742_vm11, %v738_v27 }
 0x27a PF: > { %s13_s12 = sadd.s32 1, %s1007_s12  }
 0x27b   : > { %p10_p5 = scmp.ge.s32.totalorder %s13_s12, 4  }
 0x27d   :  { %12 = sbr.rel (!%p10_p5) target bundleno = 1 (0x1), region = 88 }

// kernel: net_forward.5
= control target key start
LH: loop header
LB: loop body
LE: loop exit
PB: predicated region body
PF: predicated region fallthrough
CT: control target
= control target key end

     0   :  { %v677_v2 = vmov 0.0|0.0   ;;  %vm87_vm0 = vcmask 130048   ;;  %vm678_vm1 = vmmov 0   ;;  %s1016_s1 = inlined_call_operand.vmem [shape: f32[400,128], index: 1, kind: input, shape index: {}]   ;;  %s1017_s0 = inlined_call_operand.vmem [shape: f32[8,400], index: 0, kind: input, shape index: {}]   ;;  %s1018_s3 = inlined_call_operand.vmem [shape: f32[128,128], index: 3, kind: input, shape index: {}]   ;;  %s1019_s5 = inlined_call_operand.vmem [shape: f32[128,128], index: 5, kind: input, shape index: {}]   ;;  %s1020_s2 = inlined_call_operand.vmem [shape: f32[1,128], index: 2, kind: input, shape index: {}]   ;;  %s1021_s4 = inlined_call_operand.vmem [shape: f32[1,128], index: 4, kind: input, shape index: {}]   ;;  %s1022_s6 = inlined_call_operand.vmem [shape: f32[1,128], index: 6, kind: input, shape index: {}]   ;;  %s1023_s7 = inlined_call_operand.vmem [shape: f32[8,128], index: 7, kind: output, shape index: {}]  }
   0x1   :  { %v46_v0 = vld [vmem:[%s1016_s1 + $0x80] sm:$0xff]  ;;  %v47_v1 = vld [vmem:[%s1016_s1 + $0x88] sm:$0xff]  ;;  %599 = vmatprep.subr.bf16.mxu1 %v677_v2  ;;  %v48_v10 = vld [vmem:[%s1016_s1 + $0x90] sm:$0xff] }
   0x2   :  { %v30_v3 = vld [vmem:[%s1016_s1] sm:$0xff]  ;;  %v567_v4 = vpack.c.bf16 %v47_v1, %v46_v0  ;;  %v31_v5 = vld [vmem:[%s1016_s1 + $0x8] sm:$0xff]  ;;  %v49_v11 = vld [vmem:[%s1016_s1 + $0x98] sm:$0xff] }
   0x3   :  { %v62_v6 = vld [vmem:[%s1016_s1 + $0x100] sm:$0xff]  ;;  %v63_v7 = vld [vmem:[%s1016_s1 + $0x108] sm:$0xff]  ;;  %v569_v8 = vpack.c.bf16 %v31_v5, %v30_v3  ;;  %v32_v12 = vld [vmem:[%s1016_s1 + $0x10] sm:$0xff]  ;;  %v571_v13 = vpack.c.bf16 %v49_v11, %v48_v10 }
   0x4   :  { %v600_v9 = vpack.c.bf16 %v63_v7, %v62_v6  ;;  %568 = vmatprep.subr.bf16.mxu0 %v567_v4  ;;  %v33_v14 = vld [vmem:[%s1016_s1 + $0x18] sm:$0xff]  ;;  %v64_v15 = vld [vmem:[%s1016_s1 + $0x110] sm:$0xff]  ;;  %v50_v19 = vld [vmem:[%s1016_s1 + $0xa0] sm:$0xff] }
   0x5   :  { %v65_v16 = vld [vmem:[%s1016_s1 + $0x118] sm:$0xff]  ;;  %570 = vmatpush3.bf16.msra.mxu0 %v569_v8  ;;  %v573_v17 = vpack.c.bf16 %v33_v14, %v32_v12  ;;  %v51_v20 = vld [vmem:[%s1016_s1 + $0xa8] sm:$0xff]  ;;  %v34_v21 = vld [vmem:[%s1016_s1 + $0x20] sm:$0xff] }
   0x6   :  { %601 = vmatpush1.bf16.msra.mxu1 %v600_v9  ;;  %v603_v18 = vpack.c.bf16 %v65_v16, %v64_v15  ;;  %572 = vmatprep.subr.bf16.mxu0 %v571_v13  ;;  %v575_v22 = vpack.c.bf16 %v51_v20, %v50_v19  ;;  %v35_v23 = vld [vmem:[%s1016_s1 + $0x28] sm:$0xff]  ;;  %v66_v24 = vld [vmem:[%s1016_s1 + $0x120] sm:$0xff]  ;;  %v52_v26 = vld [vmem:[%s1016_s1 + $0xb0] sm:$0xff] }
   0x7   :  { %602 = vmatprep.subr.bf16.mxu1 %v677_v2  ;;  %v67_v25 = vld [vmem:[%s1016_s1 + $0x128] sm:$0xff]  ;;  %v53_v27 = vld [vmem:[%s1016_s1 + $0xb8] sm:$0xff]  ;;  %v577_v28 = vpack.c.bf16 %v35_v23, %v34_v21  ;;  %v36_v30 = vld [vmem:[%s1016_s1 + $0x30] sm:$0xff] }
   0x8   :  { %v606_v29 = vpack.c.bf16 %v67_v25, %v66_v24  ;;  %v579_v31 = vpack.c.bf16 %v53_v27, %v52_v26  ;;  %v37_v32 = vld [vmem:[%s1016_s1 + $0x38] sm:$0xff]  ;;  %v68_v33 = vld [vmem:[%s1016_s1 + $0x130] sm:$0xff]  ;;  %v54_v35 = vld [vmem:[%s1016_s1 + $0xc0] sm:$0xff] }
   0x9   :  { %574 = vmatpush3.bf16.msra.mxu0 %v573_v17  ;;  %v69_v34 = vld [vmem:[%s1016_s1 + $0x138] sm:$0xff]  ;;  %v55_v36 = vld [vmem:[%s1016_s1 + $0xc8] sm:$0xff]  ;;  %v581_v37 = vpack.c.bf16 %v37_v32, %v36_v30  ;;  %v38_v39 = vld [vmem:[%s1016_s1 + $0x40] sm:$0xff] }
   0xa   :  { %604 = vmatpush1.bf16.msra.mxu1 %v603_v18  ;;  %576 = vmatprep.subr.bf16.mxu0 %v575_v22  ;;  %v609_v38 = vpack.c.bf16 %v69_v34, %v68_v33  ;;  %v583_v40 = vpack.c.bf16 %v55_v36, %v54_v35  ;;  %v39_v41 = vld [vmem:[%s1016_s1 + $0x48] sm:$0xff]  ;;  %v70_v42 = vld [vmem:[%s1016_s1 + $0x140] sm:$0xff]  ;;  %v56_v44 = vld [vmem:[%s1016_s1 + $0xd0] sm:$0xff] }
   0xb   :  { %605 = vmatprep.subr.bf16.mxu1 %v677_v2  ;;  %v71_v43 = vld [vmem:[%s1016_s1 + $0x148] sm:$0xff]  ;;  %v57_v45 = vld [vmem:[%s1016_s1 + $0xd8] sm:$0xff]  ;;  %v585_v46 = vpack.c.bf16 %v39_v41, %v38_v39  ;;  %v40_v48 = vld [vmem:[%s1016_s1 + $0x50] sm:$0xff]  ;;  %v679_v41 = vmov 0.0  }
   0xc   :  { %v612_v47 = vpack.c.bf16 %v71_v43, %v70_v42  ;;  %v41_v49 = vld [vmem:[%s1016_s1 + $0x58] sm:$0xff]  ;;  %v27_v50 = vld [vmem:[%s1017_s0 + $0x8] sm:$0xff]  ;;  %v587_v51 = vpack.c.bf16 %v57_v45, %v56_v44  ;;  %v72_v52 = vld [vmem:[%s1016_s1 + $0x150] sm:$0xff] }
   0xd   :  { %578 = vmatpush3.bf16.msra.mxu0 %v577_v28  ;;  %v73_v53 = vld [vmem:[%s1016_s1 + $0x158] sm:$0xff]  ;;  %v58_v55 = vld [vmem:[%s1016_s1 + $0xe0] sm:$0xff]  ;;  %v59_v56 = vld [vmem:[%s1016_s1 + $0xe8] sm:$0xff]  ;;  %155 = vmatprep.mubr.f32.mxu0 %v27_v50  ;;  %v589_v57 = vpack.c.bf16 %v41_v49, %v40_v48 }
   0xe   :  { %607 = vmatpush1.bf16.msra.mxu1 %v606_v29  ;;  %580 = vmatprep.subr.bf16.mxu0 %v579_v31  ;;  %v29_v54 = vld [vmem:[%s1017_s0 + $0x18] sm:$0xff]  ;;  %v615_v58 = vpack.c.bf16 %v73_v53, %v72_v52  ;;  %v42_v59 = vld [vmem:[%s1016_s1 + $0x60] sm:$0xff]  ;;  %v591_v60 = vpack.c.bf16 %v59_v56, %v58_v55  ;;  %v43_v61 = vld [vmem:[%s1016_s1 + $0x68] sm:$0xff] }
   0xf   :  { %608 = vmatprep.subr.bf16.mxu1 %v677_v2  ;;  %425 = vmatprep.mubr.msk.f32.mxu1 %vm87_vm0, %v29_v54  ;;  %v74_v62 = vld [vmem:[%s1016_s1 + $0x160] sm:$0xff]  ;;  %v75_v63 = vld [vmem:[%s1016_s1 + $0x168] sm:$0xff]  ;;  %v60_v0 = vld [vmem:[%s1016_s1 + $0xf0] sm:$0xff]  ;;  %v593_v3 = vpack.c.bf16 %v43_v61, %v42_v59 }
  0x10   :  { %v61_v1 = vld [vmem:[%s1016_s1 + $0xf8] sm:$0xff]  ;;  %v618_v4 = vpack.c.bf16 %v75_v63, %v74_v62  ;;  %v44_v5 = vld [vmem:[%s1016_s1 + $0x70] sm:$0xff]  ;;  %v78_v12 = vld [vmem:[%s1016_s1 + $0x180] sm:$0xff] }
  0x11   :  { %582 = vmatpush3.bf16.msra.mxu0 %v581_v37  ;;  %v595_v6 = vpack.c.bf16 %v61_v1, %v60_v0  ;;  %v45_v7 = vld [vmem:[%s1016_s1 + $0x78] sm:$0xff]  ;;  %v76_v8 = vld [vmem:[%s1016_s1 + $0x170] sm:$0xff]  ;;  %v79_v13 = vld [vmem:[%s1016_s1 + $0x188] sm:$0xff] }
  0x12   :  { %610 = vmatpush1.bf16.msra.mxu1 %v609_v38  ;;  %584 = vmatprep.subr.bf16.mxu0 %v583_v40  ;;  %v77_v9 = vld [vmem:[%s1016_s1 + $0x178] sm:$0xff]  ;;  %v597_v10 = vpack.c.bf16 %v45_v7, %v44_v5  ;;  %v232_v14 = vld [vmem:[%s1018_s3] sm:$0xff]  ;;  %v233_v15 = vld [vmem:[%s1018_s3 + $0x8] sm:$0xff]  ;;  %v624_v17 = vpack.c.bf16 %v79_v13, %v78_v12 }
  0x13   :  { %611 = vmatprep.subr.bf16.mxu1 %v677_v2  ;;  %v621_v11 = vpack.c.bf16 %v77_v9, %v76_v8  ;;  %v26_v16 = vld [vmem:[%s1017_s0] sm:$0xff]  ;;  %v627_v18 = vpack.c.bf16 %v233_v15, %v232_v14  ;;  %v234_v19 = vld [vmem:[%s1018_s3 + $0x10] sm:$0xff]  ;;  %v235_v20 = vld [vmem:[%s1018_s3 + $0x18] sm:$0xff] }
  0x14   :  { %v28_v21 = vld [vmem:[%s1017_s0 + $0x10] sm:$0xff]  ;;  %v630_v22 = vpack.c.bf16 %v235_v20, %v234_v19  ;;  %v236_v23 = vld [vmem:[%s1018_s3 + $0x20] sm:$0xff]  ;;  %v237_v24 = vld [vmem:[%s1018_s3 + $0x28] sm:$0xff] }
  0x15   :  { %586 = vmatpush3.bf16.msra.mxu0 %v585_v46  ;;  %v633_v25 = vpack.c.bf16 %v237_v24, %v236_v23  ;;  %v238_v26 = vld [vmem:[%s1018_s3 + $0x30] sm:$0xff]  ;;  %v239_v27 = vld [vmem:[%s1018_s3 + $0x38] sm:$0xff]  ;;  %v240_v29 = vld [vmem:[%s1018_s3 + $0x40] sm:$0xff] }
  0x16   :  { %613 = vmatpush1.bf16.msra.mxu1 %v612_v47  ;;  %588 = vmatprep.subr.bf16.mxu0 %v587_v51  ;;  %v636_v28 = vpack.c.bf16 %v239_v27, %v238_v26  ;;  %v241_v30 = vld [vmem:[%s1018_s3 + $0x48] sm:$0xff]  ;;  %v242_v32 = vld [vmem:[%s1018_s3 + $0x50] sm:$0xff]  ;;  %v243_v33 = vld [vmem:[%s1018_s3 + $0x58] sm:$0xff] }
  0x17   :  { %614 = vmatprep.subr.bf16.mxu1 %v677_v2  ;;  %v639_v31 = vpack.c.bf16 %v241_v30, %v240_v29  ;;  %v642_v34 = vpack.c.bf16 %v243_v33, %v242_v32  ;;  %v244_v35 = vld [vmem:[%s1018_s3 + $0x60] sm:$0xff]  ;;  %v245_v36 = vld [vmem:[%s1018_s3 + $0x68] sm:$0xff]  ;;  %v246_v38 = vld [vmem:[%s1018_s3 + $0x70] sm:$0xff] }
  0x18   :  { %v645_v37 = vpack.c.bf16 %v245_v36, %v244_v35  ;;  %v247_v39 = vld [vmem:[%s1018_s3 + $0x78] sm:$0xff]  ;;  %v326_v42 = vld [vmem:[%s1019_s5] sm:$0xff]  ;;  %v327_v43 = vld [vmem:[%s1019_s5 + $0x8] sm:$0xff] }
  0x19   :  { %590 = vmatpush3.bf16.msra.mxu0 %v589_v57  ;;  %v648_v40 = vpack.c.bf16 %v247_v39, %v246_v38  ;;  %v328_v44 = vld [vmem:[%s1019_s5 + $0x10] sm:$0xff]  ;;  %v651_v45 = vpack.c.bf16 %v327_v43, %v326_v42  ;;  %v329_v46 = vld [vmem:[%s1019_s5 + $0x18] sm:$0xff]  ;;  %v330_v48 = vld [vmem:[%s1019_s5 + $0x20] sm:$0xff] }
  0x1a   :  { %616 = vmatpush1.bf16.msra.mxu1 %v615_v58  ;;  %592 = vmatprep.subr.bf16.mxu0 %v591_v60  ;;  %v654_v47 = vpack.c.bf16 %v329_v46, %v328_v44  ;;  %v331_v49 = vld [vmem:[%s1019_s5 + $0x28] sm:$0xff]  ;;  %v332_v51 = vld [vmem:[%s1019_s5 + $0x30] sm:$0xff]  ;;  %v333_v52 = vld [vmem:[%s1019_s5 + $0x38] sm:$0xff] }
  0x1b   :  { %617 = vmatprep.subr.bf16.mxu1 %v677_v2  ;;  %v657_v50 = vpack.c.bf16 %v331_v49, %v330_v48  ;;  %v660_v53 = vpack.c.bf16 %v333_v52, %v332_v51  ;;  %v334_v54 = vld [vmem:[%s1019_s5 + $0x40] sm:$0xff]  ;;  %v335_v55 = vld [vmem:[%s1019_s5 + $0x48] sm:$0xff]  ;;  %v336_v57 = vld [vmem:[%s1019_s5 + $0x50] sm:$0xff] }
  0x1c   :  { %v663_v56 = vpack.c.bf16 %v335_v55, %v334_v54  ;;  %v337_v58 = vld [vmem:[%s1019_s5 + $0x58] sm:$0xff]  ;;  %v338_v60 = vld [vmem:[%s1019_s5 + $0x60] sm:$0xff]  ;;  %v339_v61 = vld [vmem:[%s1019_s5 + $0x68] sm:$0xff] }
  0x1d   :  { %594 = vmatpush3.bf16.msra.mxu0 %v593_v3  ;;  %v666_v59 = vpack.c.bf16 %v337_v58, %v336_v57  ;;  %v669_v62 = vpack.c.bf16 %v339_v61, %v338_v60  ;;  %v424_v1 = vld [vmem:[%s1020_s2] ss:$0 sm:$0xff]  ;;  %v340_v9 = vld [vmem:[%s1019_s5 + $0x70] sm:$0xff] }
  0x1e   :  { %619 = vmatpush1.bf16.msra.mxu1 %v618_v4  ;;  %596 = vmatprep.subr.bf16.mxu0 %v595_v6 }
  0x1f   :  { %620 = vmatprep.subr.bf16.mxu1 %v677_v2 }
  0x21   :  { %598 = vmatpush3.bf16.msra.mxu0 %v597_v10 }
  0x22   :  { %622 = vmatpush1.bf16.msra.mxu1 %v621_v11  ;;  %626 = vmatprep.subr.bf16.mxu0 %v677_v2  ;;  %v426_v11 = vld [vmem:[%s1021_s4] ss:$0 sm:$0xff] }
  0x23   :  { %623 = vmatprep.subr.bf16.mxu1 %v677_v2 }
  0x24   :  { %156 = vmatmul.mubr.f32.vlgmr.msra.gmra.mrb[0].mxu0 %v26_v16  ;;  %v427_v16 = vld [vmem:[%s1022_s6] ss:$0 sm:$0xff] }
  0x25   :  { %628 = vmatpush3.bf16.msra.mxu0 %v627_v18  ;;  %529 = vmatprep.mubr.msk.f32.mxu0 %vm678_vm1, %v679_v41 }
  0x26   :  { %625 = vmatpush1.bf16.msra.mxu1 %v624_v17  ;;  %629 = vmatprep.subr.bf16.mxu0 %v677_v2 }
  0x27   :  { %650 = vmatprep.subr.bf16.mxu1 %v677_v2 }
  0x29   :  { %226 = vmatmul.mubr.f32.vlgmr.msra.gmra.mrb[0].mxu1 %v28_v21  ;;  %631 = vmatpush3.bf16.msra.mxu0 %v630_v22 }
  0x2a   :  { %632 = vmatprep.subr.bf16.mxu0 %v677_v2  ;;  %564 = vmatprep.mubr.msk.f32.mxu1 %vm678_vm1, %v679_v41 }
  0x2b   :  { %652 = vmatpush3.bf16.msra.mxu1 %v651_v45 }
  0x2c   :  { %653 = vmatprep.subr.bf16.mxu1 %v677_v2 }
  0x2d   :  { %634 = vmatpush3.bf16.msra.mxu0 %v633_v25 }
  0x2e   :  { %635 = vmatprep.subr.bf16.mxu0 %v677_v2 }
  0x2f   :  { %655 = vmatpush3.bf16.msra.mxu1 %v654_v47 }
  0x30   :  { %656 = vmatprep.subr.bf16.mxu1 %v677_v2 }
  0x31   :  { %637 = vmatpush3.bf16.msra.mxu0 %v636_v28 }
  0x32   :  { %638 = vmatprep.subr.bf16.mxu0 %v677_v2 }
  0x33   :  { %658 = vmatpush3.bf16.msra.mxu1 %v657_v50 }
  0x34   :  { %659 = vmatprep.subr.bf16.mxu1 %v677_v2 }
  0x35   :  { %640 = vmatpush3.bf16.msra.mxu0 %v639_v31 }
  0x36   :  { %641 = vmatprep.subr.bf16.mxu0 %v677_v2 }
  0x37   :  { %661 = vmatpush3.bf16.msra.mxu1 %v660_v53 }
  0x38   :  { %662 = vmatprep.subr.bf16.mxu1 %v677_v2 }
  0x39   :  { %643 = vmatpush3.bf16.msra.mxu0 %v642_v34 }
  0x3a   :  { %644 = vmatprep.subr.bf16.mxu0 %v677_v2 }
  0x3b   :  { %664 = vmatpush3.bf16.msra.mxu1 %v663_v56 }
  0x3c   :  { %665 = vmatprep.subr.bf16.mxu1 %v677_v2 }
  0x3d   :  { %646 = vmatpush3.bf16.msra.mxu0 %v645_v37 }
  0x3e   :  { %647 = vmatprep.subr.bf16.mxu0 %v677_v2 }
  0x3f   :  { %667 = vmatpush3.bf16.msra.mxu1 %v666_v59 }
  0x40   :  { %668 = vmatprep.subr.bf16.mxu1 %v677_v2 }
  0x41   :  { %649 = vmatpush3.bf16.msra.mxu0 %v648_v40 }
  0x43   :  { %670 = vmatpush3.bf16.msra.mxu1 %v669_v62 }
  0x44   :  { %671 = vmatprep.subr.bf16.mxu1 %v677_v2  ;;  %v341_v2 = vld [vmem:[%s1019_s5 + $0x78] sm:$0xff] }
  0x45   :  { %v672_v10 = vpack.c.bf16 %v341_v2, %v340_v9 }
  0x47   :  { %673 = vmatpush3.bf16.msra.mxu1 %v672_v10 }
  0xf7   :  { %v460_v63 = vpop.f32.mrb[0].mxu0 }
  0xf8   :  { %v461_v0 = vpop.f32.mrb[1].mxu0 }
  0xf9   :  { %v462_v3 = vadd.f32 %v461_v0, %v460_v63 }
  0xfb   :  { %v158_v4 = vadd.f32 %v462_v3, %v424_v1 }
  0xfc   :  { %v227_v5 = vpop.f32.mrb[0].mxu1 }
  0xfd   :  { %v229_v6 = vpop.f32.mrb[1].mxu1  ;;  %v228_v7 = vadd.f32 %v227_v5, %v158_v4 }
  0xff   :  { %v231_v8 = vmax.f32 %v228_v7, 0.0 }
 0x101   :  { %530 = vmatmul.mubr.f32.vlgmr.msra.gmra.mrb[2].mxu0 %v231_v8 }
 0x1d4   :  { %v321_v12 = vpop.f32.mrb[2].mxu0 }
 0x1d5   :  { %v322_v13 = vadd.f32 %v426_v11, %v321_v12  ;;  %v531_v14 = vpop.f32.mrb[3].mxu0 }
 0x1d7   :  { %v325_v15 = vmax.f32 %v322_v13, 0.0 }
 0x1d9   :  { %565 = vmatmul.mubr.f32.vlgmr.msra.gmra.mrb[2].mxu1 %v325_v15 }
 0x2ac   :  { %v415_v17 = vpop.f32.mrb[2].mxu1 }
 0x2ad   :  { %v416_v18 = vadd.f32 %v427_v16, %v415_v17  ;;  %v566_v19 = vpop.f32.mrb[3].mxu1 }
 0x2af   :  { %419 = vst [vmem:[%s1023_s7] sm:$0xff] %v416_v18 }

// kernel: net_forward.3
= control target key start
LH: loop header
LB: loop body
LE: loop exit
PB: predicated region body
PF: predicated region fallthrough
CT: control target
= control target key end

     0   :  { %s1066_s12 = smov 0   ;;  %s1259_s0 = inlined_call_operand.vmem [shape: f32[2,32,3,32], index: 0, kind: input, shape index: {}]   ;;  %s1260_s1 = inlined_call_operand.vmem [shape: f32[6,75], index: 1, kind: input, shape index: {}]   ;;  %s1261_s2 = inlined_call_operand.vmem [shape: f32[6,1], index: 2, kind: input, shape index: {}]   ;;  %s1262_s3 = inlined_call_operand.vmem [shape: f32[2,14,6,14], index: 3, kind: output, shape index: {}]  }
   0x1 LB: > { %s785_s13 = sadd.s32 4294967295, %s1028_s12   ;;  %p789_p0 = scmp.ge.s32.totalorder %s1028_s12, 1  ;;  %s1028_s12 = sphi %s1066_s12, %s13_s12  }
   0x2   : > { %p137_p1 = scmp.lt.s32.totalorder %s1028_s12, 3 }
   0x4   : > { %p138_p2 = pnand %p789_p0, %p137_p1 }
   0x5   : > { %p161_p3 = scmp.lt.s32.totalorder (!%p138_p2), %s785_s13, 1  ;;  %v1077_v0 = vld [vmem:[%s1260_s1] sm:$0x3f] (!%p138_p2)  ;;  %v173_v2 = vlaneseq (!%p138_p2)  ;;  %v1034_v9 = vmov (!%p138_p2), 0.0   ;;  %s1126_s26 = smov (!%p138_p2), 0  }
   0x6   : > { %141 = sbr.rel (%p138_p2) target bundleno = 625 (0x271), region = 32  ;;  %v1082_v1 = vld [vmem:[%s1261_s2] sm:$0x3f] (!%p138_p2) }
   0x7   : > { %v1084_v3 = vshrl.u32 (!%p138_p2), %v173_v2, 7  ;;  %v179_v4 = vand.u32 (!%p138_p2), 127, %v173_v2 }
   0x9   : > { %v1087_v5 = vadd.s32 (!%p138_p2), 8, %v1084_v3  ;;  %v1090_v6 = vadd.s32 (!%p138_p2), 16, %v1084_v3  ;;  %v177_v7 = vadd.s32 (!%p138_p2), 24, %v1084_v3  ;;  %v1093_v8 = vmul.u32 (!%p138_p2), 2, %v179_v4 }
   0xb   : > { %vm181_vm0 = vcmp.eq.s32.totalorder (!%p138_p2), %v1084_v3, %v1093_v8  ;;  %vm182_vm1 = vcmp.eq.s32.totalorder (!%p138_p2), %v1087_v5, %v1093_v8  ;;  %vm183_vm2 = vcmp.eq.s32.totalorder (!%p138_p2), %v1090_v6, %v1093_v8  ;;  %vm184_vm3 = vcmp.eq.s32.totalorder (!%p138_p2), %v177_v7, %v1093_v8 }
   0xc   : > { %v1112_v10 = vsel (!%p138_p2), %vm184_vm3, 1.0, %v1034_v9  ;;  %v1115_v11 = vadd.s32 (!%p138_p2), 1, %v1093_v8 }
   0xd   : > { %s1266_s13 = smov (!%p161_p3, %s785_s13), 1 }
   0xe   : > { %s835_s18 = sshll.u32 %s1266_s13, 7  ;;  %s988_s19 = smul.u32 112, %s1266_s13  ;;  %vm194_vm4 = vcmp.eq.s32.totalorder %v1084_v3, %v1115_v11  ;;  %vm195_vm5 = vcmp.eq.s32.totalorder %v1087_v5, %v1115_v11  ;;  %vm196_vm6 = vcmp.eq.s32.totalorder %v1090_v6, %v1115_v11  ;;  %vm197_vm7 = vcmp.eq.s32.totalorder %v177_v7, %v1115_v11 }
   0xf   : > { %s1098_s22 = scalar_lea.vmem %s1259_s0, %s835_s18  ;;  %v1124_v12 = vsel %vm197_vm7, 1.0, %v1034_v9 }
  0x10   : > { %s1103_s25 = scalar_lea.vmem %s1262_s3, %s988_s19 }
  0x11 LB: >> { %s836_s27 = sshll.u32 %s1032_s26, 3  ;;  %vm236_vm8 = vcmask 223232   ;;  %s1035_s29 = smov 125   ;;  %v1037_v19 = vmov 0.0|0.0   ;;  %vm1040_vm9 = vmmov 0   ;;  %v1041_v20 = vmov 0.0   ;;  %vm982_vm14 = vmpackc.low %vm195_vm5, %vm194_vm4  ;;  %s1032_s26 = sphi %s1126_s26, %s211_s26  }
  0x12   : >> { %s214_s28 = scalar_lea.vmem %s1098_s22, %s836_s27  ;;  %s1036_s30 = smov 127   ;;  %942 = vmatprep.subr.bf16.mxu0 %v1037_v19  ;;  %958 = vmatprep.subr.bf16.mxu1 %v1037_v19  ;;  %v1042_v21 = vmov 0   ;;  %vm385_vm10 = vcmask 1042432   ;;  %vm1043_vm11 = vmmov 1   ;;  %vm381_vm13 = vcmask 613376   ;;  %vm975_vm15 = vmpackc.low %vm182_vm1, %vm181_vm0 }
  0x13   : >> { %v215_v13 = vld [vmem:[%s214_s28] sm:$0x7]  ;;  %v805_v14 = vld [vmem:[%s214_s28 + $0x4] sm:$0x7]  ;;  %v808_v15 = vld [vmem:[%s214_s28 + $0x8] sm:$0x7]  ;;  %894 = vmatprep.mubr.msk.f32.mxu0 %vm1040_vm9, %v1041_v20  ;;  %917 = vmatprep.mubr.msk.f32.mxu1 %vm1040_vm9, %v1041_v20  ;;  %s698_s6 = scalar_lea.vmem %s1103_s25, %s836_s27 }
  0x14   : >> { %247 = vrot.lane.b32.xlu1 %v215_v13, %s1035_s29  ;;  %237 = vst.msk [vmem:[#allocation2] sm:$0x7] %vm236_vm8, %v215_v13  ;;  %239 = vrot.lane.b32.xlu0 %v215_v13, %s1036_s30  ;;  %255 = vst.msk [vmem:[#allocation2 + $0xf] sm:$0x7] %vm236_vm8, %v805_v14  ;;  %v811_v16 = vld [vmem:[%s214_s28 + $0xc] sm:$0x7] }
  0x15   : >> { %328 = vst.msk [vmem:[#allocation2 + $0x50] sm:$0x7] %vm236_vm8, %v805_v14  ;;  %273 = vst.msk [vmem:[#allocation2 + $0x1e] sm:$0x7] %vm236_vm8, %v808_v15  ;;  %v814_v17 = vld [vmem:[%s214_s28 + $0x10] sm:$0x7]  ;;  %1017 = vset.pattern.permute.xlu0 %v1042_v21 }
  0x16   : >> { %333 = vst.msk [vmem:[#allocation2 + $0x5f] sm:$0x7] %vm236_vm8, %v808_v15  ;;  %291 = vst.msk [vmem:[#allocation2 + $0x2d] sm:$0x7] %vm236_vm8, %v811_v16  ;;  %v817_v18 = vld [vmem:[%s214_s28 + $0x14] sm:$0x7] }
  0x17   : >> { %338 = vst.msk [vmem:[#allocation2 + $0x6e] sm:$0x7] %vm236_vm8, %v811_v16  ;;  %309 = vst.msk [vmem:[#allocation2 + $0x3c] sm:$0x7] %vm236_vm8, %v814_v17  ;;  %s1038_s4 = smov 124   ;;  %s1039_s5 = smov 126  }
  0x18   : >> { %343 = vst.msk [vmem:[#allocation2 + $0x7d] sm:$0x7] %vm236_vm8, %v814_v17  ;;  %348 = vst.msk [vmem:[#allocation2 + $0x8c] sm:$0x7] %vm236_vm8, %v817_v18  ;;  %251 = vrot.lane.b32.xlu1 %v215_v13, %s1038_s4  ;;  %243 = vrot.lane.b32.xlu0 %v215_v13, %s1039_s5  ;;  %vm549_vm3 = vcmask 1043456   ;;  %s211_s26 = sadd.s32 1, %s1032_s26  }
  0x19   : >> { %vm1209_vm12 = vmpackc.low %vm385_vm10, %vm1043_vm11  ;;  %vm699_vm10 = vcmask 111616   ;;  %p208_p4 = scmp.ge.s32.totalorder %s211_s26, 14  }
  0x1a   : >> { %vm979_vm7 = vmpackc.low %vm549_vm3, %vm183_vm2 }
  0x1c   : >> { %261 = vrot.lane.b32.xlu1 %v805_v14, %s1039_s5  ;;  %257 = vrot.lane.b32.xlu0 %v805_v14, %s1036_s30 }
  0x20   : >> { %269 = vrot.lane.b32.xlu1 %v805_v14, %s1038_s4  ;;  %265 = vrot.lane.b32.xlu0 %v805_v14, %s1035_s29 }
  0x24   : >> { %279 = vrot.lane.b32.xlu1 %v808_v15, %s1039_s5  ;;  %275 = vrot.lane.b32.xlu0 %v808_v15, %s1036_s30 }
  0x28   : >> { %287 = vrot.lane.b32.xlu1 %v808_v15, %s1038_s4  ;;  %283 = vrot.lane.b32.xlu0 %v808_v15, %s1035_s29 }
  0x2c   : >> { %297 = vrot.lane.b32.xlu1 %v811_v16, %s1039_s5  ;;  %293 = vrot.lane.b32.xlu0 %v811_v16, %s1036_s30 }
  0x30   : >> { %305 = vrot.lane.b32.xlu1 %v811_v16, %s1038_s4  ;;  %301 = vrot.lane.b32.xlu0 %v811_v16, %s1035_s29 }
  0x34   : >> { %315 = vrot.lane.b32.xlu1 %v814_v17, %s1039_s5  ;;  %311 = vrot.lane.b32.xlu0 %v814_v17, %s1036_s30 }
  0x38   : >> { %323 = vrot.lane.b32.xlu1 %v814_v17, %s1038_s4  ;;  %319 = vrot.lane.b32.xlu0 %v814_v17, %s1035_s29 }
  0x3c   : >> { %354 = vrot.lane.b32.xlu1 %v817_v18, %s1039_s5  ;;  %350 = vrot.lane.b32.xlu0 %v817_v18, %s1036_s30 }
  0x40   : >> { %362 = vrot.lane.b32.xlu1 %v817_v18, %s1038_s4  ;;  %358 = vrot.lane.b32.xlu0 %v817_v18, %s1035_s29 }
  0x44   : >> { %378 = vperm.xlu0 %1017, %v1082_v1  }
  0x86   : >> { %v248_v22 = vpop.permute.xlu1 %247  ;;  %v240_v23 = vpop.permute.xlu0 %239 }
  0x87   : >> { %250 = vst.msk [vmem:[#allocation2 + $0x9] sm:$0x7] %vm236_vm8, %v248_v22  ;;  %242 = vst.msk [vmem:[#allocation2 + $0x3] sm:$0x7] %vm236_vm8, %v240_v23 }
  0x8a   : >> { %v252_v24 = vpop.permute.xlu1 %251  ;;  %v244_v25 = vpop.permute.xlu0 %243 }
  0x8b   : >> { %254 = vst.msk [vmem:[#allocation2 + $0xc] sm:$0x7] %vm236_vm8, %v252_v24  ;;  %246 = vst.msk [vmem:[#allocation2 + $0x6] sm:$0x7] %vm236_vm8, %v244_v25  ;;  %v1044_v24 = vmov 1.0|1.0  }
  0x8e   : >> { %v262_v26 = vpop.permute.xlu1 %261  ;;  %v258_v27 = vpop.permute.xlu0 %257 }
  0x8f   : >> { %264 = vst.msk [vmem:[#allocation2 + $0x15] sm:$0x7] %vm236_vm8, %v262_v26  ;;  %330 = vst.msk [vmem:[#allocation2 + $0x56] sm:$0x7] %vm236_vm8, %v262_v26 }
  0x90   : >> { %260 = vst.msk [vmem:[#allocation2 + $0x12] sm:$0x7] %vm236_vm8, %v258_v27  ;;  %329 = vst.msk [vmem:[#allocation2 + $0x53] sm:$0x7] %vm236_vm8, %v258_v27 }
  0x92   : >> { %v270_v28 = vpop.permute.xlu1 %269  ;;  %v266_v29 = vpop.permute.xlu0 %265  ;;  %v366_v30 = vld [vmem:[#allocation2] sm:$0xff]  ;;  %v367_v31 = vld [vmem:[#allocation2 + $0x8] sm:$0xff] }
  0x93   : >> { %272 = vst.msk [vmem:[#allocation2 + $0x1b] sm:$0x7] %vm236_vm8, %v270_v28  ;;  %332 = vst.msk [vmem:[#allocation2 + $0x5c] sm:$0x7] %vm236_vm8, %v270_v28  ;;  %v943_v32 = vpack.c.bf16 %v367_v31, %v366_v30 }
  0x94   : >> { %268 = vst.msk [vmem:[#allocation2 + $0x18] sm:$0x7] %vm236_vm8, %v266_v29  ;;  %331 = vst.msk [vmem:[#allocation2 + $0x59] sm:$0x7] %vm236_vm8, %v266_v29 }
  0x95   : >> { %944 = vmatpush3.bf16.msra.mxu0 %v943_v32 }
  0x96   : >> { %v280_v33 = vpop.permute.xlu1 %279  ;;  %v276_v34 = vpop.permute.xlu0 %275  ;;  %945 = vmatprep.subr.bf16.mxu0 %v1037_v19 }
  0x97   : >> { %282 = vst.msk [vmem:[#allocation2 + $0x24] sm:$0x7] %vm236_vm8, %v280_v33  ;;  %335 = vst.msk [vmem:[#allocation2 + $0x65] sm:$0x7] %vm236_vm8, %v280_v33  ;;  %v368_v35 = vld [vmem:[#allocation2 + $0x10] sm:$0xff] }
  0x98   : >> { %278 = vst.msk [vmem:[#allocation2 + $0x21] sm:$0x7] %vm236_vm8, %v276_v34  ;;  %334 = vst.msk [vmem:[#allocation2 + $0x62] sm:$0x7] %vm236_vm8, %v276_v34  ;;  %v459_v39 = vld [vmem:[#allocation2 + $0x50] sm:$0xff] }
  0x9a   : >> { %v288_v36 = vpop.permute.xlu1 %287  ;;  %v284_v37 = vpop.permute.xlu0 %283 }
  0x9b   : >> { %v369_v38 = vld [vmem:[#allocation2 + $0x18] sm:$0xff]  ;;  %290 = vst.msk [vmem:[#allocation2 + $0x2a] sm:$0x7] %vm236_vm8, %v288_v36  ;;  %337 = vst.msk [vmem:[#allocation2 + $0x6b] sm:$0x7] %vm236_vm8, %v288_v36 }
  0x9c   : >> { %v460_v40 = vld [vmem:[#allocation2 + $0x58] sm:$0xff]  ;;  %286 = vst.msk [vmem:[#allocation2 + $0x27] sm:$0x7] %vm236_vm8, %v284_v37  ;;  %336 = vst.msk [vmem:[#allocation2 + $0x68] sm:$0x7] %vm236_vm8, %v284_v37  ;;  %v946_v41 = vpack.c.bf16 %v369_v38, %v368_v35 }
  0x9d   : >> { %v959_v42 = vpack.c.bf16 %v460_v40, %v459_v39 }
  0x9e   : >> { %947 = vmatpush3.bf16.msra.mxu0 %v946_v41  ;;  %v298_v43 = vpop.permute.xlu1 %297  ;;  %v294_v44 = vpop.permute.xlu0 %293 }
  0x9f   : >> { %960 = vmatpush3.bf16.msra.mxu1 %v959_v42  ;;  %948 = vmatprep.subr.bf16.mxu0 %v1037_v19  ;;  %300 = vst.msk [vmem:[#allocation2 + $0x33] sm:$0x7] %vm236_vm8, %v298_v43  ;;  %340 = vst.msk [vmem:[#allocation2 + $0x74] sm:$0x7] %vm236_vm8, %v298_v43  ;;  %v461_v45 = vld [vmem:[#allocation2 + $0x60] sm:$0xff] }
  0xa0   : >> { %961 = vmatprep.subr.bf16.mxu1 %v1037_v19  ;;  %296 = vst.msk [vmem:[#allocation2 + $0x30] sm:$0x7] %vm236_vm8, %v294_v44  ;;  %339 = vst.msk [vmem:[#allocation2 + $0x71] sm:$0x7] %vm236_vm8, %v294_v44 }
  0xa2   : >> { %v306_v46 = vpop.permute.xlu1 %305  ;;  %v302_v47 = vpop.permute.xlu0 %301 }
  0xa3   : >> { %v370_v48 = vld [vmem:[#allocation2 + $0x20] sm:$0xff]  ;;  %v371_v49 = vld [vmem:[#allocation2 + $0x28] sm:$0xff]  ;;  %308 = vst.msk [vmem:[#allocation2 + $0x39] sm:$0x7] %vm236_vm8, %v306_v46  ;;  %342 = vst.msk [vmem:[#allocation2 + $0x7a] sm:$0x7] %vm236_vm8, %v306_v46 }
  0xa4   : >> { %v462_v50 = vld [vmem:[#allocation2 + $0x68] sm:$0xff]  ;;  %304 = vst.msk [vmem:[#allocation2 + $0x36] sm:$0x7] %vm236_vm8, %v302_v47  ;;  %341 = vst.msk [vmem:[#allocation2 + $0x77] sm:$0x7] %vm236_vm8, %v302_v47  ;;  %v949_v51 = vpack.c.bf16 %v371_v49, %v370_v48 }
  0xa5   : >> { %v962_v52 = vpack.c.bf16 %v462_v50, %v461_v45 }
  0xa6   : >> { %950 = vmatpush3.bf16.msra.mxu0 %v949_v51  ;;  %v316_v53 = vpop.permute.xlu1 %315  ;;  %v312_v54 = vpop.permute.xlu0 %311 }
  0xa7   : >> { %963 = vmatpush3.bf16.msra.mxu1 %v962_v52  ;;  %951 = vmatprep.subr.bf16.mxu0 %v1037_v19  ;;  %318 = vst.msk [vmem:[#allocation2 + $0x42] sm:$0x7] %vm236_vm8, %v316_v53  ;;  %345 = vst.msk [vmem:[#allocation2 + $0x83] sm:$0x7] %vm236_vm8, %v316_v53 }
  0xa8   : >> { %964 = vmatprep.subr.bf16.mxu1 %v1037_v19  ;;  %314 = vst.msk [vmem:[#allocation2 + $0x3f] sm:$0x7] %vm236_vm8, %v312_v54  ;;  %344 = vst.msk [vmem:[#allocation2 + $0x80] sm:$0x7] %vm236_vm8, %v312_v54 }
  0xaa   : >> { %v324_v55 = vpop.permute.xlu1 %323  ;;  %v320_v56 = vpop.permute.xlu0 %319 }
  0xab   : >> { %v463_v57 = vld [vmem:[#allocation2 + $0x70] sm:$0xff]  ;;  %v464_v58 = vld [vmem:[#allocation2 + $0x78] sm:$0xff]  ;;  %326 = vst.msk [vmem:[#allocation2 + $0x48] sm:$0x7] %vm236_vm8, %v324_v55  ;;  %347 = vst.msk [vmem:[#allocation2 + $0x89] sm:$0x7] %vm236_vm8, %v324_v55 }
  0xac   : >> { %322 = vst.msk [vmem:[#allocation2 + $0x45] sm:$0x7] %vm236_vm8, %v320_v56  ;;  %346 = vst.msk [vmem:[#allocation2 + $0x86] sm:$0x7] %vm236_vm8, %v320_v56  ;;  %v965_v59 = vpack.c.bf16 %v464_v58, %v463_v57  ;;  %v372_v62 = vld [vmem:[#allocation2 + $0x30] sm:$0xff] }
  0xae   : >> { %966 = vmatpush3.bf16.msra.mxu1 %v965_v59  ;;  %v355_v60 = vpop.permute.xlu1 %354  ;;  %v351_v61 = vpop.permute.xlu0 %350 }
  0xaf   : >> { %v373_v63 = vld [vmem:[#allocation2 + $0x38] sm:$0xff]  ;;  %967 = vmatprep.subr.bf16.mxu1 %v1037_v19  ;;  %357 = vst.msk [vmem:[#allocation2 + $0x92] sm:$0x7] %vm236_vm8, %v355_v60  ;;  %353 = vst.msk [vmem:[#allocation2 + $0x8f] sm:$0x7] %vm236_vm8, %v351_v61 }
  0xb0   : >> { %v952_v2 = vpack.c.bf16 %v373_v63, %v372_v62 }
  0xb2   : >> { %953 = vmatpush3.bf16.msra.mxu0 %v952_v2  ;;  %v363_v4 = vpop.permute.xlu1 %362  ;;  %v359_v7 = vpop.permute.xlu0 %358  ;;  %v375_v13 = vld [vmem:[#allocation2 + $0x48] sm:$0x7] }
  0xb3   : >> { %954 = vmatprep.subr.bf16.mxu0 %v1037_v19  ;;  %v374_v9 = vld [vmem:[#allocation2 + $0x40] sm:$0xff]  ;;  %365 = vst.msk [vmem:[#allocation2 + $0x98] sm:$0x7] %vm236_vm8, %v363_v4  ;;  %361 = vst.msk [vmem:[#allocation2 + $0x95] sm:$0x7] %vm236_vm8, %v359_v7 }
  0xb4   : >> { %v955_v15 = vpack.c.bf16 %v375_v13, %v374_v9  ;;  %v465_v16 = vld [vmem:[#allocation2 + $0x80] sm:$0xff]  ;;  %vm986_vm8 = vmpackc.low %vm549_vm3, %vm196_vm6 }
  0xb6   : >> { %957 = vmatpush3.bf16.msk.msra.mxu0 %vm1209_vm12, %v955_v15  ;;  %v466_v17 = vld [vmem:[#allocation2 + $0x88] sm:$0xff] }
  0xb7   : >> { %974 = vmatprep.subr.bf16.mxu0 %v1037_v19  ;;  %v968_v18 = vpack.c.bf16 %v466_v17, %v465_v16 }
  0xb9   : >> { %895 = vmatmul.mubr.msk.f32.vlgmr.msra.gmra.mrb[0].mxu0 %vm381_vm13, %v1077_v0  ;;  %969 = vmatpush3.bf16.msra.mxu1 %v968_v18 }
  0xba   : >> { %928 = vmatprep.mubr.msk.f32.mxu0 %vm1040_vm9, %v1041_v20  ;;  %970 = vmatprep.subr.bf16.mxu1 %v1037_v19  ;;  %v467_v21 = vld [vmem:[#allocation2 + $0x90] sm:$0xff]  ;;  %v468_v22 = vld [vmem:[#allocation2 + $0x98] sm:$0x7] }
  0xbb   : >> { %v971_v23 = vpack.c.bf16 %v468_v22, %v467_v21  ;;  %976 = vmatpush3.bf16.msk.msra.mxu0 %vm975_vm15, %v1044_v24 }
  0xbc   : >> { %977 = vmatprep.subr.bf16.mxu0 %v1037_v19 }
  0xbd   : >> { %973 = vmatpush3.bf16.msk.msra.mxu1 %vm1209_vm12, %v971_v23 }
  0xbe   : >> { %981 = vmatprep.subr.bf16.mxu1 %v1037_v19 }
  0xc0   : >> { %918 = vmatmul.mubr.msk.f32.vlgmr.msra.gmra.mrb[0].mxu1 %vm381_vm13, %v1077_v0 }
  0xc1   : >> { %939 = vmatprep.mubr.msk.f32.mxu1 %vm1040_vm9, %v1041_v20  ;;  %983 = vmatpush3.bf16.msk.msra.mxu1 %vm982_vm14, %v1044_v24  ;;  %v1045_v20 = vmov 1.0   ;;  %vm545_vm9 = vcmask 228352  }
  0xc2   : >> { %984 = vmatprep.subr.bf16.mxu1 %v1037_v19  ;;  %v978_v25 = vpack.c.bf16 %v1112_v10, %v1045_v20  ;;  %v985_v26 = vpack.c.bf16 %v1124_v12, %v1045_v20 }
  0xc3   : >> { %v379_v28 = vpop.permute.xlu0 %378 }
  0xc4   : >> { %980 = vmatpush3.bf16.msk.msra.mxu0 %vm979_vm7, %v978_v25 }
  0xc5   : >> { %987 = vmatpush3.bf16.msk.msra.mxu1 %vm986_vm8, %v985_v26 }
 0x18c   : >> { %v455_v27 = vpop.f32.mrb[0].mxu0 }
 0x18d   : >> { %v896_v19 = vpop.f32.mrb[1].mxu0  ;;  %v456_v29 = vadd.f32 %v455_v27, %v379_v28 }
 0x18f   : >> { %v542_v32 = vmax.f32 %v456_v29, 0.0 }
 0x193   : >> { %v538_v30 = vpop.f32.mrb[0].mxu1 }
 0x194   : >> { %v539_v31 = vadd.f32 %v538_v30, %v379_v28  ;;  %v919_v33 = vpop.f32.mrb[1].mxu1 }
 0x196   : >> { %v543_v34 = vmax.f32 %v539_v31, 0.0 }
 0x198   : >> { %v544_v35 = vmax.f32 %v542_v32, %v543_v34 }
 0x19a   : >> { %929 = vmatmul.mubr.msk.f32.vlgmr.msra.gmra.mrb[2].mxu0 %vm545_vm9, %v544_v35  ;;  %940 = vmatmul.mubr.msk.f32.vlgmr.msra.gmra.mrb[2].mxu1 %vm545_vm9, %v544_v35 }
 0x26a   : > { %210 = sbr.rel (!%p208_p4) target bundleno = 17 (0x11), region = 77 }
 0x26d   : >> { %v619_v36 = vpop.f32.mrb[2].mxu0  ;;  %v692_v37 = vpop.f32.mrb[2].mxu1 }
 0x26e   : >> { %v696_v38 = vmax.f32 %v619_v36, %v692_v37  ;;  %v930_v39 = vpop.f32.mrb[3].mxu0  ;;  %v941_v40 = vpop.f32.mrb[3].mxu1 }
 0x270   : >> { %700 = vst.msk [vmem:[%s698_s6] sm:$0x3f] %vm699_vm10, %v696_v38 }
 0x271 PF: > { %s13_s12 = sadd.s32 1, %s1028_s12  }
 0x272   : > { %p10_p5 = scmp.ge.s32.totalorder %s13_s12, 4  }
 0x274   :  { %12 = sbr.rel (!%p10_p5) target bundleno = 1 (0x1), region = 88 }

</bundles_post_ra>
